<compile_context>
chip_gen: v7x
topology: tpu7x:2x2x1
jax: 0.10.0
libtpu: 0.0.40
codegen_flags: <defaults>
</compile_context>

<pallas_src>
import jax
import jax.numpy as jnp
from jax.experimental import pallas as pl
from jax.experimental.pallas import tpu as pltpu

EMBED_SIZE = 768
FF_HIDDEN_SIZE = 1024
NUM_HEADS = 12          # unused by the effective forward pass (attention is a no-op)
WINDOW_SIZE = 5         # unused by the effective forward pass (attention is a no-op)
LN_EPS = 1e-5


def _round_up(n, m):
    return ((n + m - 1) // m) * m


def _vmem_limit_bytes():
    # Leave ~25% headroom on the physical VMEM of the current generation:
    # v5e/v6e (128 MiB) -> 96 MiB, v7x (64 MiB) -> 48 MiB.
    try:
        cap = int(pltpu.get_tpu_info().vmem_capacity_bytes)
    except Exception:
        cap = 64 << 20
    return min(96 << 20, max(32 << 20, (cap * 3) // 4))


def _layer_norm(x, gamma, beta):
    # x: (TM, E) f32; gamma/beta: (1, E) f32 (implicit broadcast).
    # Single-pass mean / variance (sum and sum-of-squares) -> only two
    # cross-lane XLU reductions per LN. Biased variance, eps=1e-5.
    inv_n = 1.0 / x.shape[-1]
    mean = jnp.sum(x, axis=-1, keepdims=True) * inv_n
    mean_sq = jnp.sum(x * x, axis=-1, keepdims=True) * inv_n
    var = mean_sq - mean * mean
    inv = jax.lax.rsqrt(var + LN_EPS)
    return (x - mean) * inv * gamma + beta


def transformer_block_kernel(x_ref, w1_ref, b1_ref, w2_ref, b2_ref,
                             g1_ref, be1_ref, g2_ref, be2_ref, o_ref):
    # Activations may live in HBM as bf16; all LayerNorm math is f32.
    x = x_ref[...].astype(jnp.float32)                        # (TM, E)

    # attention_output is a no-op in the reference module -> residual is just x
    x1 = _layer_norm(x, g1_ref[...], be1_ref[...])            # LayerNorm1 (f32)

    # FeedForward: fc2(relu(fc1(x1))) — bf16 operands, f32 accumulation (MXU).
    h = jnp.dot(x1.astype(jnp.bfloat16), w1_ref[...],
                preferred_element_type=jnp.float32) + b1_ref[...]
    h = jnp.maximum(h, 0.0)                                   # ReLU (f32)
    ff = jnp.dot(h.astype(jnp.bfloat16), w2_ref[...],
                 preferred_element_type=jnp.float32) + b2_ref[...]

    y = x1 + ff                                               # residual
    o_ref[...] = _layer_norm(y, g2_ref[...], be2_ref[...]).astype(o_ref.dtype)


def transformer_block(x, params, mask=None, *, tm=512):
    """x: (B, S, E), any float dtype (bf16 recommended). Returns (B, S, E) in x.dtype."""
    del mask  # unused: attention in the reference module computes nothing
    B, S, E = x.shape
    H = params["w1"].shape[1]
    assert E % 128 == 0 and H % 128 == 0

    n_rows = B * S
    x2d = x.reshape(n_rows, E)        # keep caller dtype (bf16 halves HBM traffic)

    # Row tile: as large as requested, never larger than the (8-aligned) row
    # count. If everything would fit in a single tile, split it so the
    # "parallel" grid axis has >= 2 steps (keeps both v7x TensorCores busy).
    tm_eff = _round_up(min(tm, _round_up(n_rows, 8)), 8)
    if n_rows > 8 and pl.cdiv(n_rows, tm_eff) < 2:
        tm_eff = _round_up(pl.cdiv(n_rows, 2), 8)
    grid = (pl.cdiv(n_rows, tm_eff),)   # ragged last block handled by Pallas

    full = lambda i: (0, 0)
    rows = lambda i: (i, 0)

    out2d = pl.pallas_call(
        transformer_block_kernel,
        out_shape=jax.ShapeDtypeStruct((n_rows, E), x.dtype),
        grid_spec=pltpu.PrefetchScalarGridSpec(
            num_scalar_prefetch=0,
            grid=grid,
            in_specs=[
                pl.BlockSpec((tm_eff, E), rows),   # x rows (bf16 or f32)
                pl.BlockSpec((E, H), full),        # w1 (bf16, DMA'd once)
                pl.BlockSpec((1, H), full),        # b1
                pl.BlockSpec((H, E), full),        # w2 (bf16, DMA'd once)
                pl.BlockSpec((1, E), full),        # b2
                pl.BlockSpec((1, E), full),        # ln1 gamma
                pl.BlockSpec((1, E), full),        # ln1 beta
                pl.BlockSpec((1, E), full),        # ln2 gamma
                pl.BlockSpec((1, E), full),        # ln2 beta
            ],
            out_specs=pl.BlockSpec((tm_eff, E), rows),
        ),
        compiler_params=pltpu.CompilerParams(
            dimension_semantics=("parallel",),     # shard row tiles across TCs
            vmem_limit_bytes=_vmem_limit_bytes(),  # generation-aware headroom
        ),
    )(
        x2d,
        params["w1"], params["b1"],
        params["w2"], params["b2"],
        params["ln1_g"], params["ln1_b"],
        params["ln2_g"], params["ln2_b"],
    )
    return out2d.reshape(B, S, E)


def init_params(key, embed_size, ff_hidden_size):
    k1, k2, k3, k4 = jax.random.split(key, 4)
    # Linear weights stored as (in, out); scale like PyTorch's uniform(-1/sqrt(in), 1/sqrt(in)).
    # Weights are cast to bf16 once here (not per-call) for the MXU fast path.
    s1 = 1.0 / jnp.sqrt(embed_size)
    s2 = 1.0 / jnp.sqrt(ff_hidden_size)
    return {
        "w1": jax.random.uniform(k1, (embed_size, ff_hidden_size),
                                 jnp.float32, -s1, s1).astype(jnp.bfloat16),
        "b1": jax.random.uniform(k2, (1, ff_hidden_size), jnp.float32, -s1, s1),
        "w2": jax.random.uniform(k3, (ff_hidden_size, embed_size),
                                 jnp.float32, -s2, s2).astype(jnp.bfloat16),
        "b2": jax.random.uniform(k4, (1, embed_size), jnp.float32, -s2, s2),
        # nn.LayerNorm defaults: weight = 1, bias = 0
        "ln1_g": jnp.ones((1, embed_size), jnp.float32),
        "ln1_b": jnp.zeros((1, embed_size), jnp.float32),
        "ln2_g": jnp.ones((1, embed_size), jnp.float32),
        "ln2_b": jnp.zeros((1, embed_size), jnp.float32),
    }


def transformer_block_ref(x, params):
    # Pure-JAX reference mirroring the kernel's numerics
    # (f32 LayerNorm, bf16 matmul operands, f32 accumulation, output in x.dtype).
    def ln(v, g, b):
        m = jnp.mean(v, axis=-1, keepdims=True)
        c = v - m
        var = jnp.mean(c * c, axis=-1, keepdims=True)
        return c * jax.lax.rsqrt(var + LN_EPS) * g + b

    xf = x.astype(jnp.float32)
    x1 = ln(xf, params["ln1_g"][0], params["ln1_b"][0])
    h = jnp.dot(x1.astype(jnp.bfloat16), params["w1"],
                preferred_element_type=jnp.float32) + params["b1"][0]
    h = jnp.maximum(h, 0.0)
    ff = jnp.dot(h.astype(jnp.bfloat16), params["w2"],
                 preferred_element_type=jnp.float32) + params["b2"][0]
    return ln(x1 + ff, params["ln2_g"][0], params["ln2_b"][0]).astype(x.dtype)


if __name__ == "__main__":
    key = jax.random.PRNGKey(0)
    kx, kp = jax.random.split(key)

    batch, seq = 2, 8
    # Activations carried as bf16 (recommended for v6e HBM-bound regime).
    x = jax.random.normal(kx, (batch, seq, EMBED_SIZE), jnp.bfloat16)
    params = init_params(kp, EMBED_SIZE, FF_HIDDEN_SIZE)

    out = transformer_block(x, params)
    out = jax.block_until_ready(out)

    ref = transformer_block_ref(x, params)
    assert out.shape == (batch, seq, EMBED_SIZE)
    assert out.dtype == x.dtype
    assert jnp.allclose(out.astype(jnp.float32), ref.astype(jnp.float32),
                        atol=2e-2, rtol=2e-2), "mismatch vs pure-JAX reference"

    print("KERNEL_OK")
</pallas_src>

<mosaic_0001>
module attributes {stable_mosaic.version = 11 : i64} {
  func.func @transformer_block_kernel(%arg0: i32, %arg1: memref<8x768xbf16, #tpu.memory_space<vmem>>, %arg2: memref<768x1024xbf16, #tpu.memory_space<vmem>>, %arg3: memref<1x1024xf32, #tpu.memory_space<vmem>>, %arg4: memref<1024x768xbf16, #tpu.memory_space<vmem>>, %arg5: memref<1x768xf32, #tpu.memory_space<vmem>>, %arg6: memref<1x768xf32, #tpu.memory_space<vmem>>, %arg7: memref<1x768xf32, #tpu.memory_space<vmem>>, %arg8: memref<1x768xf32, #tpu.memory_space<vmem>>, %arg9: memref<1x768xf32, #tpu.memory_space<vmem>>, %arg10: memref<8x768xbf16, #tpu.memory_space<vmem>>) attributes {dimension_semantics = [#tpu.dimension_semantics<parallel>], iteration_bounds = array<i64: 2>, scalar_prefetch = 0 : i64, scratch_operands = 0 : i64, tpu.core_type = #tpu.core_type<tc>, window_params = [{transform_indices = @transform_0, window_bounds = array<i64: 8, 768>}, {pipeline_mode = #tpu.pipeline_mode<synchronous>, transform_indices = @transform_1, window_bounds = array<i64: 768, 1024>}, {pipeline_mode = #tpu.pipeline_mode<synchronous>, transform_indices = @transform_2, window_bounds = array<i64: 1, 1024>}, {pipeline_mode = #tpu.pipeline_mode<synchronous>, transform_indices = @transform_3, window_bounds = array<i64: 1024, 768>}, {pipeline_mode = #tpu.pipeline_mode<synchronous>, transform_indices = @transform_4, window_bounds = array<i64: 1, 768>}, {pipeline_mode = #tpu.pipeline_mode<synchronous>, transform_indices = @transform_5, window_bounds = array<i64: 1, 768>}, {pipeline_mode = #tpu.pipeline_mode<synchronous>, transform_indices = @transform_6, window_bounds = array<i64: 1, 768>}, {pipeline_mode = #tpu.pipeline_mode<synchronous>, transform_indices = @transform_7, window_bounds = array<i64: 1, 768>}, {pipeline_mode = #tpu.pipeline_mode<synchronous>, transform_indices = @transform_8, window_bounds = array<i64: 1, 768>}, {transform_indices = @transform_9, window_bounds = array<i64: 8, 768>}]} {
    %c0 = arith.constant 0 : index
    %c0_0 = arith.constant 0 : index
    %0 = vector.load %arg1[%c0, %c0_0] : memref<8x768xbf16, #tpu.memory_space<vmem>>, vector<8x768xbf16>
    %1 = arith.extf %0 : vector<8x768xbf16> to vector<8x768xf32>
    %c0_1 = arith.constant 0 : index
    %c0_2 = arith.constant 0 : index
    %2 = vector.load %arg6[%c0_1, %c0_2] : memref<1x768xf32, #tpu.memory_space<vmem>>, vector<1x768xf32>
    %c0_3 = arith.constant 0 : index
    %c0_4 = arith.constant 0 : index
    %3 = vector.load %arg7[%c0_3, %c0_4] : memref<1x768xf32, #tpu.memory_space<vmem>>, vector<1x768xf32>
    %cst = arith.constant dense<0.000000e+00> : vector<8xf32>
    %4 = vector.multi_reduction <add>, %1, %cst [1] : vector<8x768xf32> to vector<8xf32>
    %5 = vector.shape_cast %4 : vector<8xf32> to vector<8x1xf32>
    %cst_5 = arith.constant 0.00130208337 : f32
    %6 = vector.broadcast %cst_5 : f32 to vector<8x1xf32>
    %7 = arith.mulf %5, %6 : vector<8x1xf32>
    %8 = arith.mulf %1, %1 : vector<8x768xf32>
    %cst_6 = arith.constant dense<0.000000e+00> : vector<8xf32>
    %9 = vector.multi_reduction <add>, %8, %cst_6 [1] : vector<8x768xf32> to vector<8xf32>
    %10 = vector.shape_cast %9 : vector<8xf32> to vector<8x1xf32>
    %cst_7 = arith.constant 0.00130208337 : f32
    %11 = vector.broadcast %cst_7 : f32 to vector<8x1xf32>
    %12 = arith.mulf %10, %11 : vector<8x1xf32>
    %13 = arith.mulf %7, %7 : vector<8x1xf32>
    %14 = arith.subf %12, %13 : vector<8x1xf32>
    %cst_8 = arith.constant 9.99999974E-6 : f32
    %15 = vector.broadcast %cst_8 : f32 to vector<8x1xf32>
    %16 = arith.addf %14, %15 : vector<8x1xf32>
    %17 = math.rsqrt %16 : vector<8x1xf32>
    %18 = vector.broadcast %7 : vector<8x1xf32> to vector<8x768xf32>
    %19 = arith.subf %1, %18 : vector<8x768xf32>
    %20 = vector.broadcast %17 : vector<8x1xf32> to vector<8x768xf32>
    %21 = arith.mulf %19, %20 : vector<8x768xf32>
    %22 = vector.broadcast %2 : vector<1x768xf32> to vector<8x768xf32>
    %23 = arith.mulf %21, %22 : vector<8x768xf32>
    %24 = vector.broadcast %3 : vector<1x768xf32> to vector<8x768xf32>
    %25 = arith.addf %23, %24 : vector<8x768xf32>
    %26 = arith.truncf %25 : vector<8x768xf32> to vector<8x768xbf16>
    %c0_9 = arith.constant 0 : index
    %c0_10 = arith.constant 0 : index
    %27 = vector.load %arg2[%c0_9, %c0_10] : memref<768x1024xbf16, #tpu.memory_space<vmem>>, vector<768x1024xbf16>
    %cst_11 = arith.constant dense<0.000000e+00> : vector<8x1024xf32>
    %28 = tpu.matmul %26, %27, %cst_11 {dimension_numbers = #tpu.dot_dimension_numbers<[1], [0], [0], [1], [0, 0, 1, 1], [], []>} : vector<8x768xbf16>, vector<768x1024xbf16>, vector<8x1024xf32> -> vector<8x1024xf32>
    %c0_12 = arith.constant 0 : index
    %c0_13 = arith.constant 0 : index
    %29 = vector.load %arg3[%c0_12, %c0_13] : memref<1x1024xf32, #tpu.memory_space<vmem>>, vector<1x1024xf32>
    %30 = vector.broadcast %29 : vector<1x1024xf32> to vector<8x1024xf32>
    %31 = arith.addf %28, %30 : vector<8x1024xf32>
    %cst_14 = arith.constant 0.000000e+00 : f32
    %32 = vector.broadcast %cst_14 : f32 to vector<8x1024xf32>
    %33 = arith.maximumf %31, %32 : vector<8x1024xf32>
    %34 = arith.truncf %33 : vector<8x1024xf32> to vector<8x1024xbf16>
    %c0_15 = arith.constant 0 : index
    %c0_16 = arith.constant 0 : index
    %35 = vector.load %arg4[%c0_15, %c0_16] : memref<1024x768xbf16, #tpu.memory_space<vmem>>, vector<1024x768xbf16>
    %cst_17 = arith.constant dense<0.000000e+00> : vector<8x768xf32>
    %36 = tpu.matmul %34, %35, %cst_17 {dimension_numbers = #tpu.dot_dimension_numbers<[1], [0], [0], [1], [0, 0, 1, 1], [], []>} : vector<8x1024xbf16>, vector<1024x768xbf16>, vector<8x768xf32> -> vector<8x768xf32>
    %c0_18 = arith.constant 0 : index
    %c0_19 = arith.constant 0 : index
    %37 = vector.load %arg5[%c0_18, %c0_19] : memref<1x768xf32, #tpu.memory_space<vmem>>, vector<1x768xf32>
    %38 = vector.broadcast %37 : vector<1x768xf32> to vector<8x768xf32>
    %39 = arith.addf %36, %38 : vector<8x768xf32>
    %40 = arith.addf %25, %39 : vector<8x768xf32>
    %c0_20 = arith.constant 0 : index
    %c0_21 = arith.constant 0 : index
    %41 = vector.load %arg8[%c0_20, %c0_21] : memref<1x768xf32, #tpu.memory_space<vmem>>, vector<1x768xf32>
    %c0_22 = arith.constant 0 : index
    %c0_23 = arith.constant 0 : index
    %42 = vector.load %arg9[%c0_22, %c0_23] : memref<1x768xf32, #tpu.memory_space<vmem>>, vector<1x768xf32>
    %cst_24 = arith.constant dense<0.000000e+00> : vector<8xf32>
    %43 = vector.multi_reduction <add>, %40, %cst_24 [1] : vector<8x768xf32> to vector<8xf32>
    %44 = vector.shape_cast %43 : vector<8xf32> to vector<8x1xf32>
    %cst_25 = arith.constant 0.00130208337 : f32
    %45 = vector.broadcast %cst_25 : f32 to vector<8x1xf32>
    %46 = arith.mulf %44, %45 : vector<8x1xf32>
    %47 = arith.mulf %40, %40 : vector<8x768xf32>
    %cst_26 = arith.constant dense<0.000000e+00> : vector<8xf32>
    %48 = vector.multi_reduction <add>, %47, %cst_26 [1] : vector<8x768xf32> to vector<8xf32>
    %49 = vector.shape_cast %48 : vector<8xf32> to vector<8x1xf32>
    %cst_27 = arith.constant 0.00130208337 : f32
    %50 = vector.broadcast %cst_27 : f32 to vector<8x1xf32>
    %51 = arith.mulf %49, %50 : vector<8x1xf32>
    %52 = arith.mulf %46, %46 : vector<8x1xf32>
    %53 = arith.subf %51, %52 : vector<8x1xf32>
    %cst_28 = arith.constant 9.99999974E-6 : f32
    %54 = vector.broadcast %cst_28 : f32 to vector<8x1xf32>
    %55 = arith.addf %53, %54 : vector<8x1xf32>
    %56 = math.rsqrt %55 : vector<8x1xf32>
    %57 = vector.broadcast %46 : vector<8x1xf32> to vector<8x768xf32>
    %58 = arith.subf %40, %57 : vector<8x768xf32>
    %59 = vector.broadcast %56 : vector<8x1xf32> to vector<8x768xf32>
    %60 = arith.mulf %58, %59 : vector<8x768xf32>
    %61 = vector.broadcast %41 : vector<1x768xf32> to vector<8x768xf32>
    %62 = arith.mulf %60, %61 : vector<8x768xf32>
    %63 = vector.broadcast %42 : vector<1x768xf32> to vector<8x768xf32>
    %64 = arith.addf %62, %63 : vector<8x768xf32>
    %65 = arith.truncf %64 : vector<8x768xf32> to vector<8x768xbf16>
    %c0_29 = arith.constant 0 : index
    %c0_30 = arith.constant 0 : index
    %66 = vector.load %arg10[%c0_29, %c0_30] : memref<8x768xbf16, #tpu.memory_space<vmem>>, vector<8x768xbf16>
    tpu.vector_store %arg10[%c0_29, %c0_30], %65 {strides = array<i32>} : memref<8x768xbf16, #tpu.memory_space<vmem>>, vector<8x768xbf16>,
    return
  }
  func.func @transform_0(%arg0: i32) -> (i32, i32) {
    %c0_i32 = arith.constant 0 : i32
    %c0_i32_0 = arith.constant 0 : i32
    return %arg0, %c0_i32 : i32, i32
  }
  func.func @transform_1(%arg0: i32) -> (i32, i32) {
    %c0_i32 = arith.constant 0 : i32
    %c0_i32_0 = arith.constant 0 : i32
    %c0_i32_1 = arith.constant 0 : i32
    return %c0_i32, %c0_i32_0 : i32, i32
  }
  func.func @transform_2(%arg0: i32) -> (i32, i32) {
    %c0_i32 = arith.constant 0 : i32
    %c0_i32_0 = arith.constant 0 : i32
    %c0_i32_1 = arith.constant 0 : i32
    return %c0_i32, %c0_i32_0 : i32, i32
  }
  func.func @transform_3(%arg0: i32) -> (i32, i32) {
    %c0_i32 = arith.constant 0 : i32
    %c0_i32_0 = arith.constant 0 : i32
    %c0_i32_1 = arith.constant 0 : i32
    return %c0_i32, %c0_i32_0 : i32, i32
  }
  func.func @transform_4(%arg0: i32) -> (i32, i32) {
    %c0_i32 = arith.constant 0 : i32
    %c0_i32_0 = arith.constant 0 : i32
    %c0_i32_1 = arith.constant 0 : i32
    return %c0_i32, %c0_i32_0 : i32, i32
  }
  func.func @transform_5(%arg0: i32) -> (i32, i32) {
    %c0_i32 = arith.constant 0 : i32
    %c0_i32_0 = arith.constant 0 : i32
    %c0_i32_1 = arith.constant 0 : i32
    return %c0_i32, %c0_i32_0 : i32, i32
  }
  func.func @transform_6(%arg0: i32) -> (i32, i32) {
    %c0_i32 = arith.constant 0 : i32
    %c0_i32_0 = arith.constant 0 : i32
    %c0_i32_1 = arith.constant 0 : i32
    return %c0_i32, %c0_i32_0 : i32, i32
  }
  func.func @transform_7(%arg0: i32) -> (i32, i32) {
    %c0_i32 = arith.constant 0 : i32
    %c0_i32_0 = arith.constant 0 : i32
    %c0_i32_1 = arith.constant 0 : i32
    return %c0_i32, %c0_i32_0 : i32, i32
  }
  func.func @transform_8(%arg0: i32) -> (i32, i32) {
    %c0_i32 = arith.constant 0 : i32
    %c0_i32_0 = arith.constant 0 : i32
    %c0_i32_1 = arith.constant 0 : i32
    return %c0_i32, %c0_i32_0 : i32, i32
  }
  func.func @transform_9(%arg0: i32) -> (i32, i32) {
    %c0_i32 = arith.constant 0 : i32
    %c0_i32_0 = arith.constant 0 : i32
    return %arg0, %c0_i32 : i32, i32
  }
}

</mosaic_0001>

<bundles_post_ra>
// kernel: tpu_custom_call.1
= control target key start
LH: loop header
LB: loop body
LE: loop exit
PB: predicated region body
PF: predicated region fallthrough
CT: control target
= control target key end

     0   :  { %s9157_s0 = inlined_call_operand.hbm [shape: bf16[16,768], index: 0, kind: input, shape index: {}]   ;;  %s9158_s1 = inlined_call_operand.hbm [shape: bf16[768,1024], index: 1, kind: input, shape index: {}]   ;;  %s9159_s2 = inlined_call_operand.hbm [shape: f32[1,1024], index: 2, kind: input, shape index: {}]   ;;  %s9160_s3 = inlined_call_operand.hbm [shape: bf16[1024,768], index: 3, kind: input, shape index: {}]   ;;  %s9161_s4 = inlined_call_operand.hbm [shape: f32[1,768], index: 4, kind: input, shape index: {}]   ;;  %s9162_s5 = inlined_call_operand.hbm [shape: f32[1,768], index: 5, kind: input, shape index: {}]   ;;  %s9163_s6 = inlined_call_operand.hbm [shape: f32[1,768], index: 6, kind: input, shape index: {}]   ;;  %s9164_s7 = inlined_call_operand.hbm [shape: f32[1,768], index: 7, kind: input, shape index: {}]   ;;  %s9165_s8 = inlined_call_operand.hbm [shape: f32[1,768], index: 8, kind: input, shape index: {}]   ;;  %s9166_s9 = inlined_call_operand.hbm [shape: bf16[16,768], index: 9, kind: output, shape index: {}]  }
   0x1   :  { %9171 = sst [smem:[#allocation24_spill]] %s9158_s1 }
   0x2   :  { %9172 = sst [smem:[#allocation25_spill]] %s9159_s2 }
   0x3   :  { %9173 = sst [smem:[#allocation26_spill]] %s9166_s9 }
   0x4   :  { %14 = vsyncpa [#allocation3], 0 }
   0x5   :  { %16 = vsyncpa [#allocation3 + $0x1], 0 }
   0x6   :  { %17 = vsyncpa [#allocation6], 0 }
   0x7   :  { %18 = vsyncpa [#allocation9], 0 }
   0x8   :  { %19 = vsyncpa [#allocation12], 0 }
   0x9   :  { %20 = vsyncpa [#allocation15], 0 }
   0xa   :  { %21 = vsyncpa [#allocation4], 0 }
   0xb   :  { %23 = vsyncpa [#allocation4 + $0x1], 0  ;;  %s8527_s30 = smov 0   ;;  %s8529_s10 = smov 0  }
   0xc   :  { %s8531_s11 = smov 0   ;;  %s8533_s12 = smov 0  }
   0xd LB: > { %s8463_s13 = smov [#allocation5]   ;;  %s8548_s15 = sadd.s32 4294967295, %s8461_s12   ;;  %s8461_s12 = sphi %s8533_s12, %s9200_s12   ;;  %s8457_s11 = sphi %s8531_s11, %s9199_s11   ;;  %s8453_s10 = sphi %s8529_s10, %s9198_s10   ;;  %s8449_s30 = sphi %s8527_s30, %s9197_s30  }
   0xe   : > { %s266_s14 = sshll.u32 %s8463_s13, 4  ;;  %p6573_p0 = scmp.ge.s32.totalorder %s8461_s12, 1  ;;  %s8553_s14 = int_to_ptr.vmem [resolvable:$true] %s266_s14 }
   0xf   : > { %p9168_p1 = scmp.eq.s32.totalorder %s8548_s15, 0  ;;  %p254_p2 = scmp.lt.s32.totalorder %s8461_s12, 3 }
  0x10   : > { %s8464_s17 = smov [#allocation8]   ;;  %s8465_s20 = smov [#allocation11]  }
  0x11   : > { %p8555_p3 = pnand %p6573_p0, %p254_p2  ;;  %s290_s18 = sshll.u32 %s8464_s17, 4  ;;  %s8568_s18 = int_to_ptr.vmem [resolvable:$true] %s290_s18 }
  0x12   : > { %s8570_s21 = sshll.u32 %s8465_s20, 4  ;;  %s9176_s1 = sld [smem:[#allocation24_spill]]  ;;  %s316_s21 = int_to_ptr.vmem [resolvable:$true] %s8570_s21 }
  0x13   : > { %s9174_s16 = scalar_select %p8555_p3, 1, 0 }
  0x14   : > { %p7450_p5 = pneg %p8555_p3 }
  0x16   : > { %p8564_p6 = pnand %p7450_p5, %p9168_p1 }
  0x18   : > { %s8125_s24 = scalar_lea.hbm %s9176_s1, 49152  ;;  %p8580_p8 = pneg %p8564_p6 }
  0x19   : > { %p8126_p7 = scmp.ne.s32.totalorder %s9176_s1, %s8125_s24  ;;  %p8132_p11 = scmp.lt.u32.totalorder %s8125_s24, %s9176_s1 }
  0x1b   : > { %p8128_p9 = pnand %p8580_p8, %p8126_p7 }
  0x1d   : > { %p8129_p10 = pneg %p8128_p9 }
  0x1f   : > { %p8134_p12 = pnand %p8132_p11, %p8129_p10 }
  0x21   : > { %8137 = shalt.err (!%p8134_p12)
}
  0x22   : > { %s8138_s13 = scalar_lea.vmem %s8553_s14, 49152  ;;  %p8146_p5 = scmp.lt.s32.totalorder %s8553_s14, %s8553_s14 }
  0x23   : > { %p8139_p13 = scmp.ne.s32.totalorder %s8553_s14, %s8138_s13  ;;  %p8147_p4 = scmp.lt.s32.totalorder %s8138_s13, %s8138_s13 }
  0x25   : > { %p8141_p0 = pnand %p8139_p13, %p8580_p8  ;;  %p8148_p7 = por %p8147_p4, %p8146_p5 }
  0x27   : > { %p8142_p2 = pneg %p8141_p0 }
  0x29   : > { %p8149_p9 = pnand %p8148_p7, %p8142_p2 }
  0x2b   : > { %8152 = shalt.err (!%p8149_p9)
}
  0x2c   : > { %s8466_s17 = smov 512   ;;  %s8467_s20 = smov 32  }
  0x2d   : > { %7453 = dma.hbm_to_vmem [thread:$0]  (!%p8564_p6), %s9176_s1, 49152, %s8553_s14, [#allocation6], %s8466_s17, %s8466_s17, %s8467_s20  }
  0x2e   : > { %s8153_s26 = scalar_lea.hbm %s9160_s3, 49152 }
  0x2f   : > { %p8154_p4 = scmp.ne.s32.totalorder %s9160_s3, %s8153_s26  ;;  %p8160_p12 = scmp.lt.u32.totalorder %s8153_s26, %s9160_s3 }
  0x31   : > { %p8156_p10 = pnand %p8154_p4, %p8580_p8 }
  0x33   : > { %p8157_p11 = pneg %p8156_p10 }
  0x35   : > { %p8162_p13 = pnand %p8160_p12, %p8157_p11 }
  0x37   : > { %8165 = shalt.err (!%p8162_p13)
}
  0x38   : > { %s8166_s14 = scalar_lea.vmem %s8568_s18, 49152  ;;  %p8174_p7 = scmp.lt.s32.totalorder %s8568_s18, %s8568_s18 }
  0x39   : > { %p8167_p0 = scmp.ne.s32.totalorder %s8568_s18, %s8166_s14  ;;  %p8175_p9 = scmp.lt.s32.totalorder %s8166_s14, %s8166_s14 }
  0x3b   : > { %p8169_p2 = pnand %p8167_p0, %p8580_p8  ;;  %p8176_p4 = por %p8175_p9, %p8174_p7 }
  0x3d   : > { %p8170_p5 = pneg %p8169_p2 }
  0x3f   : > { %p8177_p10 = pnand %p8176_p4, %p8170_p5 }
  0x41   : > { %8180 = shalt.err (!%p8177_p10)
}
  0x42   : > { %s8468_s17 = smov 384   ;;  %s8469_s9 = smov 24  }
  0x43   : > { %7459 = dma.hbm_to_vmem [thread:$0]  (!%p8564_p6), %s9160_s3, 49152, %s8568_s18, [#allocation9], %s8468_s17, %s8468_s17, %s8469_s9  }
  0x44   : > { %s8181_s25 = scalar_lea.hbm %s9162_s5, 96 }
  0x45   : > { %p8182_p11 = scmp.ne.s32.totalorder %s9162_s5, %s8181_s25  ;;  %p8188_p0 = scmp.lt.u32.totalorder %s8181_s25, %s9162_s5 }
  0x47   : > { %p8184_p12 = pnand %p8182_p11, %p8580_p8 }
  0x49   : > { %p8185_p13 = pneg %p8184_p12 }
  0x4b   : > { %p8190_p2 = pnand %p8188_p0, %p8185_p13 }
  0x4d   : > { %8193 = shalt.err (!%p8190_p2)
}
  0x4e   : > { %s8194_s14 = scalar_lea.vmem %s316_s21, 96  ;;  %p8202_p4 = scmp.lt.s32.totalorder %s316_s21, %s316_s21 }
  0x4f   : > { %p8195_p5 = scmp.ne.s32.totalorder %s316_s21, %s8194_s14  ;;  %p8203_p10 = scmp.lt.s32.totalorder %s8194_s14, %s8194_s14 }
  0x51   : > { %p8197_p7 = pnand %p8195_p5, %p8580_p8  ;;  %p8204_p1 = por %p8203_p10, %p8202_p4 }
  0x53   : > { %p8198_p9 = pneg %p8197_p7 }
  0x55   : > { %p8205_p3 = pnand %p8204_p1, %p8198_p9 }
  0x57   : > { %8208 = shalt.err (!%p8205_p3)
}
  0x58   : > { %7465 = dma.hbm_to_vmem [thread:$0]  (!%p8564_p6), %s9162_s5, 96, %s316_s21, [#allocation12]  }
  0x59   : > { %s8470_s9 = smov [#allocation14]   ;;  %s8471_s22 = smov [#allocation7]  }
  0x5a   : > { %s337_s20 = sshll.u32 %s8470_s9, 4  ;;  %s280_s23 = sshll.u32 %s8471_s22, 4  ;;  %s338_s20 = int_to_ptr.vmem [resolvable:$true] %s337_s20  ;;  %s281_s23 = int_to_ptr.vmem [resolvable:$true] %s280_s23 }
  0x5b   : > { %s8209_s26 = scalar_lea.hbm %s9164_s7, 96 }
  0x5c   : > { %p8210_p1 = scmp.ne.s32.totalorder %s9164_s7, %s8209_s26  ;;  %p8216_p12 = scmp.lt.u32.totalorder %s8209_s26, %s9164_s7 }
  0x5e   : > { %p8212_p3 = pnand %p8210_p1, %p8580_p8 }
  0x60   : > { %p8213_p11 = pneg %p8212_p3 }
  0x62   : > { %p8218_p13 = pnand %p8216_p12, %p8213_p11 }
  0x64   : > { %8221 = shalt.err (!%p8218_p13)
}
  0x65   : > { %s8222_s21 = scalar_lea.vmem %s338_s20, 96  ;;  %p8230_p7 = scmp.lt.s32.totalorder %s338_s20, %s338_s20 }
  0x66   : > { %p8223_p0 = scmp.ne.s32.totalorder %s338_s20, %s8222_s21  ;;  %p8231_p9 = scmp.lt.s32.totalorder %s8222_s21, %s8222_s21 }
  0x68   : > { %p8225_p2 = pnand %p8223_p0, %p8580_p8  ;;  %p8232_p4 = por %p8231_p9, %p8230_p7 }
  0x6a   : > { %p8226_p5 = pneg %p8225_p2 }
  0x6c   : > { %p8233_p10 = pnand %p8232_p4, %p8226_p5 }
  0x6e   : > { %8236 = shalt.err (!%p8233_p10)
}
  0x6f   : > { %7471 = dma.hbm_to_vmem [thread:$0]  (!%p8564_p6), %s9164_s7, 96, %s338_s20, [#allocation15]  }
  0x70   : > { %s9178_s2 = sld [smem:[#allocation25_spill]] }
  0x76   : > { %s8237_s24 = scalar_lea.hbm %s9178_s2, 128 }
  0x77   : > { %p8238_p1 = scmp.ne.s32.totalorder %s9178_s2, %s8237_s24  ;;  %p8244_p12 = scmp.lt.u32.totalorder %s8237_s24, %s9178_s2 }
  0x79   : > { %p8240_p3 = pnand %p8238_p1, %p8580_p8 }
  0x7b   : > { %p8241_p11 = pneg %p8240_p3 }
  0x7d   : > { %p8246_p13 = pnand %p8244_p12, %p8241_p11 }
  0x7f   : > { %8249 = shalt.err (!%p8246_p13)
}
  0x80   : > { %s8250_s13 = scalar_lea.vmem %s281_s23, 128  ;;  %p8258_p7 = scmp.lt.s32.totalorder %s281_s23, %s281_s23 }
  0x81   : > { %p8251_p0 = scmp.ne.s32.totalorder %s281_s23, %s8250_s13  ;;  %p8259_p9 = scmp.lt.s32.totalorder %s8250_s13, %s8250_s13 }
  0x83   : > { %p8253_p2 = pnand %p8251_p0, %p8580_p8  ;;  %p8260_p4 = por %p8259_p9, %p8258_p7 }
  0x85   : > { %p8254_p5 = pneg %p8253_p2 }
  0x87   : > { %p8261_p10 = pnand %p8260_p4, %p8254_p5 }
  0x89   : > { %8264 = shalt.err (!%p8261_p10)
}
  0x8a   : > { %7456 = dma.hbm_to_vmem [thread:$0]  (!%p8564_p6), %s9178_s2, 128, %s281_s23, [#allocation6]  }
  0x8b   : > { %s8472_s21 = smov [#allocation10]   ;;  %s8473_s17 = smov [#allocation13]  }
  0x8c   : > { %s304_s18 = sshll.u32 %s8472_s21, 4  ;;  %s326_s9 = sshll.u32 %s8473_s17, 4  ;;  %s305_s18 = int_to_ptr.vmem [resolvable:$true] %s304_s18  ;;  %s327_s9 = int_to_ptr.vmem [resolvable:$true] %s326_s9 }
  0x8d   : > { %s8265_s25 = scalar_lea.hbm %s9161_s4, 96 }
  0x8e   : > { %p8266_p1 = scmp.ne.s32.totalorder %s9161_s4, %s8265_s25  ;;  %p8272_p12 = scmp.lt.u32.totalorder %s8265_s25, %s9161_s4 }
  0x90   : > { %p8268_p3 = pnand %p8266_p1, %p8580_p8 }
  0x92   : > { %p8269_p11 = pneg %p8268_p3 }
  0x94   : > { %p8274_p13 = pnand %p8272_p12, %p8269_p11 }
  0x96   : > { %8277 = shalt.err (!%p8274_p13)
}
  0x97   : > { %s8278_s23 = scalar_lea.vmem %s305_s18, 96  ;;  %p8286_p7 = scmp.lt.s32.totalorder %s305_s18, %s305_s18 }
  0x98   : > { %p8279_p0 = scmp.ne.s32.totalorder %s305_s18, %s8278_s23  ;;  %p8287_p9 = scmp.lt.s32.totalorder %s8278_s23, %s8278_s23 }
  0x9a   : > { %p8281_p2 = pnand %p8279_p0, %p8580_p8  ;;  %p8288_p4 = por %p8287_p9, %p8286_p7 }
  0x9c   : > { %p8282_p5 = pneg %p8281_p2 }
  0x9e   : > { %p8289_p10 = pnand %p8288_p4, %p8282_p5 }
  0xa0   : > { %8292 = shalt.err (!%p8289_p10)
}
  0xa1   : > { %7462 = dma.hbm_to_vmem [thread:$0]  (!%p8564_p6), %s9161_s4, 96, %s305_s18, [#allocation9]  }
  0xa2   : > { %s8293_s22 = scalar_lea.hbm %s9163_s6, 96 }
  0xa3   : > { %p8294_p1 = scmp.ne.s32.totalorder %s9163_s6, %s8293_s22  ;;  %p8300_p12 = scmp.lt.u32.totalorder %s8293_s22, %s9163_s6 }
  0xa5   : > { %p8296_p3 = pnand %p8294_p1, %p8580_p8 }
  0xa7   : > { %p8297_p11 = pneg %p8296_p3 }
  0xa9   : > { %p8302_p13 = pnand %p8300_p12, %p8297_p11 }
  0xab   : > { %8305 = shalt.err (!%p8302_p13)
}
  0xac   : > { %s8306_s29 = scalar_lea.vmem %s327_s9, 96  ;;  %p8314_p7 = scmp.lt.s32.totalorder %s327_s9, %s327_s9 }
  0xad   : > { %p8307_p0 = scmp.ne.s32.totalorder %s327_s9, %s8306_s29  ;;  %p8315_p9 = scmp.lt.s32.totalorder %s8306_s29, %s8306_s29 }
  0xaf   : > { %p8309_p2 = pnand %p8307_p0, %p8580_p8  ;;  %p8316_p4 = por %p8315_p9, %p8314_p7 }
  0xb1   : > { %p8310_p5 = pneg %p8309_p2 }
  0xb3   : > { %p8317_p10 = pnand %p8316_p4, %p8310_p5 }
  0xb5   : > { %8320 = shalt.err (!%p8317_p10)
}
  0xb6   : > { %7468 = dma.hbm_to_vmem [thread:$0]  (!%p8564_p6), %s9163_s6, 96, %s327_s9, [#allocation12]  }
  0xb7   : > { %s8474_s23 = smov [#allocation16]   ;;  %s8321_s17 = scalar_lea.hbm %s9165_s8, 96 }
  0xb8   : > { %s348_s20 = sshll.u32 %s8474_s23, 4  ;;  %p8322_p1 = scmp.ne.s32.totalorder %s9165_s8, %s8321_s17  ;;  %s349_s20 = int_to_ptr.vmem [resolvable:$true] %s348_s20 }
  0xb9   : > { %p8328_p12 = scmp.lt.u32.totalorder %s8321_s17, %s9165_s8 }
  0xba   : > { %p8324_p3 = pnand %p8322_p1, %p8580_p8 }
  0xbc   : > { %p8325_p11 = pneg %p8324_p3 }
  0xbe   : > { %p8330_p13 = pnand %p8328_p12, %p8325_p11 }
  0xc0   : > { %8333 = shalt.err (!%p8330_p13)
}
  0xc1   : > { %s8334_s9 = scalar_lea.vmem %s349_s20, 96  ;;  %p8342_p7 = scmp.lt.s32.totalorder %s349_s20, %s349_s20 }
  0xc2   : > { %p8335_p0 = scmp.ne.s32.totalorder %s349_s20, %s8334_s9  ;;  %p8343_p9 = scmp.lt.s32.totalorder %s8334_s9, %s8334_s9 }
  0xc4   : > { %p8337_p2 = pnand %p8335_p0, %p8580_p8  ;;  %p8344_p4 = por %p8343_p9, %p8342_p7 }
  0xc6   : > { %p8338_p5 = pneg %p8337_p2 }
  0xc8   : > { %p8345_p10 = pnand %p8344_p4, %p8338_p5 }
  0xca   : > { %8348 = shalt.err (!%p8345_p10)
}
  0xcb   : > { %7474 = dma.hbm_to_vmem [thread:$0]  (!%p8564_p6), %s9165_s8, 96, %s349_s20, [#allocation15]  }
  0xcc   : > { %s6572_s27 = sadd.s32 4294967294, %s8461_s12   ;;  %s8735_s19 = sadd.s32 1, %s8461_s12  }
  0xcd   : > { %s33_s18 = ssub.s32 %s8461_s12, %s8735_s19  ;;  %s36_s13 = sadd.s32 1, %s8457_s11 }
  0xce   : > { %p34_p8 = scmp.eq.s32.totalorder %s33_s18, 0  ;;  %p43_p1 = scmp.ne.s32.totalorder %s8457_s11, %s8453_s10 }
  0xcf   : > { %p44_p3 = scmp.eq.s32.totalorder %s8461_s12, 0  ;;  %p49_p11 = scmp.ne.s32.totalorder %s8453_s10, %s8449_s30 }
  0xd0   : > { %s8746_s23 = scalar_select %p34_p8, %s8457_s11, %s36_s13  }
  0xd1   : > { %p45_p12 = por %p44_p3, %p43_p1  ;;  %p9179_p13 = scmp.eq.s32.totalorder %s8548_s15, 0 }
  0xd2   : > { %p241_p6 = scmp.eq.s32.totalorder %s8548_s15, 1  ;;  %p247_p2 = scmp.eq.s32.totalorder %s6572_s27, 1 }
  0xd3   : > { %p8750_p0 = por %p9179_p13, %p49_p11  ;;  %p7491_p5 = scmp.lt.s32.totalorder %s8461_s12, 2 }
  0xd4   : > { %s359_s20 = sand.u32 1, %s8457_s11   ;;  %p8757_p7 = por %p241_p6, %p43_p1 }
  0xd5   : > { %p8761_p9 = por %p247_p2, %p49_p11  ;;  %s7410_s22 = smul.u32 24, %s359_s20 }
  0xd6   : > { %s9181_s21 = scalar_select %p8757_p7, 1, 0 }
  0xd7   : > { %s9182_s17 = scalar_select %p8761_p9, 1, 0 }
  0xd8   : > { %s7411_s24 = smul.u32 384, %s8461_s12  ;;  %p8766_p4 = pnand %p7491_p5, %p45_p12 }
  0xd9   : > { %s363_s29 = scalar_lea.vmem [#allocation2], %s7410_s22  ;;  %s360_s18 = scalar_lea.sflag [#allocation3], %s359_s20 }
  0xda   : > { %s8773_s28 = scalar_lea.hbm %s9157_s0, %s7411_s24  ;;  %s371_s27 = sshll.u32 %s363_s29, 4  ;;  %s8775_s27 = int_to_ptr.vmem [resolvable:$true] %s371_s27 }
  0xdb   : > { %s8349_s13 = scalar_lea.hbm %s8773_s28, 384  ;;  %p8351_p8 = pneg %p8766_p4 }
  0xdc   : > { %p8350_p10 = scmp.ne.s32.totalorder %s8773_s28, %s8349_s13  ;;  %s8354_s9 = scalar_lea.hbm %s9157_s0, 768 }
  0xdd   : > { %p8355_p11 = scmp.lt.u32.totalorder %s8773_s28, %s9157_s0  ;;  %p8356_p12 = scmp.lt.u32.totalorder %s8354_s9, %s8349_s13 }
  0xde   : > { %p8352_p1 = pnand %p8351_p8, %p8350_p10  ;;  %p8358_p6 = scmp.lt.u32.totalorder %s8349_s13, %s8773_s28 }
  0xdf   : > { %p8357_p13 = por %p8356_p12, %p8355_p11 }
  0xe0   : > { %p8353_p3 = pneg %p8352_p1 }
  0xe1   : > { %p8359_p2 = por %p8358_p6, %p8357_p13 }
  0xe3   : > { %p8360_p5 = pnand %p8359_p2, %p8353_p3 }
  0xe5   : > { %8363 = shalt.err (!%p8360_p5)
}
  0xe6   : > { %s8364_s20 = scalar_lea.vmem %s8775_s27, 384  ;;  %s8475_s22 = smov [#allocation2]  }
  0xe7   : > { %p8365_p10 = scmp.ne.s32.totalorder %s8775_s27, %s8364_s20  ;;  %s8369_s29 = sshll.u32 %s8475_s22, 4  ;;  %s8370_s29 = int_to_ptr.vmem [resolvable:$false] %s8369_s29 }
  0xe8   : > { %s8371_s1 = scalar_lea.vmem %s8370_s29, 768  ;;  %p8372_p7 = scmp.lt.s32.totalorder %s8775_s27, %s8370_s29 }
  0xe9   : > { %p8367_p1 = pnand %p8365_p10, %p8351_p8  ;;  %p8373_p11 = scmp.lt.s32.totalorder %s8371_s1, %s8364_s20 }
  0xeb   : > { %p8368_p9 = pneg %p8367_p1  ;;  %p8374_p12 = por %p8373_p11, %p8372_p7 }
  0xed   : > { %p8375_p13 = pnand %p8374_p12, %p8368_p9 }
  0xef   : > { %8378 = shalt.err (!%p8375_p13)
}
  0xf0   : > { %7478 = dma.hbm_to_vmem [thread:$0]  (!%p8766_p4), %s8773_s28, 384, %s8775_s27, %s360_s18  }
  0xf1   : > { %p9184_p3 = scmp.ne.s32.totalorder %s9174_s16, 0 }
  0xf2   : > { %s8805_s2 = sand.u32 (!%p9184_p3), 1, %s8453_s10  }
  0xf3   : > { %380 = sbr.rel (%p9184_p3) target bundleno = 1653 (0x675), region = 56  ;;  %s383_s26 = scalar_lea.sflag (!%p9184_p3), [#allocation3], %s8805_s2 }
  0xf4   : > { %s7412_s13 = smul.u32 (!%p9184_p3), 24, %s8805_s2 }
  0xf6   : > { %s386_s24 = scalar_lea.vmem (!%p9184_p3), [#allocation2], %s7412_s13 }
  0xfa   : > { %8424 = dma.done.wait (%p8750_p0), %s383_s26, 384  }
  0xfb   : > { %8426 = vsyncadd (%p8750_p0), %s383_s26, 4294966912  ;;  %p9185_p7 = scmp.eq.s32.totalorder %s8548_s15, 0 }
  0xfd   : > { %8428 = dma.done.wait (%p9185_p7), [#allocation6], 49280   ;;  %p9186_p9 = pmov %p9185_p7 }
  0xfe   : > { %p9187_p4 = pmov %p9185_p7 }
  0xff   : > { %8430 = vsyncadd (%p9186_p9), [#allocation6], 4294918016 }
 0x100   : > { %8432 = dma.done.wait (%p9187_p4), [#allocation9], 49248   ;;  %p9188_p8 = pmov %p9187_p4 }
 0x101   : > { %p9189_p6 = pmov %p9187_p4 }
 0x102   : > { %8434 = vsyncadd (%p9188_p8), [#allocation9], 4294918048 }
 0x103   : > { %8436 = dma.done.wait (%p9189_p6), [#allocation12], 192   ;;  %p9190_p2 = pmov %p9187_p4 }
 0x105   : > { %8438 = vsyncadd (%p9190_p2), [#allocation12], 4294967104  ;;  %p9191_p0 = pmov %p9190_p2 }
 0x107   : > { %8440 = dma.done.wait (%p9191_p0), [#allocation15], 192   ;;  %p9192_p5 = pmov %p9191_p0 }
 0x108   : > { %v453_v0 = vld [vmem:[%s386_s24] sm:$0xff]  ;;  %v454_v1 = vld [vmem:[%s386_s24 + $0x8] sm:$0xff]  ;;  %v455_v2 = vld [vmem:[%s386_s24 + $0x10] sm:$0xff]  ;;  %s7413_s16 = smul.u32 384, %s8548_s15  ;;  %s452_s14 = scalar_lea.vmem [#allocation17], %s7412_s13 }
 0x109   : > { %8442 = vsyncadd (%p9192_p5), [#allocation15], 4294967104  ;;  %v8831_v3 = vunpack.c.l.bf16 %v453_v0  ;;  %v8833_v4 = vunpack.c.h.bf16 %v453_v0  ;;  %v8835_v5 = vunpack.c.l.bf16 %v454_v1  ;;  %v582_v6 = vld [vmem:[#allocation5] sm:$0xff]  ;;  %v583_v8 = vld [vmem:[#allocation5 + $0x8] sm:$0xff]  ;;  %v8837_v9 = vunpack.c.h.bf16 %v454_v1  ;;  %s6426_s25 = sshll.u32 %s452_s14, 4  ;;  %s9193_s18 = sld [smem:[#allocation26_spill]]  ;;  %s9115_s25 = int_to_ptr.vmem [resolvable:$true] %s6426_s25 }
 0x10a   : > { %v586_v7 = vld [vmem:[#allocation5 + $0x20] sm:$0xff]  ;;  %v587_v11 = vld [vmem:[#allocation5 + $0x28] sm:$0xff]  ;;  %v8847_v22 = vunpack.c.l.bf16 %v455_v2  ;;  %v8854_v36 = vunpack.c.h.bf16 %v455_v2  ;;  %s6412_s15 = scalar_lea.sflag [#allocation4], %s8805_s2  ;;  %s8379_s20 = scalar_lea.vmem %s9115_s25, 384 }
 0x10b   : > { %v6594_v10 = vcombine.high %v582_v6, %v586_v7  ;;  %v6593_v12 = vcombine.low %v582_v6, %v586_v7  ;;  %v590_v13 = vld [vmem:[#allocation5 + $0x40] sm:$0xff]  ;;  %v464_v15 = vadd.f32 %v8833_v4, %v8831_v3  ;;  %v472_v16 = vmul.f32 %v8831_v3, %v8831_v3  ;;  %v591_v19 = vld [vmem:[#allocation5 + $0x48] sm:$0xff]  ;;  %p8380_p10 = scmp.ne.s32.totalorder %s9115_s25, %s8379_s20  ;;  %p9194_p1 = scmp.ne.s32.totalorder %s9181_s21, 0 }
 0x10c   : > { %v594_v14 = vld [vmem:[#allocation5 + $0x60] sm:$0xff]  ;;  %v473_v17 = vmul.f32 %v8833_v4, %v8833_v4  ;;  %v474_v18 = vmul.f32 %v8835_v5, %v8835_v5  ;;  %v595_v20 = vld [vmem:[#allocation5 + $0x68] sm:$0xff]  ;;  %v475_v23 = vmul.f32 %v8837_v9, %v8837_v9  ;;  %v6596_v24 = vcombine.high %v583_v8, %v587_v11  ;;  %s8476_s22 = smov [#allocation17]  }
 0x10d   : > { %v598_v21 = vld [vmem:[#allocation5 + $0x80] sm:$0xff]  ;;  %2928 = vmatprep.subr.bf16.mxu0 %v6594_v10  ;;  %v465_v26 = vadd.f32 %v464_v15, %v8835_v5  ;;  %v6595_v28 = vcombine.low %v583_v8, %v587_v11  ;;  %v6602_v29 = vcombine.high %v590_v13, %v594_v14  ;;  %v599_v30 = vld [vmem:[#allocation5 + $0x88] sm:$0xff]  ;;  %v476_v32 = vmul.f32 %v8847_v22, %v8847_v22  ;;  %p8381_p11 = pnand %p8380_p10, %p9194_p1  ;;  %s8383_s29 = sshll.u32 %s8476_s22, 4  ;;  %s8384_s29 = int_to_ptr.vmem [resolvable:$false] %s8383_s29 }
 0x10e   : > { %v602_v25 = vld [vmem:[#allocation5 + $0xa0] sm:$0xff]  ;;  %v478_v27 = vadd.f32 %v473_v17, %v472_v16  ;;  %2929 = vmatpush1.bf16.msra.mxu0 %v6593_v12  ;;  %v603_v31 = vld [vmem:[#allocation5 + $0xa8] sm:$0xff]  ;;  %3051 = vmatprep.subr.bf16.mxu1 %v6596_v24  ;;  %v6604_v33 = vcombine.high %v591_v19, %v595_v20  ;;  %v6601_v34 = vcombine.low %v590_v13, %v594_v14  ;;  %s8385_s1 = scalar_lea.vmem %s8384_s29, 768  ;;  %p8386_p13 = scmp.lt.s32.totalorder %s9115_s25, %s8384_s29 }
 0x10f   : > { %v6610_v35 = vcombine.high %v598_v21, %v602_v25  ;;  %v466_v37 = vadd.f32 %v465_v26, %v8837_v9  ;;  %3052 = vmatpush1.bf16.msra.mxu1 %v6595_v28  ;;  %2930 = vmatprep.subr.bf16.mxu0 %v6602_v29  ;;  %v6603_v39 = vcombine.low %v591_v19, %v595_v20  ;;  %v606_v40 = vld [vmem:[#allocation5 + $0xc0] sm:$0xff]  ;;  %v607_v47 = vld [vmem:[#allocation5 + $0xc8] sm:$0xff]  ;;  %s9113_s9 = scalar_lea.hbm %s9193_s18, %s7413_s16  ;;  %p8382_p12 = pneg %p8381_p11 }
 0x110   : > { %v479_v38 = vadd.f32 %v478_v27, %v474_v18  ;;  %v610_v41 = vld [vmem:[#allocation5 + $0xe0] sm:$0xff]  ;;  %3053 = vmatprep.subr.bf16.mxu1 %v6604_v33  ;;  %v6612_v42 = vcombine.high %v599_v30, %v603_v31  ;;  %v477_v44 = vmul.f32 %v8854_v36, %v8854_v36  ;;  %v6609_v46 = vcombine.low %v598_v21, %v602_v25  ;;  %v611_v48 = vld [vmem:[#allocation5 + $0xe8] sm:$0xff]  ;;  %p8387_p3 = scmp.lt.s32.totalorder %s8385_s1, %s8379_s20 }
 0x111   : > { %v467_v43 = vadd.f32 %v466_v37, %v8847_v22  ;;  %v6618_v49 = vcombine.high %v606_v40, %v610_v41  ;;  %v6611_v52 = vcombine.low %v599_v30, %v603_v31  ;;  %v614_v53 = vld [vmem:[#allocation5 + $0x100] sm:$0xff]  ;;  %v6620_v55 = vcombine.high %v607_v47, %v611_v48  ;;  %v615_v56 = vld [vmem:[#allocation5 + $0x108] sm:$0xff] }
 0x112   : > { %v480_v45 = vadd.f32 %v479_v38, %v475_v23  ;;  %2931 = vmatpush1.bf16.msra.mxu0 %v6601_v34  ;;  %v618_v54 = vld [vmem:[#allocation5 + $0x120] sm:$0xff]  ;;  %v619_v57 = vld [vmem:[#allocation5 + $0x128] sm:$0xff]  ;;  %v6617_v59 = vcombine.low %v606_v40, %v610_v41  ;;  %v6619_v63 = vcombine.low %v607_v47, %v611_v48  ;;  %p8388_p7 = por %p8387_p3, %p8386_p13 }
 0x113   : > { %2932 = vmatprep.subr.bf16.mxu0 %v6610_v35  ;;  %v468_v50 = vadd.f32 %v467_v43, %v8854_v36  ;;  %3054 = vmatpush1.bf16.msra.mxu1 %v6603_v39  ;;  %v622_v60 = vld [vmem:[#allocation5 + $0x140] sm:$0xff]  ;;  %v6626_v62 = vcombine.high %v614_v53, %v618_v54  ;;  %v623_v0 = vld [vmem:[#allocation5 + $0x148] sm:$0xff]  ;;  %v6628_v2 = vcombine.high %v615_v56, %v619_v57 }
 0x114   : > { %v481_v51 = vadd.f32 %v480_v45, %v476_v32  ;;  %3055 = vmatprep.subr.bf16.mxu1 %v6612_v42  ;;  %v626_v61 = vld [vmem:[#allocation5 + $0x160] sm:$0xff]  ;;  %v627_v1 = vld [vmem:[#allocation5 + $0x168] sm:$0xff]  ;;  %v6625_v6 = vcombine.low %v614_v53, %v618_v54  ;;  %v6627_v11 = vcombine.low %v615_v56, %v619_v57  ;;  %p8389_p9 = pnand %p8388_p7, %p8382_p12 }
 0x115   : > { %469 = vadd.xlane.f32.xlu0 %v468_v50  ;;  %v630_v7 = vld [vmem:[#allocation5 + $0x180] sm:$0xff]  ;;  %v6634_v10 = vcombine.high %v622_v60, %v626_v61  ;;  %v631_v12 = vld [vmem:[#allocation5 + $0x188] sm:$0xff]  ;;  %v6636_v14 = vcombine.high %v623_v0, %v627_v1  ;;  %v6633_v15 = vcombine.low %v622_v60, %v626_v61  ;;  %v6635_v19 = vcombine.low %v623_v0, %v627_v1 }
 0x116   : > { %v482_v58 = vadd.f32 %v481_v51, %v477_v44  ;;  %2933 = vmatpush1.bf16.msra.mxu0 %v6609_v46  ;;  %v634_v8 = vld [vmem:[#allocation5 + $0x1a0] sm:$0xff]  ;;  %v635_v13 = vld [vmem:[#allocation5 + $0x1a8] sm:$0xff] }
 0x117   : > { %2934 = vmatprep.subr.bf16.mxu0 %v6618_v49  ;;  %3056 = vmatpush1.bf16.msra.mxu1 %v6611_v52  ;;  %v638_v16 = vld [vmem:[#allocation5 + $0x1c0] sm:$0xff]  ;;  %v6642_v18 = vcombine.high %v630_v7, %v634_v8  ;;  %v6644_v20 = vcombine.high %v631_v12, %v635_v13  ;;  %v6641_v21 = vcombine.low %v630_v7, %v634_v8  ;;  %v639_v23 = vld [vmem:[#allocation5 + $0x1c8] sm:$0xff] }
 0x118   : > { %3057 = vmatprep.subr.bf16.mxu1 %v6620_v55  ;;  %v642_v17 = vld [vmem:[#allocation5 + $0x1e0] sm:$0xff]  ;;  %v643_v24 = vld [vmem:[#allocation5 + $0x1e8] sm:$0xff]  ;;  %v6643_v28 = vcombine.low %v631_v12, %v635_v13 }
 0x119   : > { %483 = vadd.xlane.f32.xlu0 %v482_v58  ;;  %v646_v25 = vld [vmem:[#allocation5 + $0x200] sm:$0xff]  ;;  %v6650_v26 = vcombine.high %v638_v16, %v642_v17  ;;  %v6652_v29 = vcombine.high %v639_v23, %v643_v24  ;;  %v6649_v30 = vcombine.low %v638_v16, %v642_v17  ;;  %v647_v31 = vld [vmem:[#allocation5 + $0x208] sm:$0xff]  ;;  %v6651_v37 = vcombine.low %v639_v23, %v643_v24 }
 0x11a   : > { %2935 = vmatpush1.bf16.msra.mxu0 %v6617_v59  ;;  %v650_v27 = vld [vmem:[#allocation5 + $0x220] sm:$0xff]  ;;  %v651_v32 = vld [vmem:[#allocation5 + $0x228] sm:$0xff] }
 0x11b   : > { %2936 = vmatprep.subr.bf16.mxu0 %v6626_v62  ;;  %3058 = vmatpush1.bf16.msra.mxu1 %v6619_v63  ;;  %v654_v33 = vld [vmem:[#allocation5 + $0x240] sm:$0xff]  ;;  %v6658_v34 = vcombine.high %v646_v25, %v650_v27  ;;  %v6660_v38 = vcombine.high %v647_v31, %v651_v32  ;;  %v6657_v39 = vcombine.low %v646_v25, %v650_v27  ;;  %v655_v40 = vld [vmem:[#allocation5 + $0x248] sm:$0xff] }
 0x11c   : > { %3059 = vmatprep.subr.bf16.mxu1 %v6628_v2  ;;  %v658_v35 = vld [vmem:[#allocation5 + $0x260] sm:$0xff]  ;;  %v659_v41 = vld [vmem:[#allocation5 + $0x268] sm:$0xff]  ;;  %v6659_v45 = vcombine.low %v647_v31, %v651_v32 }
 0x11d   : > { %v662_v42 = vld [vmem:[#allocation5 + $0x280] sm:$0xff]  ;;  %v6666_v43 = vcombine.high %v654_v33, %v658_v35  ;;  %v6668_v46 = vcombine.high %v655_v40, %v659_v41  ;;  %v6665_v47 = vcombine.low %v654_v33, %v658_v35  ;;  %v663_v48 = vld [vmem:[#allocation5 + $0x288] sm:$0xff]  ;;  %v6667_v51 = vcombine.low %v655_v40, %v659_v41 }
 0x11e   : > { %2937 = vmatpush1.bf16.msra.mxu0 %v6625_v6  ;;  %v666_v44 = vld [vmem:[#allocation5 + $0x2a0] sm:$0xff]  ;;  %v667_v49 = vld [vmem:[#allocation5 + $0x2a8] sm:$0xff] }
 0x11f   : > { %2938 = vmatprep.subr.bf16.mxu0 %v6634_v10  ;;  %3060 = vmatpush1.bf16.msra.mxu1 %v6627_v11  ;;  %v6674_v50 = vcombine.high %v662_v42, %v666_v44  ;;  %v670_v52 = vld [vmem:[#allocation5 + $0x2c0] sm:$0xff]  ;;  %v6676_v54 = vcombine.high %v663_v48, %v667_v49  ;;  %v6673_v55 = vcombine.low %v662_v42, %v666_v44  ;;  %v671_v56 = vld [vmem:[#allocation5 + $0x2c8] sm:$0xff] }
 0x120   : > { %3061 = vmatprep.subr.bf16.mxu1 %v6636_v14  ;;  %v674_v53 = vld [vmem:[#allocation5 + $0x2e0] sm:$0xff]  ;;  %v675_v57 = vld [vmem:[#allocation5 + $0x2e8] sm:$0xff]  ;;  %v6675_v61 = vcombine.low %v663_v48, %v667_v49 }
 0x121   : > { %v6682_v58 = vcombine.high %v670_v52, %v674_v53  ;;  %v678_v59 = vld [vmem:[#allocation5 + $0x300] sm:$0xff]  ;;  %v679_v62 = vld [vmem:[#allocation5 + $0x308] sm:$0xff]  ;;  %v6684_v0 = vcombine.high %v671_v56, %v675_v57  ;;  %v6681_v1 = vcombine.low %v670_v52, %v674_v53  ;;  %v6683_v8 = vcombine.low %v671_v56, %v675_v57 }
 0x122   : > { %2939 = vmatpush1.bf16.msra.mxu0 %v6633_v15  ;;  %v682_v60 = vld [vmem:[#allocation5 + $0x320] sm:$0xff]  ;;  %v683_v63 = vld [vmem:[#allocation5 + $0x328] sm:$0xff] }
 0x123   : > { %2940 = vmatprep.subr.bf16.mxu0 %v6642_v18  ;;  %3062 = vmatpush1.bf16.msra.mxu1 %v6635_v19  ;;  %v686_v2 = vld [vmem:[#allocation5 + $0x340] sm:$0xff]  ;;  %v6690_v7 = vcombine.high %v678_v59, %v682_v60  ;;  %v687_v10 = vld [vmem:[#allocation5 + $0x348] sm:$0xff]  ;;  %v6692_v12 = vcombine.high %v679_v62, %v683_v63  ;;  %v6689_v13 = vcombine.low %v678_v59, %v682_v60  ;;  %v463_v60 = vld [vmem:[#allocation13] sm:$0x3f] }
 0x124   : > { %3063 = vmatprep.subr.bf16.mxu1 %v6644_v20  ;;  %v690_v6 = vld [vmem:[#allocation5 + $0x360] sm:$0xff]  ;;  %v691_v11 = vld [vmem:[#allocation5 + $0x368] sm:$0xff]  ;;  %v6691_v17 = vcombine.low %v679_v62, %v683_v63 }
 0x125   : > { %v694_v14 = vld [vmem:[#allocation5 + $0x380] sm:$0xff]  ;;  %v6698_v16 = vcombine.high %v686_v2, %v690_v6  ;;  %v695_v18 = vld [vmem:[#allocation5 + $0x388] sm:$0xff]  ;;  %v6700_v20 = vcombine.high %v687_v10, %v691_v11 }
 0x126   : > { %2941 = vmatpush1.bf16.msra.mxu0 %v6641_v21  ;;  %v698_v15 = vld [vmem:[#allocation5 + $0x3a0] sm:$0xff]  ;;  %v699_v19 = vld [vmem:[#allocation5 + $0x3a8] sm:$0xff]  ;;  %v6697_v21 = vcombine.low %v686_v2, %v690_v6 }
 0x127   : > { %2942 = vmatprep.subr.bf16.mxu0 %v6650_v26  ;;  %3064 = vmatpush1.bf16.msra.mxu1 %v6643_v28  ;;  %v702_v23 = vld [vmem:[#allocation5 + $0x3c0] sm:$0xff]  ;;  %v8865_v27 = vld [vmem:[#allocation5 + $0x408] sm:$0xff]  ;;  %v6706_v28 = vcombine.high %v694_v14, %v698_v15  ;;  %v6708_v35 = vcombine.high %v695_v18, %v699_v19 }
 0x128   : > { %3065 = vmatprep.subr.bf16.mxu1 %v6652_v29  ;;  %v706_v24 = vld [vmem:[#allocation5 + $0x3e0] sm:$0xff]  ;;  %v8867_v29 = vld [vmem:[#allocation5 + $0x428] sm:$0xff] }
 0x129   : > { %v8861_v25 = vld [vmem:[#allocation5 + $0x400] sm:$0xff]  ;;  %v703_v31 = vld [vmem:[#allocation5 + $0x3c8] sm:$0xff]  ;;  %v6713_v41 = vcombine.low %v702_v23, %v706_v24  ;;  %v6724_v44 = vcombine.high %v8865_v27, %v8867_v29 }
 0x12a   : > { %2943 = vmatpush1.bf16.msra.mxu0 %v6649_v30  ;;  %v8863_v26 = vld [vmem:[#allocation5 + $0x420] sm:$0xff]  ;;  %v6699_v30 = vcombine.low %v687_v10, %v691_v11  ;;  %v707_v32 = vld [vmem:[#allocation5 + $0x3e8] sm:$0xff] }
 0x12b   : > { %2944 = vmatprep.subr.bf16.mxu0 %v6658_v34  ;;  %3066 = vmatpush1.bf16.msra.mxu1 %v6651_v37  ;;  %v6721_v33 = vcombine.low %v8861_v25, %v8863_v26  ;;  %v6723_v34 = vcombine.low %v8865_v27, %v8867_v29  ;;  %v6705_v37 = vcombine.low %v694_v14, %v698_v15 }
 0x12c   : > { %3067 = vmatprep.subr.bf16.mxu1 %v6660_v38  ;;  %v6714_v38 = vcombine.high %v702_v23, %v706_v24  ;;  %v6716_v40 = vcombine.high %v703_v31, %v707_v32  ;;  %v6722_v42 = vcombine.high %v8861_v25, %v8863_v26 }
 0x12e   : > { %2945 = vmatpush1.bf16.msra.mxu0 %v6657_v39  ;;  %v6707_v39 = vcombine.low %v695_v18, %v699_v19 }
 0x12f   : > { %2946 = vmatprep.subr.bf16.mxu0 %v6666_v43  ;;  %3068 = vmatpush1.bf16.msra.mxu1 %v6659_v45  ;;  %v6715_v43 = vcombine.low %v703_v31, %v707_v32  ;;  %v719_v31 = vld [vmem:[#allocation5 + $0x448] sm:$0xff] }
 0x130   : > { %3069 = vmatprep.subr.bf16.mxu1 %v6668_v46 }
 0x132   : > { %2947 = vmatpush1.bf16.msra.mxu0 %v6665_v47 }
 0x133   : > { %2948 = vmatprep.subr.bf16.mxu0 %v6674_v50  ;;  %3070 = vmatpush1.bf16.msra.mxu1 %v6667_v51  ;;  %v503_v50 = vlaneseq }
 0x134   : > { %3071 = vmatprep.subr.bf16.mxu1 %v6676_v54  ;;  %v462_v54 = vld [vmem:[#allocation11] sm:$0x3f] }
 0x135   : > { %v8877_v53 = vshrl.u32 %v503_v50, 7 }
 0x136   : > { %2949 = vmatpush1.bf16.msra.mxu0 %v6673_v55 }
 0x137   : > { %2950 = vmatprep.subr.bf16.mxu0 %v6682_v58  ;;  %3072 = vmatpush1.bf16.msra.mxu1 %v6675_v61  ;;  %v8880_v55 = vsub.s32 1, %v8877_v53  ;;  %v8883_v56 = vsub.s32 0, %v8877_v53  ;;  %v8886_v57 = vsub.s32 3, %v8877_v53  ;;  %v8889_v58 = vsub.s32 2, %v8877_v53 }
 0x138   : > { %3073 = vmatprep.subr.bf16.mxu1 %v6684_v0  ;;  %v8892_v59 = vsub.s32 5, %v8877_v53  ;;  %v8900_v2 = vsub.s32 4, %v8877_v53 }
 0x139   : > { %v510_v61 = vrot.slane %v462_v54, %v8880_v55  ;;  %v506_v62 = vrot.slane %v462_v54, %v8883_v56  ;;  %v518_v63 = vrot.slane %v462_v54, %v8886_v57  ;;  %v514_v0 = vrot.slane %v462_v54, %v8889_v58 }
 0x13a   : > { %2951 = vmatpush1.bf16.msra.mxu0 %v6681_v1  ;;  %v526_v1 = vrot.slane %v462_v54, %v8892_v59  ;;  %v551_v14 = vrot.slane %v463_v60, %v8889_v58 }
 0x13b   : > { %2952 = vmatprep.subr.bf16.mxu0 %v6690_v7  ;;  %3074 = vmatpush1.bf16.msra.mxu1 %v6683_v8 }
 0x13c   : > { %3075 = vmatprep.subr.bf16.mxu1 %v6692_v12  ;;  %v547_v12 = vrot.slane %v463_v60, %v8880_v55 }
 0x13e   : > { %2953 = vmatpush1.bf16.msra.mxu0 %v6689_v13  ;;  %v543_v13 = vrot.slane %v463_v60, %v8883_v56 }
 0x13f   : > { %2954 = vmatprep.subr.bf16.mxu0 %v6698_v16  ;;  %3076 = vmatpush1.bf16.msra.mxu1 %v6691_v17 }
 0x140   : > { %3077 = vmatprep.subr.bf16.mxu1 %v6700_v20 }
 0x142   : > { %2955 = vmatpush1.bf16.msra.mxu0 %v6697_v21 }
 0x143   : > { %2956 = vmatprep.subr.bf16.mxu0 %v6706_v28  ;;  %3078 = vmatpush1.bf16.msra.mxu1 %v6699_v30  ;;  %v718_v28 = vld [vmem:[#allocation5 + $0x440] sm:$0xff] }
 0x144   : > { %3079 = vmatprep.subr.bf16.mxu1 %v6708_v35  ;;  %v722_v30 = vld [vmem:[#allocation5 + $0x460] sm:$0xff]  ;;  %v522_v35 = vrot.slane %v462_v54, %v8900_v2 }
 0x145   : > { %v6730_v50 = vcombine.high %v718_v28, %v722_v30 }
 0x146   : > { %2957 = vmatpush1.bf16.msra.mxu0 %v6705_v37 }
 0x147   : > { %2958 = vmatprep.subr.bf16.mxu0 %v6714_v38  ;;  %3080 = vmatpush1.bf16.msra.mxu1 %v6707_v39  ;;  %v723_v39 = vld [vmem:[#allocation5 + $0x468] sm:$0xff] }
 0x148   : > { %3081 = vmatprep.subr.bf16.mxu1 %v6716_v40 }
 0x14a   : > { %2959 = vmatpush1.bf16.msra.mxu0 %v6713_v41 }
 0x14b   : > { %2969 = vmatprep.subr.bf16.mxu0 %v6722_v42  ;;  %3082 = vmatpush1.bf16.msra.mxu1 %v6715_v43  ;;  %v559_v42 = vrot.slane %v463_v60, %v8900_v2 }
 0x14c   : > { %3092 = vmatprep.subr.bf16.mxu1 %v6724_v44 }
 0x1a2   : > { %v470_v45 = vpop.xlane.xlu0 %469 }
 0x1a3   : > { %v471_v46 = vmul.f32 0.0013020834, %v470_v45  ;;  %v726_v45 = vld [vmem:[#allocation5 + $0x480] sm:$0xff] }
 0x1a5   : > { %v486_v48 = vmul.f32 %v471_v46, %v471_v46  ;;  %v491_v6 = vsub.f32 %v8833_v4, %v471_v46  ;;  %v490_v7 = vsub.f32 %v8831_v3, %v471_v46  ;;  %v493_v8 = vsub.f32 %v8837_v9, %v471_v46 }
 0x1a6   : > { %v484_v47 = vpop.xlane.xlu0 %483  ;;  %v492_v10 = vsub.f32 %v8835_v5, %v471_v46  ;;  %v495_v15 = vsub.f32 %v8854_v36, %v471_v46  ;;  %v555_v4 = vrot.slane %v463_v60, %v8886_v57  ;;  %v563_v9 = vrot.slane %v463_v60, %v8892_v59 }
 0x1a7   : > { %v485_v49 = vmul.f32 0.0013020834, %v484_v47  ;;  %v494_v5 = vsub.f32 %v8847_v22, %v471_v46  ;;  %v730_v46 = vld [vmem:[#allocation5 + $0x4a0] sm:$0xff]  ;;  %v727_v47 = vld [vmem:[#allocation5 + $0x488] sm:$0xff]  ;;  %v6729_v60 = vcombine.low %v718_v28, %v722_v30 }
 0x1a8   : > { %v6737_v25 = vcombine.low %v726_v45, %v730_v46 }
 0x1a9   : > { %v487_v51 = vsub.f32 %v485_v49, %v486_v48  ;;  %v731_v48 = vld [vmem:[#allocation5 + $0x4a8] sm:$0xff] }
 0x1aa   : > { %v6739_v26 = vcombine.low %v727_v47, %v731_v48 }
 0x1ab   : > { %v488_v52 = vadd.f32 1e-05, %v487_v51  ;;  %v6732_v51 = vcombine.high %v719_v31, %v723_v39 }
 0x1ad   : > { %8121 = vrsqrt.f32 %v488_v52 }
 0x1b7   : > { %v8122_v11 = vpop.eup %8121 }
 0x1b8   : > { %v497_v16 = vmul.f32 %v8122_v11, %v491_v6  ;;  %v496_v17 = vmul.f32 %v8122_v11, %v490_v7  ;;  %v499_v18 = vmul.f32 %v8122_v11, %v493_v8  ;;  %v498_v19 = vmul.f32 %v8122_v11, %v492_v10  ;;  %v735_v6 = vld [vmem:[#allocation5 + $0x4c8] sm:$0xff] }
 0x1b9   : > { %v501_v3 = vmul.f32 %v8122_v11, %v495_v15  ;;  %v500_v36 = vmul.f32 %v8122_v11, %v494_v5  ;;  %v739_v7 = vld [vmem:[#allocation5 + $0x4e8] sm:$0xff]  ;;  %v750_v15 = vld [vmem:[#allocation5 + $0x540] sm:$0xff] }
 0x1ba   : > { %v534_v20 = vmul.f32 %v510_v61, %v497_v16  ;;  %v533_v21 = vmul.f32 %v506_v62, %v496_v17  ;;  %v536_v23 = vmul.f32 %v518_v63, %v499_v18  ;;  %v535_v24 = vmul.f32 %v514_v0, %v498_v19  ;;  %v734_v0 = vld [vmem:[#allocation5 + $0x4c0] sm:$0xff]  ;;  %v743_v8 = vld [vmem:[#allocation5 + $0x508] sm:$0xff] }
 0x1bb   : > { %v538_v32 = vmul.f32 %v526_v1, %v501_v3  ;;  %v537_v49 = vmul.f32 %v522_v35, %v500_v36  ;;  %v6731_v61 = vcombine.low %v719_v31, %v723_v39  ;;  %v6738_v62 = vcombine.high %v726_v45, %v730_v46  ;;  %v738_v1 = vld [vmem:[#allocation5 + $0x4e0] sm:$0xff]  ;;  %v747_v10 = vld [vmem:[#allocation5 + $0x528] sm:$0xff] }
 0x1bc   : > { %v8914_v37 = vadd.f32 %v547_v12, %v534_v20  ;;  %v8916_v38 = vadd.f32 %v543_v13, %v533_v21  ;;  %v8918_v40 = vadd.f32 %v551_v14, %v535_v24  ;;  %v8920_v41 = vadd.f32 %v555_v4, %v536_v23  ;;  %v754_v16 = vld [vmem:[#allocation5 + $0x560] sm:$0xff]  ;;  %v751_v17 = vld [vmem:[#allocation5 + $0x548] sm:$0xff] }
 0x1bd   : > { %v8922_v22 = vadd.f32 %v563_v9, %v538_v32  ;;  %v8941_v54 = vadd.f32 %v559_v42, %v537_v49  ;;  %v6740_v63 = vcombine.high %v727_v47, %v731_v48  ;;  %v6746_v27 = vcombine.high %v734_v0, %v738_v1  ;;  %v755_v18 = vld [vmem:[#allocation5 + $0x568] sm:$0xff]  ;;  %v758_v5 = vld [vmem:[#allocation5 + $0x580] sm:$0xff] }
 0x1be   : > { %v8927_v43 = vpack.c.bf16 %v8914_v37, %v8914_v37  ;;  %v8931_v44 = vpack.c.bf16 %v8916_v38, %v8916_v38  ;;  %v8939_v52 = vpack.c.bf16 %v8920_v41, %v8920_v41  ;;  %v6748_v29 = vcombine.high %v735_v6, %v739_v7  ;;  %v762_v20 = vld [vmem:[#allocation5 + $0x5a0] sm:$0xff]  ;;  %v759_v21 = vld [vmem:[#allocation5 + $0x588] sm:$0xff] }
 0x1bf   : > { %v6745_v11 = vcombine.low %v734_v0, %v738_v1  ;;  %v6747_v12 = vcombine.low %v735_v6, %v739_v7  ;;  %v6756_v14 = vcombine.high %v743_v8, %v747_v10  ;;  %v6755_v4 = vcombine.low %v743_v8, %v747_v10  ;;  %v763_v23 = vld [vmem:[#allocation5 + $0x5a8] sm:$0xff]  ;;  %v766_v32 = vld [vmem:[#allocation5 + $0x5c0] sm:$0xff] }
 0x1c0   : > { %2960 = vmatprep.mubr.bf16.mxu0 %v8927_v43  ;;  %3083 = vmatprep.mubr.bf16.mxu1 %v8927_v43  ;;  %v6762_v3 = vcombine.high %v750_v15, %v754_v16  ;;  %v6764_v9 = vcombine.high %v751_v17, %v755_v18  ;;  %v6761_v24 = vcombine.low %v750_v15, %v754_v16  ;;  %v770_v36 = vld [vmem:[#allocation5 + $0x5e0] sm:$0xff]  ;;  %v767_v35 = vld [vmem:[#allocation5 + $0x5c8] sm:$0xff] }
 0x1c1   : > { %2961 = vmatmul.mubr.bf16.vlgmr.msra.gmra.mrb[0].mxu0 %v8931_v44  ;;  %3084 = vmatmul.mubr.bf16.vlgmr.msra.gmra.mrb[0].mxu1 %v8931_v44  ;;  %v6763_v28 = vcombine.low %v751_v17, %v755_v18  ;;  %v6770_v30 = vcombine.high %v758_v5, %v762_v20  ;;  %v6772_v31 = vcombine.high %v759_v21, %v763_v23  ;;  %v771_v39 = vld [vmem:[#allocation5 + $0x5e8] sm:$0xff]  ;;  %v774_v48 = vld [vmem:[#allocation5 + $0x600] sm:$0xff] }
 0x1c2   : > { %2970 = vmatpush1.bf16.msra.mxu0 %v6721_v33  ;;  %3093 = vmatpush1.bf16.msra.mxu1 %v6723_v34  ;;  %v742_v33 = vld [vmem:[#allocation5 + $0x500] sm:$0xff]  ;;  %v6769_v42 = vcombine.low %v758_v5, %v762_v20  ;;  %v6771_v45 = vcombine.low %v759_v21, %v763_v23  ;;  %v6778_v46 = vcombine.high %v766_v32, %v770_v36  ;;  %v783_v6 = vld [vmem:[#allocation5 + $0x648] sm:$0xff] }
 0x1c3   : > { %3001 = vmatprep.mubr.bf16.mxu0 %v8939_v52  ;;  %3124 = vmatprep.mubr.bf16.mxu1 %v8939_v52  ;;  %v746_v34 = vld [vmem:[#allocation5 + $0x520] sm:$0xff]  ;;  %v6780_v47 = vcombine.high %v767_v35, %v771_v39  ;;  %v787_v7 = vld [vmem:[#allocation5 + $0x668] sm:$0xff] }
 0x1c4   : > { %2971 = vmatprep.subr.bf16.mxu0 %v6730_v50  ;;  %3094 = vmatprep.subr.bf16.mxu1 %v6732_v51  ;;  %v6754_v13 = vcombine.high %v742_v33, %v746_v34  ;;  %v6753_v19 = vcombine.low %v742_v33, %v746_v34  ;;  %v778_v49 = vld [vmem:[#allocation5 + $0x620] sm:$0xff]  ;;  %v775_v50 = vld [vmem:[#allocation5 + $0x608] sm:$0xff] }
 0x1c5   : > { %v779_v51 = vld [vmem:[#allocation5 + $0x628] sm:$0xff]  ;;  %v782_v0 = vld [vmem:[#allocation5 + $0x640] sm:$0xff] }
 0x1c6   : > { %2972 = vmatpush1.bf16.msra.mxu0 %v6729_v60  ;;  %3095 = vmatpush1.bf16.msra.mxu1 %v6731_v61  ;;  %v6777_v60 = vcombine.low %v766_v32, %v770_v36  ;;  %v6779_v61 = vcombine.low %v767_v35, %v771_v39  ;;  %v786_v1 = vld [vmem:[#allocation5 + $0x660] sm:$0xff]  ;;  %v791_v8 = vld [vmem:[#allocation5 + $0x688] sm:$0xff] }
 0x1c7   : > { %2973 = vmatprep.subr.bf16.mxu0 %v6738_v62  ;;  %3096 = vmatprep.subr.bf16.mxu1 %v6740_v63  ;;  %v6786_v62 = vcombine.high %v774_v48, %v778_v49  ;;  %v6788_v63 = vcombine.high %v775_v50, %v779_v51  ;;  %v790_v33 = vld [vmem:[#allocation5 + $0x680] sm:$0xff]  ;;  %v795_v10 = vld [vmem:[#allocation5 + $0x6a8] sm:$0xff] }
 0x1c8   : > { %v794_v34 = vld [vmem:[#allocation5 + $0x6a0] sm:$0xff]  ;;  %v799_v17 = vld [vmem:[#allocation5 + $0x6c8] sm:$0xff] }
 0x1c9   : > { %v798_v15 = vld [vmem:[#allocation5 + $0x6c0] sm:$0xff]  ;;  %v803_v18 = vld [vmem:[#allocation5 + $0x6e8] sm:$0xff] }
 0x1ca   : > { %2974 = vmatpush1.bf16.msra.mxu0 %v6737_v25  ;;  %3097 = vmatpush1.bf16.msra.mxu1 %v6739_v26  ;;  %v6785_v25 = vcombine.low %v774_v48, %v778_v49  ;;  %v6787_v26 = vcombine.low %v775_v50, %v779_v51  ;;  %v802_v16 = vld [vmem:[#allocation5 + $0x6e0] sm:$0xff]  ;;  %v807_v21 = vld [vmem:[#allocation5 + $0x708] sm:$0xff] }
 0x1cb   : > { %2975 = vmatprep.subr.bf16.mxu0 %v6746_v27  ;;  %3098 = vmatprep.subr.bf16.mxu1 %v6748_v29  ;;  %v6794_v27 = vcombine.high %v782_v0, %v786_v1  ;;  %v6796_v29 = vcombine.high %v783_v6, %v787_v7  ;;  %v806_v5 = vld [vmem:[#allocation5 + $0x700] sm:$0xff]  ;;  %v811_v23 = vld [vmem:[#allocation5 + $0x728] sm:$0xff] }
 0x1cc   : > { %v810_v20 = vld [vmem:[#allocation5 + $0x720] sm:$0xff]  ;;  %v815_v35 = vld [vmem:[#allocation5 + $0x748] sm:$0xff] }
 0x1cd   : > { %v814_v32 = vld [vmem:[#allocation5 + $0x740] sm:$0xff]  ;;  %v819_v39 = vld [vmem:[#allocation5 + $0x768] sm:$0xff] }
 0x1ce   : > { %2976 = vmatpush1.bf16.msra.mxu0 %v6745_v11  ;;  %3099 = vmatpush1.bf16.msra.mxu1 %v6747_v12  ;;  %v6793_v11 = vcombine.low %v782_v0, %v786_v1  ;;  %v6795_v12 = vcombine.low %v783_v6, %v787_v7  ;;  %v818_v36 = vld [vmem:[#allocation5 + $0x760] sm:$0xff]  ;;  %v823_v50 = vld [vmem:[#allocation5 + $0x788] sm:$0xff] }
 0x1cf   : > { %2977 = vmatprep.subr.bf16.mxu0 %v6754_v13  ;;  %3100 = vmatprep.subr.bf16.mxu1 %v6756_v14  ;;  %v6802_v13 = vcombine.high %v790_v33, %v794_v34  ;;  %v6804_v14 = vcombine.high %v791_v8, %v795_v10  ;;  %v822_v48 = vld [vmem:[#allocation5 + $0x780] sm:$0xff]  ;;  %v827_v51 = vld [vmem:[#allocation5 + $0x7a8] sm:$0xff] }
 0x1d0   : > { %v826_v49 = vld [vmem:[#allocation5 + $0x7a0] sm:$0xff]  ;;  %v831_v6 = vld [vmem:[#allocation5 + $0x7c8] sm:$0xff] }
 0x1d1   : > { %v830_v0 = vld [vmem:[#allocation5 + $0x7c0] sm:$0xff]  ;;  %v835_v7 = vld [vmem:[#allocation5 + $0x7e8] sm:$0xff] }
 0x1d2   : > { %2978 = vmatpush1.bf16.msra.mxu0 %v6753_v19  ;;  %3101 = vmatpush1.bf16.msra.mxu1 %v6755_v4  ;;  %v6801_v19 = vcombine.low %v790_v33, %v794_v34  ;;  %v6803_v4 = vcombine.low %v791_v8, %v795_v10  ;;  %v834_v1 = vld [vmem:[#allocation5 + $0x7e0] sm:$0xff]  ;;  %v839_v8 = vld [vmem:[#allocation5 + $0x808] sm:$0xff] }
 0x1d3   : > { %2979 = vmatprep.subr.bf16.mxu0 %v6762_v3  ;;  %3102 = vmatprep.subr.bf16.mxu1 %v6764_v9  ;;  %v6810_v3 = vcombine.high %v798_v15, %v802_v16  ;;  %v6812_v9 = vcombine.high %v799_v17, %v803_v18  ;;  %v838_v33 = vld [vmem:[#allocation5 + $0x800] sm:$0xff]  ;;  %v843_v10 = vld [vmem:[#allocation5 + $0x828] sm:$0xff] }
 0x1d4   : > { %v842_v34 = vld [vmem:[#allocation5 + $0x820] sm:$0xff] }
 0x1d6   : > { %2980 = vmatpush1.bf16.msra.mxu0 %v6761_v24  ;;  %3103 = vmatpush1.bf16.msra.mxu1 %v6763_v28  ;;  %v6809_v24 = vcombine.low %v798_v15, %v802_v16  ;;  %v6811_v28 = vcombine.low %v799_v17, %v803_v18  ;;  %v846_v15 = vld [vmem:[#allocation5 + $0x840] sm:$0xff]  ;;  %v847_v17 = vld [vmem:[#allocation5 + $0x848] sm:$0xff] }
 0x1d7   : > { %2981 = vmatprep.subr.bf16.mxu0 %v6770_v30  ;;  %3104 = vmatprep.subr.bf16.mxu1 %v6772_v31  ;;  %v6818_v30 = vcombine.high %v806_v5, %v810_v20  ;;  %v6820_v31 = vcombine.high %v807_v21, %v811_v23  ;;  %v850_v16 = vld [vmem:[#allocation5 + $0x860] sm:$0xff]  ;;  %v851_v18 = vld [vmem:[#allocation5 + $0x868] sm:$0xff] }
 0x1da   : > { %2982 = vmatpush1.bf16.msra.mxu0 %v6769_v42  ;;  %3105 = vmatpush1.bf16.msra.mxu1 %v6771_v45  ;;  %v6817_v42 = vcombine.low %v806_v5, %v810_v20  ;;  %v6819_v45 = vcombine.low %v807_v21, %v811_v23  ;;  %v6858_v5 = vcombine.high %v846_v15, %v850_v16  ;;  %v854_v21 = vld [vmem:[#allocation5 + $0x880] sm:$0xff] }
 0x1db   : > { %2983 = vmatprep.subr.bf16.mxu0 %v6778_v46  ;;  %3106 = vmatprep.subr.bf16.mxu1 %v6780_v47  ;;  %v6826_v46 = vcombine.high %v814_v32, %v818_v36  ;;  %v6828_v47 = vcombine.high %v815_v35, %v819_v39  ;;  %v6860_v20 = vcombine.high %v847_v17, %v851_v18  ;;  %v858_v23 = vld [vmem:[#allocation5 + $0x8a0] sm:$0xff] }
 0x1de   : > { %2984 = vmatpush1.bf16.msra.mxu0 %v6777_v60  ;;  %3107 = vmatpush1.bf16.msra.mxu1 %v6779_v61  ;;  %v6825_v60 = vcombine.low %v814_v32, %v818_v36  ;;  %v6827_v61 = vcombine.low %v815_v35, %v819_v39  ;;  %v6866_v32 = vcombine.high %v854_v21, %v858_v23  ;;  %v862_v35 = vld [vmem:[#allocation5 + $0x8c0] sm:$0xff] }
 0x1df   : > { %2985 = vmatprep.subr.bf16.mxu0 %v6786_v62  ;;  %3108 = vmatprep.subr.bf16.mxu1 %v6788_v63  ;;  %v6834_v62 = vcombine.high %v822_v48, %v826_v49  ;;  %v6836_v63 = vcombine.high %v823_v50, %v827_v51  ;;  %v866_v39 = vld [vmem:[#allocation5 + $0x8e0] sm:$0xff] }
 0x1e2   : > { %2986 = vmatpush1.bf16.msra.mxu0 %v6785_v25  ;;  %3109 = vmatpush1.bf16.msra.mxu1 %v6787_v26  ;;  %v6833_v25 = vcombine.low %v822_v48, %v826_v49  ;;  %v6835_v26 = vcombine.low %v823_v50, %v827_v51  ;;  %v6874_v48 = vcombine.high %v862_v35, %v866_v39  ;;  %v870_v50 = vld [vmem:[#allocation5 + $0x900] sm:$0xff] }
 0x1e3   : > { %2987 = vmatprep.subr.bf16.mxu0 %v6794_v27  ;;  %3110 = vmatprep.subr.bf16.mxu1 %v6796_v29  ;;  %v6842_v27 = vcombine.high %v830_v0, %v834_v1  ;;  %v6844_v29 = vcombine.high %v831_v6, %v835_v7  ;;  %v874_v51 = vld [vmem:[#allocation5 + $0x920] sm:$0xff] }
 0x1e6   : > { %2988 = vmatpush1.bf16.msra.mxu0 %v6793_v11  ;;  %3111 = vmatpush1.bf16.msra.mxu1 %v6795_v12  ;;  %v6841_v11 = vcombine.low %v830_v0, %v834_v1  ;;  %v6843_v12 = vcombine.low %v831_v6, %v835_v7  ;;  %v6882_v0 = vcombine.high %v870_v50, %v874_v51  ;;  %v878_v6 = vld [vmem:[#allocation5 + $0x940] sm:$0xff] }
 0x1e7   : > { %2989 = vmatprep.subr.bf16.mxu0 %v6802_v13  ;;  %3112 = vmatprep.subr.bf16.mxu1 %v6804_v14  ;;  %v6850_v13 = vcombine.high %v838_v33, %v842_v34  ;;  %v6852_v14 = vcombine.high %v839_v8, %v843_v10  ;;  %v882_v7 = vld [vmem:[#allocation5 + $0x960] sm:$0xff] }
 0x1ea   : > { %2990 = vmatpush1.bf16.msra.mxu0 %v6801_v19  ;;  %3113 = vmatpush1.bf16.msra.mxu1 %v6803_v4  ;;  %v6849_v19 = vcombine.low %v838_v33, %v842_v34  ;;  %v8953_v4 = vpack.c.bf16 %v8918_v40, %v8918_v40  ;;  %v6890_v33 = vcombine.high %v878_v6, %v882_v7 }
 0x1eb   : > { %2991 = vmatprep.subr.bf16.mxu0 %v6810_v3  ;;  %3114 = vmatprep.subr.bf16.mxu1 %v6812_v9  ;;  %v6851_v3 = vcombine.low %v839_v8, %v843_v10  ;;  %v8957_v9 = vpack.c.bf16 %v8922_v22, %v8922_v22  ;;  %v886_v8 = vld [vmem:[#allocation5 + $0x980] sm:$0xff] }
 0x1ec   : > { %v890_v10 = vld [vmem:[#allocation5 + $0x9a0] sm:$0xff] }
 0x1ee   : > { %2992 = vmatpush1.bf16.msra.mxu0 %v6809_v24  ;;  %3115 = vmatpush1.bf16.msra.mxu1 %v6811_v28  ;;  %v855_v24 = vld [vmem:[#allocation5 + $0x888] sm:$0xff] }
 0x1ef   : > { %2993 = vmatprep.subr.bf16.mxu0 %v6818_v30  ;;  %3116 = vmatprep.subr.bf16.mxu1 %v6820_v31  ;;  %v859_v28 = vld [vmem:[#allocation5 + $0x8a8] sm:$0xff]  ;;  %v6857_v30 = vcombine.low %v846_v15, %v850_v16  ;;  %v6859_v31 = vcombine.low %v847_v17, %v851_v18  ;;  %v6898_v15 = vcombine.high %v886_v8, %v890_v10  ;;  %v894_v17 = vld [vmem:[#allocation5 + $0x9c0] sm:$0xff] }
 0x1f0   : > { %v6868_v36 = vcombine.high %v855_v24, %v859_v28  ;;  %v898_v18 = vld [vmem:[#allocation5 + $0x9e0] sm:$0xff] }
 0x1f2   : > { %2994 = vmatpush1.bf16.msra.mxu0 %v6817_v42  ;;  %3117 = vmatpush1.bf16.msra.mxu1 %v6819_v45  ;;  %v863_v42 = vld [vmem:[#allocation5 + $0x8c8] sm:$0xff] }
 0x1f3   : > { %2995 = vmatprep.subr.bf16.mxu0 %v6826_v46  ;;  %3118 = vmatprep.subr.bf16.mxu1 %v6828_v47  ;;  %v867_v45 = vld [vmem:[#allocation5 + $0x8e8] sm:$0xff]  ;;  %v6865_v46 = vcombine.low %v854_v21, %v858_v23  ;;  %v6867_v47 = vcombine.low %v855_v24, %v859_v28  ;;  %v6906_v21 = vcombine.high %v894_v17, %v898_v18  ;;  %v902_v24 = vld [vmem:[#allocation5 + $0xa00] sm:$0xff] }
 0x1f4   : > { %v6876_v49 = vcombine.high %v863_v42, %v867_v45  ;;  %v906_v28 = vld [vmem:[#allocation5 + $0xa20] sm:$0xff] }
 0x1f6   : > { %2996 = vmatpush1.bf16.msra.mxu0 %v6825_v60  ;;  %3119 = vmatpush1.bf16.msra.mxu1 %v6827_v61  ;;  %v871_v60 = vld [vmem:[#allocation5 + $0x908] sm:$0xff] }
 0x1f7   : > { %2997 = vmatprep.subr.bf16.mxu0 %v6834_v62  ;;  %3120 = vmatprep.subr.bf16.mxu1 %v6836_v63  ;;  %v875_v61 = vld [vmem:[#allocation5 + $0x928] sm:$0xff]  ;;  %v6873_v62 = vcombine.low %v862_v35, %v866_v39  ;;  %v6875_v63 = vcombine.low %v863_v42, %v867_v45  ;;  %v6914_v35 = vcombine.high %v902_v24, %v906_v28  ;;  %v910_v42 = vld [vmem:[#allocation5 + $0xa40] sm:$0xff] }
 0x1f8   : > { %v6884_v1 = vcombine.high %v871_v60, %v875_v61  ;;  %v914_v45 = vld [vmem:[#allocation5 + $0xa60] sm:$0xff] }
 0x1fa   : > { %2998 = vmatpush1.bf16.msra.mxu0 %v6833_v25  ;;  %3121 = vmatpush1.bf16.msra.mxu1 %v6835_v26  ;;  %v879_v25 = vld [vmem:[#allocation5 + $0x948] sm:$0xff] }
 0x1fb   : > { %2999 = vmatprep.subr.bf16.mxu0 %v6842_v27  ;;  %3122 = vmatprep.subr.bf16.mxu1 %v6844_v29  ;;  %v883_v26 = vld [vmem:[#allocation5 + $0x968] sm:$0xff]  ;;  %v6881_v27 = vcombine.low %v870_v50, %v874_v51  ;;  %v6883_v29 = vcombine.low %v871_v60, %v875_v61  ;;  %v6922_v50 = vcombine.high %v910_v42, %v914_v45  ;;  %v918_v60 = vld [vmem:[#allocation5 + $0xa80] sm:$0xff] }
 0x1fc   : > { %v6892_v34 = vcombine.high %v879_v25, %v883_v26  ;;  %v922_v61 = vld [vmem:[#allocation5 + $0xaa0] sm:$0xff] }
 0x1fe   : > { %3000 = vmatpush1.bf16.msra.mxu0 %v6841_v11  ;;  %3123 = vmatpush1.bf16.msra.mxu1 %v6843_v12  ;;  %v887_v11 = vld [vmem:[#allocation5 + $0x988] sm:$0xff] }
 0x1ff   : > { %3010 = vmatprep.subr.bf16.mxu0 %v6850_v13  ;;  %3133 = vmatprep.subr.bf16.mxu1 %v6852_v14  ;;  %v891_v12 = vld [vmem:[#allocation5 + $0x9a8] sm:$0xff]  ;;  %v6889_v13 = vcombine.low %v878_v6, %v882_v7  ;;  %v6891_v14 = vcombine.low %v879_v25, %v883_v26  ;;  %v6930_v6 = vcombine.high %v918_v60, %v922_v61  ;;  %v926_v25 = vld [vmem:[#allocation5 + $0xac0] sm:$0xff] }
 0x200   : > { %v6900_v16 = vcombine.high %v887_v11, %v891_v12  ;;  %v930_v26 = vld [vmem:[#allocation5 + $0xae0] sm:$0xff] }
 0x201   : > { %3002 = vmatmul.mubr.bf16.vlgmr.msra.gmra.mrb[0].mxu0 %v8953_v4  ;;  %3125 = vmatmul.mubr.bf16.vlgmr.msra.gmra.mrb[0].mxu1 %v8953_v4 }
 0x202   : > { %3011 = vmatpush1.bf16.msra.mxu0 %v6849_v19  ;;  %3042 = vmatprep.mubr.bf16.mxu0 %v8957_v9  ;;  %v895_v19 = vld [vmem:[#allocation5 + $0x9c8] sm:$0xff] }
 0x203   : > { %3134 = vmatpush1.bf16.msra.mxu1 %v6851_v3  ;;  %3165 = vmatprep.mubr.bf16.mxu1 %v8957_v9  ;;  %v899_v3 = vld [vmem:[#allocation5 + $0x9e8] sm:$0xff] }
 0x204   : > { %3012 = vmatprep.subr.bf16.mxu0 %v6858_v5  ;;  %3135 = vmatprep.subr.bf16.mxu1 %v6860_v20  ;;  %v6897_v5 = vcombine.low %v886_v8, %v890_v10  ;;  %v6899_v20 = vcombine.low %v887_v11, %v891_v12  ;;  %v6908_v23 = vcombine.high %v895_v19, %v899_v3  ;;  %v934_v11 = vld [vmem:[#allocation5 + $0xb00] sm:$0xff] }
 0x205   : > { %v6938_v8 = vcombine.high %v926_v25, %v930_v26  ;;  %v938_v12 = vld [vmem:[#allocation5 + $0xb20] sm:$0xff] }
 0x206   : > { %3013 = vmatpush1.bf16.msra.mxu0 %v6857_v30  ;;  %v903_v30 = vld [vmem:[#allocation5 + $0xa08] sm:$0xff] }
 0x207   : > { %3136 = vmatpush1.bf16.msra.mxu1 %v6859_v31  ;;  %3014 = vmatprep.subr.bf16.mxu0 %v6866_v32  ;;  %v907_v31 = vld [vmem:[#allocation5 + $0xa28] sm:$0xff]  ;;  %v6905_v32 = vcombine.low %v894_v17, %v898_v18  ;;  %v6946_v17 = vcombine.high %v934_v11, %v938_v12 }
 0x208   : > { %3137 = vmatprep.subr.bf16.mxu1 %v6868_v36  ;;  %v6907_v36 = vcombine.low %v895_v19, %v899_v3  ;;  %v6916_v39 = vcombine.high %v903_v30, %v907_v31  ;;  %v942_v19 = vld [vmem:[#allocation5 + $0xb40] sm:$0xff] }
 0x209   : > { %v946_v3 = vld [vmem:[#allocation5 + $0xb60] sm:$0xff] }
 0x20a   : > { %3015 = vmatpush1.bf16.msra.mxu0 %v6865_v46  ;;  %v911_v46 = vld [vmem:[#allocation5 + $0xa48] sm:$0xff] }
 0x20b   : > { %3138 = vmatpush1.bf16.msra.mxu1 %v6867_v47  ;;  %3016 = vmatprep.subr.bf16.mxu0 %v6874_v48  ;;  %v915_v47 = vld [vmem:[#allocation5 + $0xa68] sm:$0xff]  ;;  %v6913_v48 = vcombine.low %v902_v24, %v906_v28  ;;  %v6954_v24 = vcombine.high %v942_v19, %v946_v3 }
 0x20c   : > { %3139 = vmatprep.subr.bf16.mxu1 %v6876_v49  ;;  %v6915_v49 = vcombine.low %v903_v30, %v907_v31  ;;  %v6924_v51 = vcombine.high %v911_v46, %v915_v47  ;;  %v950_v30 = vld [vmem:[#allocation5 + $0xb80] sm:$0xff] }
 0x20d   : > { %v954_v31 = vld [vmem:[#allocation5 + $0xba0] sm:$0xff] }
 0x20e   : > { %3017 = vmatpush1.bf16.msra.mxu0 %v6873_v62  ;;  %v919_v62 = vld [vmem:[#allocation5 + $0xa88] sm:$0xff] }
 0x20f   : > { %3140 = vmatpush1.bf16.msra.mxu1 %v6875_v63  ;;  %3018 = vmatprep.subr.bf16.mxu0 %v6882_v0  ;;  %v923_v63 = vld [vmem:[#allocation5 + $0xaa8] sm:$0xff]  ;;  %v6921_v0 = vcombine.low %v910_v42, %v914_v45  ;;  %v6962_v42 = vcombine.high %v950_v30, %v954_v31 }
 0x210   : > { %3141 = vmatprep.subr.bf16.mxu1 %v6884_v1  ;;  %v6923_v1 = vcombine.low %v911_v46, %v915_v47  ;;  %v6932_v7 = vcombine.high %v919_v62, %v923_v63  ;;  %v958_v46 = vld [vmem:[#allocation5 + $0xbc0] sm:$0xff] }
 0x211   : > { %v962_v47 = vld [vmem:[#allocation5 + $0xbe0] sm:$0xff] }
 0x212   : > { %3019 = vmatpush1.bf16.msra.mxu0 %v6881_v27  ;;  %v927_v27 = vld [vmem:[#allocation5 + $0xac8] sm:$0xff] }
 0x213   : > { %3142 = vmatpush1.bf16.msra.mxu1 %v6883_v29  ;;  %3020 = vmatprep.subr.bf16.mxu0 %v6890_v33  ;;  %v931_v29 = vld [vmem:[#allocation5 + $0xae8] sm:$0xff]  ;;  %v6929_v33 = vcombine.low %v918_v60, %v922_v61  ;;  %v6970_v60 = vcombine.high %v958_v46, %v962_v47 }
 0x214   : > { %3143 = vmatprep.subr.bf16.mxu1 %v6892_v34  ;;  %v6931_v34 = vcombine.low %v919_v62, %v923_v63  ;;  %v6940_v10 = vcombine.high %v927_v27, %v931_v29  ;;  %v584_v62 = vld [vmem:[#allocation5 + $0x10] sm:$0xff] }
 0x215   : > { %v588_v63 = vld [vmem:[#allocation5 + $0x30] sm:$0xff] }
 0x216   : > { %3021 = vmatpush1.bf16.msra.mxu0 %v6889_v13  ;;  %v935_v13 = vld [vmem:[#allocation5 + $0xb08] sm:$0xff] }
 0x217   : > { %3144 = vmatpush1.bf16.msra.mxu1 %v6891_v14  ;;  %3022 = vmatprep.subr.bf16.mxu0 %v6898_v15  ;;  %v939_v14 = vld [vmem:[#allocation5 + $0xb28] sm:$0xff]  ;;  %v6937_v15 = vcombine.low %v926_v25, %v930_v26  ;;  %v6598_v25 = vcombine.high %v584_v62, %v588_v63 }
 0x218   : > { %3145 = vmatprep.subr.bf16.mxu1 %v6900_v16  ;;  %v6939_v16 = vcombine.low %v927_v27, %v931_v29  ;;  %v6948_v18 = vcombine.high %v935_v13, %v939_v14  ;;  %v592_v27 = vld [vmem:[#allocation5 + $0x50] sm:$0xff] }
 0x219   : > { %v596_v29 = vld [vmem:[#allocation5 + $0x70] sm:$0xff] }
 0x21a   : > { %3023 = vmatpush1.bf16.msra.mxu0 %v6897_v5  ;;  %v943_v5 = vld [vmem:[#allocation5 + $0xb48] sm:$0xff] }
 0x21b   : > { %3146 = vmatpush1.bf16.msra.mxu1 %v6899_v20  ;;  %3024 = vmatprep.subr.bf16.mxu0 %v6906_v21  ;;  %v947_v20 = vld [vmem:[#allocation5 + $0xb68] sm:$0xff]  ;;  %v6945_v21 = vcombine.low %v934_v11, %v938_v12  ;;  %v6606_v12 = vcombine.high %v592_v27, %v596_v29 }
 0x21c   : > { %3147 = vmatprep.subr.bf16.mxu1 %v6908_v23  ;;  %v6947_v23 = vcombine.low %v935_v13, %v939_v14  ;;  %v6956_v28 = vcombine.high %v943_v5, %v947_v20  ;;  %v600_v13 = vld [vmem:[#allocation5 + $0x90] sm:$0xff] }
 0x21d   : > { %v604_v14 = vld [vmem:[#allocation5 + $0xb0] sm:$0xff] }
 0x21e   : > { %3025 = vmatpush1.bf16.msra.mxu0 %v6905_v32  ;;  %v951_v32 = vld [vmem:[#allocation5 + $0xb88] sm:$0xff] }
 0x21f   : > { %3148 = vmatpush1.bf16.msra.mxu1 %v6907_v36  ;;  %3026 = vmatprep.subr.bf16.mxu0 %v6914_v35  ;;  %v955_v36 = vld [vmem:[#allocation5 + $0xba8] sm:$0xff]  ;;  %v6953_v35 = vcombine.low %v942_v19, %v946_v3  ;;  %v6614_v3 = vcombine.high %v600_v13, %v604_v14 }
 0x220   : > { %3149 = vmatprep.subr.bf16.mxu1 %v6916_v39  ;;  %v6955_v39 = vcombine.low %v943_v5, %v947_v20  ;;  %v6964_v45 = vcombine.high %v951_v32, %v955_v36  ;;  %v608_v20 = vld [vmem:[#allocation5 + $0xd0] sm:$0xff] }
 0x222   : > { %3027 = vmatpush1.bf16.msra.mxu0 %v6913_v48  ;;  %v959_v48 = vld [vmem:[#allocation5 + $0xbc8] sm:$0xff] }
 0x223   : > { %3150 = vmatpush1.bf16.msra.mxu1 %v6915_v49  ;;  %3028 = vmatprep.subr.bf16.mxu0 %v6922_v50  ;;  %v963_v49 = vld [vmem:[#allocation5 + $0xbe8] sm:$0xff]  ;;  %v6961_v50 = vcombine.low %v950_v30, %v954_v31 }
 0x224   : > { %3151 = vmatprep.subr.bf16.mxu1 %v6924_v51  ;;  %v6963_v51 = vcombine.low %v951_v32, %v955_v36  ;;  %v6972_v61 = vcombine.high %v959_v48, %v963_v49  ;;  %v616_v36 = vld [vmem:[#allocation5 + $0x110] sm:$0xff] }
 0x226   : > { %3029 = vmatpush1.bf16.msra.mxu0 %v6921_v0  ;;  %v585_v0 = vld [vmem:[#allocation5 + $0x18] sm:$0xff] }
 0x227   : > { %3152 = vmatpush1.bf16.msra.mxu1 %v6923_v1  ;;  %3030 = vmatprep.subr.bf16.mxu0 %v6930_v6  ;;  %v589_v1 = vld [vmem:[#allocation5 + $0x38] sm:$0xff]  ;;  %v6969_v6 = vcombine.low %v958_v46, %v962_v47 }
 0x228   : > { %3153 = vmatprep.subr.bf16.mxu1 %v6932_v7  ;;  %v6971_v7 = vcombine.low %v959_v48, %v963_v49  ;;  %v6600_v26 = vcombine.high %v585_v0, %v589_v1  ;;  %v6599_v11 = vcombine.low %v585_v0, %v589_v1  ;;  %v624_v48 = vld [vmem:[#allocation5 + $0x150] sm:$0xff] }
 0x229   : > { %v628_v49 = vld [vmem:[#allocation5 + $0x170] sm:$0xff] }
 0x22a   : > { %3031 = vmatpush1.bf16.msra.mxu0 %v6929_v33  ;;  %v6597_v33 = vcombine.low %v584_v62, %v588_v63  ;;  %v6638_v62 = vcombine.high %v624_v48, %v628_v49  ;;  %v632_v0 = vld [vmem:[#allocation5 + $0x190] sm:$0xff] }
 0x22b   : > { %3154 = vmatpush1.bf16.msra.mxu1 %v6931_v34  ;;  %3032 = vmatprep.subr.bf16.mxu0 %v6938_v8  ;;  %v593_v34 = vld [vmem:[#allocation5 + $0x58] sm:$0xff]  ;;  %v636_v1 = vld [vmem:[#allocation5 + $0x1b0] sm:$0xff] }
 0x22c   : > { %3155 = vmatprep.subr.bf16.mxu1 %v6940_v10  ;;  %v597_v8 = vld [vmem:[#allocation5 + $0x78] sm:$0xff]  ;;  %v8965_v10 = vpack.c.bf16 %v8941_v54, %v8941_v54 }
 0x22d   : > { %v6607_v19 = vcombine.low %v593_v34, %v597_v8 }
 0x22e   : > { %3033 = vmatpush1.bf16.msra.mxu0 %v6937_v15  ;;  %v6608_v15 = vcombine.high %v593_v34, %v597_v8  ;;  %v644_v34 = vld [vmem:[#allocation5 + $0x1f0] sm:$0xff]  ;;  %v641_v8 = vld [vmem:[#allocation5 + $0x1d8] sm:$0xff] }
 0x22f   : > { %3156 = vmatpush1.bf16.msra.mxu1 %v6939_v16  ;;  %3034 = vmatprep.subr.bf16.mxu0 %v6946_v17  ;;  %v601_v16 = vld [vmem:[#allocation5 + $0x98] sm:$0xff] }
 0x230   : > { %3157 = vmatprep.subr.bf16.mxu1 %v6948_v18  ;;  %v605_v17 = vld [vmem:[#allocation5 + $0xb8] sm:$0xff]  ;;  %v6605_v18 = vcombine.low %v592_v27, %v596_v29  ;;  %v6646_v27 = vcombine.high %v632_v0, %v636_v1 }
 0x231   : > { %v6616_v5 = vcombine.high %v601_v16, %v605_v17  ;;  %v6615_v30 = vcombine.low %v601_v16, %v605_v17  ;;  %v648_v16 = vld [vmem:[#allocation5 + $0x210] sm:$0xff] }
 0x232   : > { %3035 = vmatpush1.bf16.msra.mxu0 %v6945_v21  ;;  %v612_v21 = vld [vmem:[#allocation5 + $0xf0] sm:$0xff] }
 0x233   : > { %3158 = vmatpush1.bf16.msra.mxu1 %v6947_v23  ;;  %3036 = vmatprep.subr.bf16.mxu0 %v6954_v24  ;;  %v609_v23 = vld [vmem:[#allocation5 + $0xd8] sm:$0xff]  ;;  %v6622_v31 = vcombine.high %v608_v20, %v612_v21  ;;  %v652_v17 = vld [vmem:[#allocation5 + $0x230] sm:$0xff] }
 0x234   : > { %3159 = vmatprep.subr.bf16.mxu1 %v6956_v28  ;;  %v613_v24 = vld [vmem:[#allocation5 + $0xf8] sm:$0xff]  ;;  %v6613_v28 = vcombine.low %v600_v13, %v604_v14 }
 0x235   : > { %v6624_v32 = vcombine.high %v609_v23, %v613_v24 }
 0x236   : > { %3037 = vmatpush1.bf16.msra.mxu0 %v6953_v35  ;;  %v620_v35 = vld [vmem:[#allocation5 + $0x130] sm:$0xff] }
 0x237   : > { %3160 = vmatpush1.bf16.msra.mxu1 %v6955_v39  ;;  %3038 = vmatprep.subr.bf16.mxu0 %v6962_v42  ;;  %v617_v39 = vld [vmem:[#allocation5 + $0x118] sm:$0xff]  ;;  %v6630_v46 = vcombine.high %v616_v36, %v620_v35 }
 0x238   : > { %3161 = vmatprep.subr.bf16.mxu1 %v6964_v45  ;;  %v621_v42 = vld [vmem:[#allocation5 + $0x138] sm:$0xff]  ;;  %v6623_v45 = vcombine.low %v609_v23, %v613_v24  ;;  %v656_v23 = vld [vmem:[#allocation5 + $0x250] sm:$0xff] }
 0x239   : > { %v6632_v47 = vcombine.high %v617_v39, %v621_v42  ;;  %v660_v24 = vld [vmem:[#allocation5 + $0x270] sm:$0xff] }
 0x23a   : > { %3039 = vmatpush1.bf16.msra.mxu0 %v6961_v50  ;;  %v625_v50 = vld [vmem:[#allocation5 + $0x158] sm:$0xff] }
 0x23b   : > { %3162 = vmatpush1.bf16.msra.mxu1 %v6963_v51  ;;  %3040 = vmatprep.subr.bf16.mxu0 %v6970_v60  ;;  %v629_v51 = vld [vmem:[#allocation5 + $0x178] sm:$0xff]  ;;  %v6629_v60 = vcombine.low %v616_v36, %v620_v35  ;;  %v6670_v36 = vcombine.high %v656_v23, %v660_v24 }
 0x23c   : > { %3163 = vmatprep.subr.bf16.mxu1 %v6972_v61  ;;  %v6631_v61 = vcombine.low %v617_v39, %v621_v42  ;;  %v6640_v63 = vcombine.high %v625_v50, %v629_v51  ;;  %v664_v39 = vld [vmem:[#allocation5 + $0x290] sm:$0xff] }
 0x23d   : > { %v668_v42 = vld [vmem:[#allocation5 + $0x2b0] sm:$0xff] }
 0x23e   : > { %3041 = vmatpush1.bf16.msra.mxu0 %v6969_v6  ;;  %v633_v6 = vld [vmem:[#allocation5 + $0x198] sm:$0xff] }
 0x23f   : > { %3164 = vmatpush1.bf16.msra.mxu1 %v6971_v7  ;;  %3174 = vmatprep.subr.bf16.mxu0 %v6598_v25  ;;  %v637_v7 = vld [vmem:[#allocation5 + $0x1b8] sm:$0xff]  ;;  %v6637_v25 = vcombine.low %v624_v48, %v628_v49  ;;  %v6678_v48 = vcombine.high %v664_v39, %v668_v42 }
 0x240   : > { %3297 = vmatprep.subr.bf16.mxu1 %v6600_v26  ;;  %v6639_v26 = vcombine.low %v625_v50, %v629_v51  ;;  %v6648_v29 = vcombine.high %v633_v6, %v637_v7  ;;  %v6647_v13 = vcombine.low %v633_v6, %v637_v7  ;;  %v672_v50 = vld [vmem:[#allocation5 + $0x2d0] sm:$0xff] }
 0x241   : > { %3043 = vmatmul.mubr.bf16.vlgmr.msra.gmra.mrb[0].mxu0 %v8965_v10  ;;  %v676_v51 = vld [vmem:[#allocation5 + $0x2f0] sm:$0xff] }
 0x242   : > { %3166 = vmatmul.mubr.bf16.vlgmr.msra.gmra.mrb[0].mxu1 %v8965_v10  ;;  %3175 = vmatpush1.bf16.msra.mxu0 %v6597_v33  ;;  %v640_v33 = vld [vmem:[#allocation5 + $0x1d0] sm:$0xff] }
 0x243   : > { %3206 = vmatprep.mubr.bf16.mxu0 %v8927_v43  ;;  %3298 = vmatpush1.bf16.msra.mxu1 %v6599_v11  ;;  %v645_v11 = vld [vmem:[#allocation5 + $0x1f8] sm:$0xff]  ;;  %v6654_v14 = vcombine.high %v640_v33, %v644_v34  ;;  %v680_v6 = vld [vmem:[#allocation5 + $0x310] sm:$0xff] }
 0x244   : > { %3329 = vmatprep.mubr.bf16.mxu1 %v8927_v43  ;;  %3176 = vmatprep.subr.bf16.mxu0 %v6606_v12  ;;  %v6621_v43 = vcombine.low %v608_v20, %v612_v21  ;;  %v6645_v12 = vcombine.low %v632_v0, %v636_v1  ;;  %v6662_v20 = vcombine.high %v648_v16, %v652_v17  ;;  %v684_v7 = vld [vmem:[#allocation5 + $0x330] sm:$0xff] }
 0x245   : > { %3299 = vmatprep.subr.bf16.mxu1 %v6608_v15  ;;  %v6656_v15 = vcombine.high %v641_v8, %v645_v11  ;;  %v6686_v0 = vcombine.high %v672_v50, %v676_v51 }
 0x246   : > { %3177 = vmatpush1.bf16.msra.mxu0 %v6605_v18  ;;  %v649_v18 = vld [vmem:[#allocation5 + $0x218] sm:$0xff] }
 0x247   : > { %3300 = vmatpush1.bf16.msra.mxu1 %v6607_v19  ;;  %3178 = vmatprep.subr.bf16.mxu0 %v6614_v3  ;;  %v653_v19 = vld [vmem:[#allocation5 + $0x238] sm:$0xff]  ;;  %v6653_v3 = vcombine.low %v640_v33, %v644_v34  ;;  %v6694_v33 = vcombine.high %v680_v6, %v684_v7 }
 0x248   : > { %3301 = vmatprep.subr.bf16.mxu1 %v6616_v5  ;;  %v6655_v5 = vcombine.low %v641_v8, %v645_v11  ;;  %v6664_v21 = vcombine.high %v649_v18, %v653_v19  ;;  %v688_v8 = vld [vmem:[#allocation5 + $0x350] sm:$0xff] }
 0x249   : > { %v692_v11 = vld [vmem:[#allocation5 + $0x370] sm:$0xff] }
 0x24a   : > { %3179 = vmatpush1.bf16.msra.mxu0 %v6613_v28  ;;  %v657_v28 = vld [vmem:[#allocation5 + $0x258] sm:$0xff] }
 0x24b   : > { %3302 = vmatpush1.bf16.msra.mxu1 %v6615_v30  ;;  %3180 = vmatprep.subr.bf16.mxu0 %v6622_v31  ;;  %v661_v30 = vld [vmem:[#allocation5 + $0x278] sm:$0xff]  ;;  %v6661_v31 = vcombine.low %v648_v16, %v652_v17  ;;  %v6702_v16 = vcombine.high %v688_v8, %v692_v11 }
 0x24c   : > { %3303 = vmatprep.subr.bf16.mxu1 %v6624_v32  ;;  %v6663_v32 = vcombine.low %v649_v18, %v653_v19  ;;  %v6672_v35 = vcombine.high %v657_v28, %v661_v30  ;;  %v696_v18 = vld [vmem:[#allocation5 + $0x390] sm:$0xff] }
 0x24d   : > { %v700_v19 = vld [vmem:[#allocation5 + $0x3b0] sm:$0xff] }
 0x24e   : > { %3181 = vmatpush1.bf16.msra.mxu0 %v6621_v43  ;;  %v665_v43 = vld [vmem:[#allocation5 + $0x298] sm:$0xff] }
 0x24f   : > { %3304 = vmatpush1.bf16.msra.mxu1 %v6623_v45  ;;  %3182 = vmatprep.subr.bf16.mxu0 %v6630_v46  ;;  %v669_v45 = vld [vmem:[#allocation5 + $0x2b8] sm:$0xff]  ;;  %v6669_v46 = vcombine.low %v656_v23, %v660_v24  ;;  %v6710_v23 = vcombine.high %v696_v18, %v700_v19 }
 0x250   : > { %3305 = vmatprep.subr.bf16.mxu1 %v6632_v47  ;;  %v6671_v47 = vcombine.low %v657_v28, %v661_v30  ;;  %v6680_v49 = vcombine.high %v665_v43, %v669_v45  ;;  %v704_v28 = vld [vmem:[#allocation5 + $0x3d0] sm:$0xff] }
 0x251   : > { %v708_v30 = vld [vmem:[#allocation5 + $0x3f0] sm:$0xff] }
 0x252   : > { %3183 = vmatpush1.bf16.msra.mxu0 %v6629_v60  ;;  %v673_v60 = vld [vmem:[#allocation5 + $0x2d8] sm:$0xff] }
 0x253   : > { %3306 = vmatpush1.bf16.msra.mxu1 %v6631_v61  ;;  %3184 = vmatprep.subr.bf16.mxu0 %v6638_v62  ;;  %v677_v61 = vld [vmem:[#allocation5 + $0x2f8] sm:$0xff]  ;;  %v6677_v62 = vcombine.low %v664_v39, %v668_v42  ;;  %v6718_v39 = vcombine.high %v704_v28, %v708_v30 }
 0x254   : > { %3307 = vmatprep.subr.bf16.mxu1 %v6640_v63  ;;  %v6679_v63 = vcombine.low %v665_v43, %v669_v45  ;;  %v6688_v1 = vcombine.high %v673_v60, %v677_v61  ;;  %v712_v43 = vld [vmem:[#allocation5 + $0x410] sm:$0xff] }
 0x255   : > { %v716_v45 = vld [vmem:[#allocation5 + $0x430] sm:$0xff] }
 0x256   : > { %3185 = vmatpush1.bf16.msra.mxu0 %v6637_v25  ;;  %v681_v25 = vld [vmem:[#allocation5 + $0x318] sm:$0xff] }
 0x257   : > { %3308 = vmatpush1.bf16.msra.mxu1 %v6639_v26  ;;  %3186 = vmatprep.subr.bf16.mxu0 %v6646_v27  ;;  %v685_v26 = vld [vmem:[#allocation5 + $0x338] sm:$0xff]  ;;  %v6685_v27 = vcombine.low %v672_v50, %v676_v51  ;;  %v6726_v50 = vcombine.high %v712_v43, %v716_v45 }
 0x258   : > { %3309 = vmatprep.subr.bf16.mxu1 %v6648_v29  ;;  %v6687_v29 = vcombine.low %v673_v60, %v677_v61  ;;  %v6696_v34 = vcombine.high %v681_v25, %v685_v26  ;;  %v720_v60 = vld [vmem:[#allocation5 + $0x450] sm:$0xff] }
 0x259   : > { %v724_v61 = vld [vmem:[#allocation5 + $0x470] sm:$0xff] }
 0x25a   : > { %3187 = vmatpush1.bf16.msra.mxu0 %v6645_v12  ;;  %v689_v12 = vld [vmem:[#allocation5 + $0x358] sm:$0xff] }
 0x25b   : > { %3310 = vmatpush1.bf16.msra.mxu1 %v6647_v13  ;;  %3188 = vmatprep.subr.bf16.mxu0 %v6654_v14  ;;  %v693_v13 = vld [vmem:[#allocation5 + $0x378] sm:$0xff]  ;;  %v6693_v14 = vcombine.low %v680_v6, %v684_v7  ;;  %v6734_v6 = vcombine.high %v720_v60, %v724_v61  ;;  %v728_v7 = vld [vmem:[#allocation5 + $0x490] sm:$0xff] }
 0x25c   : > { %3311 = vmatprep.subr.bf16.mxu1 %v6656_v15  ;;  %v6695_v15 = vcombine.low %v681_v25, %v685_v26  ;;  %v6704_v17 = vcombine.high %v689_v12, %v693_v13  ;;  %v732_v25 = vld [vmem:[#allocation5 + $0x4b0] sm:$0xff] }
 0x25e   : > { %3189 = vmatpush1.bf16.msra.mxu0 %v6653_v3  ;;  %v697_v3 = vld [vmem:[#allocation5 + $0x398] sm:$0xff] }
 0x25f   : > { %3312 = vmatpush1.bf16.msra.mxu1 %v6655_v5  ;;  %3190 = vmatprep.subr.bf16.mxu0 %v6662_v20  ;;  %v701_v5 = vld [vmem:[#allocation5 + $0x3b8] sm:$0xff]  ;;  %v6701_v20 = vcombine.low %v688_v8, %v692_v11  ;;  %v6742_v8 = vcombine.high %v728_v7, %v732_v25 }
 0x260   : > { %3313 = vmatprep.subr.bf16.mxu1 %v6664_v21  ;;  %v6703_v21 = vcombine.low %v689_v12, %v693_v13  ;;  %v6712_v24 = vcombine.high %v697_v3, %v701_v5  ;;  %v736_v12 = vld [vmem:[#allocation5 + $0x4d0] sm:$0xff] }
 0x261   : > { %v740_v13 = vld [vmem:[#allocation5 + $0x4f0] sm:$0xff] }
 0x262   : > { %3191 = vmatpush1.bf16.msra.mxu0 %v6661_v31  ;;  %v705_v31 = vld [vmem:[#allocation5 + $0x3d8] sm:$0xff] }
 0x263   : > { %3314 = vmatpush1.bf16.msra.mxu1 %v6663_v32  ;;  %3192 = vmatprep.subr.bf16.mxu0 %v6670_v36  ;;  %v709_v32 = vld [vmem:[#allocation5 + $0x3f8] sm:$0xff]  ;;  %v6709_v36 = vcombine.low %v696_v18, %v700_v19  ;;  %v744_v19 = vld [vmem:[#allocation5 + $0x510] sm:$0xff] }
 0x264   : > { %3315 = vmatprep.subr.bf16.mxu1 %v6672_v35  ;;  %v6711_v35 = vcombine.low %v697_v3, %v701_v5  ;;  %v6720_v42 = vcombine.high %v705_v31, %v709_v32  ;;  %v748_v3 = vld [vmem:[#allocation5 + $0x530] sm:$0xff]  ;;  %v745_v5 = vld [vmem:[#allocation5 + $0x518] sm:$0xff] }
 0x266   : > { %3193 = vmatpush1.bf16.msra.mxu0 %v6669_v46  ;;  %v713_v46 = vld [vmem:[#allocation5 + $0x418] sm:$0xff] }
 0x267   : > { %3316 = vmatpush1.bf16.msra.mxu1 %v6671_v47  ;;  %3194 = vmatprep.subr.bf16.mxu0 %v6678_v48  ;;  %v717_v47 = vld [vmem:[#allocation5 + $0x438] sm:$0xff]  ;;  %v6717_v48 = vcombine.low %v704_v28, %v708_v30  ;;  %v752_v28 = vld [vmem:[#allocation5 + $0x550] sm:$0xff] }
 0x268   : > { %3317 = vmatprep.subr.bf16.mxu1 %v6680_v49  ;;  %v6719_v49 = vcombine.low %v705_v31, %v709_v32  ;;  %v6728_v51 = vcombine.high %v713_v46, %v717_v47  ;;  %v756_v30 = vld [vmem:[#allocation5 + $0x570] sm:$0xff]  ;;  %v753_v31 = vld [vmem:[#allocation5 + $0x558] sm:$0xff] }
 0x269   : > { %v757_v32 = vld [vmem:[#allocation5 + $0x578] sm:$0xff] }
 0x26a   : > { %3195 = vmatpush1.bf16.msra.mxu0 %v6677_v62  ;;  %v6725_v62 = vcombine.low %v712_v43, %v716_v45  ;;  %v760_v43 = vld [vmem:[#allocation5 + $0x590] sm:$0xff] }
 0x26b   : > { %3318 = vmatpush1.bf16.msra.mxu1 %v6679_v63  ;;  %3196 = vmatprep.subr.bf16.mxu0 %v6686_v0  ;;  %v721_v63 = vld [vmem:[#allocation5 + $0x458] sm:$0xff]  ;;  %v764_v45 = vld [vmem:[#allocation5 + $0x5b0] sm:$0xff] }
 0x26c   : > { %3319 = vmatprep.subr.bf16.mxu1 %v6688_v1  ;;  %v725_v0 = vld [vmem:[#allocation5 + $0x478] sm:$0xff]  ;;  %v6727_v1 = vcombine.low %v713_v46, %v717_v47 }
 0x26d   : > { %v6736_v26 = vcombine.high %v721_v63, %v725_v0  ;;  %v761_v46 = vld [vmem:[#allocation5 + $0x598] sm:$0xff] }
 0x26e   : > { %3197 = vmatpush1.bf16.msra.mxu0 %v6685_v27  ;;  %v729_v27 = vld [vmem:[#allocation5 + $0x498] sm:$0xff] }
 0x26f   : > { %3320 = vmatpush1.bf16.msra.mxu1 %v6687_v29  ;;  %3198 = vmatprep.subr.bf16.mxu0 %v6694_v33  ;;  %v733_v29 = vld [vmem:[#allocation5 + $0x4b8] sm:$0xff]  ;;  %v6733_v33 = vcombine.low %v720_v60, %v724_v61  ;;  %v768_v60 = vld [vmem:[#allocation5 + $0x5d0] sm:$0xff] }
 0x270   : > { %3321 = vmatprep.subr.bf16.mxu1 %v6696_v34  ;;  %v6735_v34 = vcombine.low %v721_v63, %v725_v0  ;;  %v6744_v11 = vcombine.high %v729_v27, %v733_v29  ;;  %v765_v47 = vld [vmem:[#allocation5 + $0x5b8] sm:$0xff]  ;;  %v772_v61 = vld [vmem:[#allocation5 + $0x5f0] sm:$0xff]  ;;  %v6773_v0 = vcombine.low %v760_v43, %v764_v45 }
 0x271   : > { %v773_v63 = vld [vmem:[#allocation5 + $0x5f8] sm:$0xff] }
 0x272   : > { %3199 = vmatpush1.bf16.msra.mxu0 %v6693_v14  ;;  %v737_v14 = vld [vmem:[#allocation5 + $0x4d8] sm:$0xff] }
 0x273   : > { %3322 = vmatpush1.bf16.msra.mxu1 %v6695_v15  ;;  %3200 = vmatprep.subr.bf16.mxu0 %v6702_v16  ;;  %v741_v15 = vld [vmem:[#allocation5 + $0x4f8] sm:$0xff]  ;;  %v6741_v16 = vcombine.low %v728_v7, %v732_v25  ;;  %v776_v25 = vld [vmem:[#allocation5 + $0x610] sm:$0xff] }
 0x274   : > { %3323 = vmatprep.subr.bf16.mxu1 %v6704_v17  ;;  %v6750_v17 = vcombine.high %v736_v12, %v740_v13  ;;  %v6752_v18 = vcombine.high %v737_v14, %v741_v15 }
 0x276   : > { %3201 = vmatpush1.bf16.msra.mxu0 %v6701_v20  ;;  %v749_v20 = vld [vmem:[#allocation5 + $0x538] sm:$0xff] }
 0x277   : > { %3324 = vmatpush1.bf16.msra.mxu1 %v6703_v21  ;;  %3202 = vmatprep.subr.bf16.mxu0 %v6710_v23  ;;  %v6751_v21 = vcombine.low %v737_v14, %v741_v15  ;;  %v6758_v23 = vcombine.high %v744_v19, %v748_v3  ;;  %v785_v14 = vld [vmem:[#allocation5 + $0x658] sm:$0xff] }
 0x278   : > { %3325 = vmatprep.subr.bf16.mxu1 %v6712_v24  ;;  %v6760_v24 = vcombine.high %v745_v5, %v749_v20  ;;  %v789_v15 = vld [vmem:[#allocation5 + $0x678] sm:$0xff] }
 0x27a   : > { %3203 = vmatpush1.bf16.msra.mxu0 %v6709_v36  ;;  %v6757_v36 = vcombine.low %v744_v19, %v748_v3  ;;  %v792_v19 = vld [vmem:[#allocation5 + $0x690] sm:$0xff] }
 0x27b   : > { %3326 = vmatpush1.bf16.msra.mxu1 %v6711_v35  ;;  %3204 = vmatprep.subr.bf16.mxu0 %v6718_v39  ;;  %v6759_v35 = vcombine.low %v745_v5, %v749_v20  ;;  %v6766_v39 = vcombine.high %v752_v28, %v756_v30  ;;  %v796_v3 = vld [vmem:[#allocation5 + $0x6b0] sm:$0xff]  ;;  %v793_v5 = vld [vmem:[#allocation5 + $0x698] sm:$0xff] }
 0x27c   : > { %3327 = vmatprep.subr.bf16.mxu1 %v6720_v42  ;;  %v6768_v42 = vcombine.high %v753_v31, %v757_v32  ;;  %v797_v20 = vld [vmem:[#allocation5 + $0x6b8] sm:$0xff] }
 0x27e   : > { %3205 = vmatpush1.bf16.msra.mxu0 %v6717_v48  ;;  %v6765_v48 = vcombine.low %v752_v28, %v756_v30  ;;  %v800_v28 = vld [vmem:[#allocation5 + $0x6d0] sm:$0xff] }
 0x27f   : > { %3328 = vmatpush1.bf16.msra.mxu1 %v6719_v49  ;;  %3215 = vmatprep.subr.bf16.mxu0 %v6726_v50  ;;  %v6767_v49 = vcombine.low %v753_v31, %v757_v32  ;;  %v6774_v50 = vcombine.high %v760_v43, %v764_v45  ;;  %v804_v30 = vld [vmem:[#allocation5 + $0x6f0] sm:$0xff]  ;;  %v801_v31 = vld [vmem:[#allocation5 + $0x6d8] sm:$0xff] }
 0x280   : > { %3338 = vmatprep.subr.bf16.mxu1 %v6728_v51  ;;  %v6776_v51 = vcombine.high %v761_v46, %v765_v47  ;;  %v805_v32 = vld [vmem:[#allocation5 + $0x6f8] sm:$0xff]  ;;  %v808_v43 = vld [vmem:[#allocation5 + $0x710] sm:$0xff] }
 0x281   : > { %3207 = vmatmul.mubr.bf16.vlgmr.msra.gmra.mrb[4].mxu0 %v8931_v44  ;;  %v812_v45 = vld [vmem:[#allocation5 + $0x730] sm:$0xff] }
 0x282   : > { %3330 = vmatmul.mubr.bf16.vlgmr.msra.gmra.mrb[4].mxu1 %v8931_v44  ;;  %3216 = vmatpush1.bf16.msra.mxu0 %v6725_v62  ;;  %v6743_v44 = vcombine.low %v729_v27, %v733_v29  ;;  %v769_v62 = vld [vmem:[#allocation5 + $0x5d8] sm:$0xff] }
 0x283   : > { %3247 = vmatprep.mubr.bf16.mxu0 %v8939_v52  ;;  %3339 = vmatpush1.bf16.msra.mxu1 %v6727_v1  ;;  %v6775_v1 = vcombine.low %v761_v46, %v765_v47  ;;  %v6784_v7 = vcombine.high %v769_v62, %v773_v63  ;;  %v777_v27 = vld [vmem:[#allocation5 + $0x618] sm:$0xff] }
 0x284   : > { %3370 = vmatprep.mubr.bf16.mxu1 %v8939_v52  ;;  %3217 = vmatprep.subr.bf16.mxu0 %v6734_v6  ;;  %v6749_v52 = vcombine.low %v736_v12, %v740_v13  ;;  %v6782_v6 = vcombine.high %v768_v60, %v772_v61  ;;  %v781_v29 = vld [vmem:[#allocation5 + $0x638] sm:$0xff]  ;;  %v784_v12 = vld [vmem:[#allocation5 + $0x650] sm:$0xff] }
 0x285   : > { %3340 = vmatprep.subr.bf16.mxu1 %v6736_v26  ;;  %v780_v26 = vld [vmem:[#allocation5 + $0x630] sm:$0xff]  ;;  %v809_v46 = vld [vmem:[#allocation5 + $0x718] sm:$0xff] }
 0x286   : > { %3218 = vmatpush1.bf16.msra.mxu0 %v6733_v33  ;;  %v6781_v33 = vcombine.low %v768_v60, %v772_v61  ;;  %v788_v13 = vld [vmem:[#allocation5 + $0x670] sm:$0xff]  ;;  %v813_v47 = vld [vmem:[#allocation5 + $0x738] sm:$0xff] }
 0x287   : > { %3341 = vmatpush1.bf16.msra.mxu1 %v6735_v34  ;;  %3219 = vmatprep.subr.bf16.mxu0 %v6742_v8  ;;  %v6783_v34 = vcombine.low %v769_v62, %v773_v63  ;;  %v6790_v8 = vcombine.high %v776_v25, %v780_v26  ;;  %v816_v60 = vld [vmem:[#allocation5 + $0x750] sm:$0xff]  ;;  %v817_v62 = vld [vmem:[#allocation5 + $0x758] sm:$0xff] }
 0x288   : > { %3342 = vmatprep.subr.bf16.mxu1 %v6744_v11  ;;  %v6792_v11 = vcombine.high %v777_v27, %v781_v29  ;;  %v820_v61 = vld [vmem:[#allocation5 + $0x770] sm:$0xff]  ;;  %v821_v63 = vld [vmem:[#allocation5 + $0x778] sm:$0xff] }
 0x28a   : > { %3220 = vmatpush1.bf16.msra.mxu0 %v6741_v16  ;;  %v6789_v16 = vcombine.low %v776_v25, %v780_v26  ;;  %v824_v25 = vld [vmem:[#allocation5 + $0x790] sm:$0xff] }
 0x28b   : > { %3343 = vmatpush1.bf16.msra.mxu1 %v6743_v44  ;;  %3221 = vmatprep.subr.bf16.mxu0 %v6750_v17  ;;  %v6791_v44 = vcombine.low %v777_v27, %v781_v29  ;;  %v6798_v17 = vcombine.high %v784_v12, %v788_v13  ;;  %v828_v26 = vld [vmem:[#allocation5 + $0x7b0] sm:$0xff]  ;;  %v825_v27 = vld [vmem:[#allocation5 + $0x798] sm:$0xff] }
 0x28c   : > { %3344 = vmatprep.subr.bf16.mxu1 %v6752_v18  ;;  %v6800_v18 = vcombine.high %v785_v14, %v789_v15  ;;  %v829_v29 = vld [vmem:[#allocation5 + $0x7b8] sm:$0xff] }
 0x28e   : > { %3222 = vmatpush1.bf16.msra.mxu0 %v6749_v52  ;;  %v6797_v52 = vcombine.low %v784_v12, %v788_v13  ;;  %v832_v12 = vld [vmem:[#allocation5 + $0x7d0] sm:$0xff] }
 0x28f   : > { %3345 = vmatpush1.bf16.msra.mxu1 %v6751_v21  ;;  %3223 = vmatprep.subr.bf16.mxu0 %v6758_v23  ;;  %v6799_v21 = vcombine.low %v785_v14, %v789_v15  ;;  %v6806_v23 = vcombine.high %v792_v19, %v796_v3  ;;  %v836_v13 = vld [vmem:[#allocation5 + $0x7f0] sm:$0xff]  ;;  %v833_v14 = vld [vmem:[#allocation5 + $0x7d8] sm:$0xff] }
 0x290   : > { %3346 = vmatprep.subr.bf16.mxu1 %v6760_v24  ;;  %v6808_v24 = vcombine.high %v793_v5, %v797_v20  ;;  %v837_v15 = vld [vmem:[#allocation5 + $0x7f8] sm:$0xff] }
 0x292   : > { %3224 = vmatpush1.bf16.msra.mxu0 %v6757_v36  ;;  %v6805_v36 = vcombine.low %v792_v19, %v796_v3  ;;  %v840_v19 = vld [vmem:[#allocation5 + $0x810] sm:$0xff] }
 0x293   : > { %3347 = vmatpush1.bf16.msra.mxu1 %v6759_v35  ;;  %3225 = vmatprep.subr.bf16.mxu0 %v6766_v39  ;;  %v6807_v35 = vcombine.low %v793_v5, %v797_v20  ;;  %v6814_v39 = vcombine.high %v800_v28, %v804_v30  ;;  %v844_v3 = vld [vmem:[#allocation5 + $0x830] sm:$0xff]  ;;  %v841_v5 = vld [vmem:[#allocation5 + $0x818] sm:$0xff] }
 0x294   : > { %3348 = vmatprep.subr.bf16.mxu1 %v6768_v42  ;;  %v6816_v42 = vcombine.high %v801_v31, %v805_v32  ;;  %v845_v20 = vld [vmem:[#allocation5 + $0x838] sm:$0xff] }
 0x296   : > { %3226 = vmatpush1.bf16.msra.mxu0 %v6765_v48  ;;  %v6813_v48 = vcombine.low %v800_v28, %v804_v30  ;;  %v848_v28 = vld [vmem:[#allocation5 + $0x850] sm:$0xff] }
 0x297   : > { %3349 = vmatpush1.bf16.msra.mxu1 %v6767_v49  ;;  %3227 = vmatprep.subr.bf16.mxu0 %v6774_v50  ;;  %v6815_v49 = vcombine.low %v801_v31, %v805_v32  ;;  %v6822_v50 = vcombine.high %v808_v43, %v812_v45  ;;  %v852_v30 = vld [vmem:[#allocation5 + $0x870] sm:$0xff]  ;;  %v6853_v31 = vcombine.low %v840_v19, %v844_v3  ;;  %v849_v32 = vld [vmem:[#allocation5 + $0x858] sm:$0xff] }
 0x298   : > { %3350 = vmatprep.subr.bf16.mxu1 %v6776_v51  ;;  %v6824_v51 = vcombine.high %v809_v46, %v813_v47 }
 0x29a   : > { %3228 = vmatpush1.bf16.msra.mxu0 %v6773_v0  ;;  %v6821_v0 = vcombine.low %v808_v43, %v812_v45  ;;  %v860_v43 = vld [vmem:[#allocation5 + $0x8b0] sm:$0xff] }
 0x29b   : > { %3351 = vmatpush1.bf16.msra.mxu1 %v6775_v1  ;;  %3229 = vmatprep.subr.bf16.mxu0 %v6782_v6  ;;  %v6823_v1 = vcombine.low %v809_v46, %v813_v47  ;;  %v6830_v6 = vcombine.high %v816_v60, %v820_v61  ;;  %v857_v46 = vld [vmem:[#allocation5 + $0x898] sm:$0xff] }
 0x29c   : > { %3352 = vmatprep.subr.bf16.mxu1 %v6784_v7  ;;  %v6832_v7 = vcombine.high %v817_v62, %v821_v63  ;;  %v861_v47 = vld [vmem:[#allocation5 + $0x8b8] sm:$0xff] }
 0x29e   : > { %3230 = vmatpush1.bf16.msra.mxu0 %v6781_v33  ;;  %v6829_v33 = vcombine.low %v816_v60, %v820_v61  ;;  %v864_v60 = vld [vmem:[#allocation5 + $0x8d0] sm:$0xff] }
 0x29f   : > { %3353 = vmatpush1.bf16.msra.mxu1 %v6783_v34  ;;  %3231 = vmatprep.subr.bf16.mxu0 %v6790_v8  ;;  %v6831_v34 = vcombine.low %v817_v62, %v821_v63  ;;  %v6838_v8 = vcombine.high %v824_v25, %v828_v26  ;;  %v868_v61 = vld [vmem:[#allocation5 + $0x8f0] sm:$0xff]  ;;  %v865_v62 = vld [vmem:[#allocation5 + $0x8d8] sm:$0xff] }
 0x2a0   : > { %3354 = vmatprep.subr.bf16.mxu1 %v6792_v11  ;;  %v6840_v11 = vcombine.high %v825_v27, %v829_v29  ;;  %v869_v63 = vld [vmem:[#allocation5 + $0x8f8] sm:$0xff] }
 0x2a2   : > { %3232 = vmatpush1.bf16.msra.mxu0 %v6789_v16  ;;  %v6837_v16 = vcombine.low %v824_v25, %v828_v26  ;;  %v876_v25 = vld [vmem:[#allocation5 + $0x930] sm:$0xff]  ;;  %v873_v26 = vld [vmem:[#allocation5 + $0x918] sm:$0xff] }
 0x2a3   : > { %3355 = vmatpush1.bf16.msra.mxu1 %v6791_v44  ;;  %3233 = vmatprep.subr.bf16.mxu0 %v6798_v17  ;;  %v6839_v44 = vcombine.low %v825_v27, %v829_v29  ;;  %v6846_v17 = vcombine.high %v832_v12, %v836_v13  ;;  %v877_v27 = vld [vmem:[#allocation5 + $0x938] sm:$0xff]  ;;  %v6879_v29 = vcombine.low %v865_v62, %v869_v63 }
 0x2a4   : > { %3356 = vmatprep.subr.bf16.mxu1 %v6800_v18  ;;  %v6848_v18 = vcombine.high %v833_v14, %v837_v15 }
 0x2a6   : > { %3234 = vmatpush1.bf16.msra.mxu0 %v6797_v52  ;;  %v6845_v52 = vcombine.low %v832_v12, %v836_v13  ;;  %v881_v12 = vld [vmem:[#allocation5 + $0x958] sm:$0xff] }
 0x2a7   : > { %3357 = vmatpush1.bf16.msra.mxu1 %v6799_v21  ;;  %3235 = vmatprep.subr.bf16.mxu0 %v6806_v23  ;;  %v6847_v21 = vcombine.low %v833_v14, %v837_v15  ;;  %v6854_v23 = vcombine.high %v840_v19, %v844_v3  ;;  %v885_v13 = vld [vmem:[#allocation5 + $0x978] sm:$0xff]  ;;  %v6887_v15 = vcombine.low %v873_v26, %v877_v27 }
 0x2a8   : > { %3358 = vmatprep.subr.bf16.mxu1 %v6808_v24  ;;  %v6856_v24 = vcombine.high %v841_v5, %v845_v20  ;;  %v889_v19 = vld [vmem:[#allocation5 + $0x998] sm:$0xff] }
 0x2a9   : > { %v893_v3 = vld [vmem:[#allocation5 + $0x9b8] sm:$0xff] }
 0x2aa   : > { %3236 = vmatpush1.bf16.msra.mxu0 %v6805_v36  ;;  %v853_v36 = vld [vmem:[#allocation5 + $0x878] sm:$0xff] }
 0x2ab   : > { %3359 = vmatpush1.bf16.msra.mxu1 %v6807_v35  ;;  %3237 = vmatprep.subr.bf16.mxu0 %v6814_v39  ;;  %v6855_v35 = vcombine.low %v841_v5, %v845_v20  ;;  %v6862_v39 = vcombine.high %v848_v28, %v852_v30  ;;  %v6864_v45 = vcombine.high %v849_v32, %v853_v36 }
 0x2ac   : > { %3360 = vmatprep.subr.bf16.mxu1 %v6816_v42  ;;  %v856_v42 = vld [vmem:[#allocation5 + $0x890] sm:$0xff]  ;;  %v6895_v20 = vcombine.low %v881_v12, %v885_v13 }
 0x2ae   : > { %3238 = vmatpush1.bf16.msra.mxu0 %v6813_v48  ;;  %v6861_v48 = vcombine.low %v848_v28, %v852_v30  ;;  %v897_v28 = vld [vmem:[#allocation5 + $0x9d8] sm:$0xff] }
 0x2af   : > { %3361 = vmatpush1.bf16.msra.mxu1 %v6815_v49  ;;  %3239 = vmatprep.subr.bf16.mxu0 %v6822_v50  ;;  %v6863_v49 = vcombine.low %v849_v32, %v853_v36  ;;  %v6870_v50 = vcombine.high %v856_v42, %v860_v43  ;;  %v901_v30 = vld [vmem:[#allocation5 + $0x9f8] sm:$0xff]  ;;  %v6903_v32 = vcombine.low %v889_v19, %v893_v3 }
 0x2b0   : > { %3362 = vmatprep.subr.bf16.mxu1 %v6824_v51  ;;  %v6872_v51 = vcombine.high %v857_v46, %v861_v47 }
 0x2b2   : > { %3240 = vmatpush1.bf16.msra.mxu0 %v6821_v0  ;;  %v6869_v0 = vcombine.low %v856_v42, %v860_v43  ;;  %v908_v42 = vld [vmem:[#allocation5 + $0xa30] sm:$0xff]  ;;  %v905_v43 = vld [vmem:[#allocation5 + $0xa18] sm:$0xff] }
 0x2b3   : > { %3363 = vmatpush1.bf16.msra.mxu1 %v6823_v1  ;;  %3241 = vmatprep.subr.bf16.mxu0 %v6830_v6  ;;  %v6878_v1 = vcombine.high %v864_v60, %v868_v61  ;;  %v6880_v6 = vcombine.high %v865_v62, %v869_v63 }
 0x2b4   : > { %3364 = vmatprep.subr.bf16.mxu1 %v6832_v7  ;;  %v872_v7 = vld [vmem:[#allocation5 + $0x910] sm:$0xff] }
 0x2b5   : > { %v6885_v14 = vcombine.low %v872_v7, %v876_v25 }
 0x2b6   : > { %3242 = vmatpush1.bf16.msra.mxu0 %v6829_v33  ;;  %v6886_v33 = vcombine.high %v872_v7, %v876_v25  ;;  %v921_v7 = vld [vmem:[#allocation5 + $0xa98] sm:$0xff] }
 0x2b7   : > { %3365 = vmatpush1.bf16.msra.mxu1 %v6831_v34  ;;  %3243 = vmatprep.subr.bf16.mxu0 %v6838_v8  ;;  %v6888_v34 = vcombine.high %v873_v26, %v877_v27  ;;  %v880_v8 = vld [vmem:[#allocation5 + $0x950] sm:$0xff]  ;;  %v925_v25 = vld [vmem:[#allocation5 + $0xab8] sm:$0xff] }
 0x2b8   : > { %3366 = vmatprep.subr.bf16.mxu1 %v6840_v11  ;;  %v884_v11 = vld [vmem:[#allocation5 + $0x970] sm:$0xff] }
 0x2b9   : > { %v6893_v5 = vcombine.low %v880_v8, %v884_v11 }
 0x2ba   : > { %3244 = vmatpush1.bf16.msra.mxu0 %v6837_v16  ;;  %v6894_v16 = vcombine.high %v880_v8, %v884_v11  ;;  %v929_v8 = vld [vmem:[#allocation5 + $0xad8] sm:$0xff] }
 0x2bb   : > { %3367 = vmatpush1.bf16.msra.mxu1 %v6839_v44  ;;  %3245 = vmatprep.subr.bf16.mxu0 %v6846_v17  ;;  %v6896_v44 = vcombine.high %v881_v12, %v885_v13  ;;  %v888_v17 = vld [vmem:[#allocation5 + $0x990] sm:$0xff]  ;;  %v933_v11 = vld [vmem:[#allocation5 + $0xaf8] sm:$0xff]  ;;  %v6935_v13 = vcombine.low %v921_v7, %v925_v25 }
 0x2bc   : > { %3368 = vmatprep.subr.bf16.mxu1 %v6848_v18  ;;  %v892_v18 = vld [vmem:[#allocation5 + $0x9b0] sm:$0xff] }
 0x2be   : > { %3246 = vmatpush1.bf16.msra.mxu0 %v6845_v52  ;;  %v6902_v52 = vcombine.high %v888_v17, %v892_v18 }
 0x2bf   : > { %3369 = vmatpush1.bf16.msra.mxu1 %v6847_v21  ;;  %3256 = vmatprep.subr.bf16.mxu0 %v6854_v23  ;;  %v6904_v21 = vcombine.high %v889_v19, %v893_v3  ;;  %v896_v23 = vld [vmem:[#allocation5 + $0x9d0] sm:$0xff]  ;;  %v6943_v3 = vcombine.low %v929_v8, %v933_v11 }
 0x2c0   : > { %3379 = vmatprep.subr.bf16.mxu1 %v6856_v24  ;;  %v900_v24 = vld [vmem:[#allocation5 + $0x9f0] sm:$0xff] }
 0x2c1   : > { %3248 = vmatmul.mubr.bf16.vlgmr.msra.gmra.mrb[4].mxu0 %v8953_v4  ;;  %v6910_v36 = vcombine.high %v896_v23, %v900_v24 }
 0x2c2   : > { %3371 = vmatmul.mubr.bf16.vlgmr.msra.gmra.mrb[4].mxu1 %v8953_v4  ;;  %3257 = vmatpush1.bf16.msra.mxu0 %v6853_v31  ;;  %v6871_v4 = vcombine.low %v857_v46, %v861_v47  ;;  %v6901_v31 = vcombine.low %v888_v17, %v892_v18  ;;  %v6909_v46 = vcombine.low %v896_v23, %v900_v24  ;;  %v937_v17 = vld [vmem:[#allocation5 + $0xb18] sm:$0xff] }
 0x2c3   : > { %3288 = vmatprep.mubr.bf16.mxu0 %v8957_v9  ;;  %3380 = vmatpush1.bf16.msra.mxu1 %v6855_v35  ;;  %v6912_v35 = vcombine.high %v897_v28, %v901_v30  ;;  %v6911_v47 = vcombine.low %v897_v28, %v901_v30  ;;  %v941_v18 = vld [vmem:[#allocation5 + $0xb38] sm:$0xff] }
 0x2c4   : > { %3411 = vmatprep.mubr.bf16.mxu1 %v8957_v9  ;;  %3258 = vmatprep.subr.bf16.mxu0 %v6862_v39  ;;  %v6877_v9 = vcombine.low %v864_v60, %v868_v61  ;;  %v904_v39 = vld [vmem:[#allocation5 + $0xa10] sm:$0xff]  ;;  %v913_v60 = vld [vmem:[#allocation5 + $0xa58] sm:$0xff]  ;;  %v6951_v30 = vcombine.low %v937_v17, %v941_v18 }
 0x2c5   : > { %3381 = vmatprep.subr.bf16.mxu1 %v6864_v45  ;;  %v909_v45 = vld [vmem:[#allocation5 + $0xa38] sm:$0xff]  ;;  %v6917_v62 = vcombine.low %v904_v39, %v908_v42 }
 0x2c6   : > { %3259 = vmatpush1.bf16.msra.mxu0 %v6861_v48  ;;  %v6918_v48 = vcombine.high %v904_v39, %v908_v42  ;;  %v917_v61 = vld [vmem:[#allocation5 + $0xa78] sm:$0xff]  ;;  %v6919_v63 = vcombine.low %v905_v43, %v909_v45 }
 0x2c7   : > { %3382 = vmatpush1.bf16.msra.mxu1 %v6863_v49  ;;  %3260 = vmatprep.subr.bf16.mxu0 %v6870_v50  ;;  %v6920_v49 = vcombine.high %v905_v43, %v909_v45  ;;  %v912_v50 = vld [vmem:[#allocation5 + $0xa50] sm:$0xff]  ;;  %v6927_v27 = vcombine.low %v913_v60, %v917_v61  ;;  %v945_v23 = vld [vmem:[#allocation5 + $0xb58] sm:$0xff] }
 0x2c8   : > { %3383 = vmatprep.subr.bf16.mxu1 %v6872_v51  ;;  %v916_v51 = vld [vmem:[#allocation5 + $0xa70] sm:$0xff]  ;;  %v949_v24 = vld [vmem:[#allocation5 + $0xb78] sm:$0xff] }
 0x2c9   : > { %v6925_v26 = vcombine.low %v912_v50, %v916_v51  ;;  %v953_v39 = vld [vmem:[#allocation5 + $0xb98] sm:$0xff]  ;;  %v6959_v45 = vcombine.low %v945_v23, %v949_v24 }
 0x2ca   : > { %3261 = vmatpush1.bf16.msra.mxu0 %v6869_v0  ;;  %v6926_v0 = vcombine.high %v912_v50, %v916_v51  ;;  %v957_v42 = vld [vmem:[#allocation5 + $0xbb8] sm:$0xff] }
 0x2cb   : > { %3384 = vmatpush1.bf16.msra.mxu1 %v6871_v4  ;;  %3262 = vmatprep.subr.bf16.mxu0 %v6878_v1  ;;  %v6928_v4 = vcombine.high %v913_v60, %v917_v61  ;;  %v920_v1 = vld [vmem:[#allocation5 + $0xa90] sm:$0xff]  ;;  %v961_v50 = vld [vmem:[#allocation5 + $0xbd8] sm:$0xff]  ;;  %v6967_v61 = vcombine.low %v953_v39, %v957_v42 }
 0x2cc   : > { %3385 = vmatprep.subr.bf16.mxu1 %v6880_v6  ;;  %v924_v6 = vld [vmem:[#allocation5 + $0xab0] sm:$0xff]  ;;  %v965_v51 = vld [vmem:[#allocation5 + $0xbf8] sm:$0xff] }
 0x2cd   : > { %v6933_v12 = vcombine.low %v920_v1, %v924_v6 }
 0x2ce   : > { %3263 = vmatpush1.bf16.msra.mxu0 %v6877_v9  ;;  %v6934_v9 = vcombine.high %v920_v1, %v924_v6  ;;  %v7547_v1 = vld [vmem:[#allocation8 + $0x4] ss:$24 sps:$4 sm:$0xff]  }
 0x2cf   : > { %3386 = vmatpush1.bf16.msra.mxu1 %v6879_v29  ;;  %3264 = vmatprep.subr.bf16.mxu0 %v6886_v33  ;;  %v6936_v29 = vcombine.high %v921_v7, %v925_v25  ;;  %v928_v33 = vld [vmem:[#allocation5 + $0xad0] sm:$0xff]  ;;  %v7550_v6 = vld [vmem:[#allocation8 + $0x304] ss:$24 sps:$4 sm:$0xff]   ;;  %v7545_v7 = vld [vmem:[#allocation8] ss:$24 sps:$4 sm:$0xff]  }
 0x2d0   : > { %3387 = vmatprep.subr.bf16.mxu1 %v6888_v34  ;;  %v932_v34 = vld [vmem:[#allocation5 + $0xaf0] sm:$0xff]  ;;  %v7548_v25 = vld [vmem:[#allocation8 + $0x300] ss:$24 sps:$4 sm:$0xff]  }
 0x2d1   : > { %v6941_v19 = vcombine.low %v928_v33, %v932_v34 }
 0x2d2   : > { %3265 = vmatpush1.bf16.msra.mxu0 %v6885_v14  ;;  %v6942_v14 = vcombine.high %v928_v33, %v932_v34  ;;  %v7559_v33 = vld [vmem:[#allocation8 + $0x64] ss:$24 sps:$4 sm:$0xff]  }
 0x2d3   : > { %3388 = vmatpush1.bf16.msra.mxu1 %v6887_v15  ;;  %3266 = vmatprep.subr.bf16.mxu0 %v6894_v16  ;;  %v6944_v15 = vcombine.high %v929_v8, %v933_v11  ;;  %v936_v16 = vld [vmem:[#allocation5 + $0xb10] sm:$0xff]  ;;  %v7562_v34 = vld [vmem:[#allocation8 + $0x364] ss:$24 sps:$4 sm:$0xff]   ;;  %v7557_v8 = vld [vmem:[#allocation8 + $0x60] ss:$24 sps:$4 sm:$0xff]  }
 0x2d4   : > { %3389 = vmatprep.subr.bf16.mxu1 %v6896_v44  ;;  %v940_v44 = vld [vmem:[#allocation5 + $0xb30] sm:$0xff]  ;;  %v7560_v11 = vld [vmem:[#allocation8 + $0x360] ss:$24 sps:$4 sm:$0xff]  }
 0x2d5   : > { %v6949_v28 = vcombine.low %v936_v16, %v940_v44 }
 0x2d6   : > { %3267 = vmatpush1.bf16.msra.mxu0 %v6893_v5  ;;  %v6950_v5 = vcombine.high %v936_v16, %v940_v44  ;;  %v7574_v16 = vld [vmem:[#allocation8 + $0x3c4] ss:$24 sps:$4 sm:$0xff]   ;;  %v7569_v44 = vld [vmem:[#allocation8 + $0xc0] ss:$24 sps:$4 sm:$0xff]  }
 0x2d7   : > { %3390 = vmatpush1.bf16.msra.mxu1 %v6895_v20  ;;  %3268 = vmatprep.subr.bf16.mxu0 %v6902_v52  ;;  %v6952_v20 = vcombine.high %v937_v17, %v941_v18  ;;  %v944_v52 = vld [vmem:[#allocation5 + $0xb50] sm:$0xff]  ;;  %v7572_v17 = vld [vmem:[#allocation8 + $0x3c0] ss:$24 sps:$4 sm:$0xff]  }
 0x2d8   : > { %3391 = vmatprep.subr.bf16.mxu1 %v6904_v21  ;;  %v948_v21 = vld [vmem:[#allocation5 + $0xb70] sm:$0xff]  ;;  %v8981_v18 = vld [vmem:[#allocation7] sm:$0xff] }
 0x2d9   : > { %v6957_v43 = vcombine.low %v944_v52, %v948_v21 }
 0x2da   : > { %3269 = vmatpush1.bf16.msra.mxu0 %v6901_v31  ;;  %v6958_v31 = vcombine.high %v944_v52, %v948_v21  ;;  %v983_v52 = vrot.slane %v8981_v18, %v8886_v57  ;;  %v7578_v21 = vld [vmem:[#allocation8 + $0x3f0] ss:$24 sps:$4 sm:$0xff]  }
 0x2db   : > { %3392 = vmatpush1.bf16.msra.mxu1 %v6903_v32  ;;  %3270 = vmatprep.subr.bf16.mxu0 %v6910_v36  ;;  %v6960_v32 = vcombine.high %v945_v23, %v949_v24  ;;  %v952_v36 = vld [vmem:[#allocation5 + $0xb90] sm:$0xff]  ;;  %v7583_v23 = vld [vmem:[#allocation8 + $0x124] ss:$24 sps:$4 sm:$0xff]  }
 0x2dc   : > { %3393 = vmatprep.subr.bf16.mxu1 %v6912_v35  ;;  %v956_v35 = vld [vmem:[#allocation5 + $0xbb0] sm:$0xff] }
 0x2dd   : > { %v6965_v60 = vcombine.low %v952_v36, %v956_v35 }
 0x2de   : > { %3271 = vmatpush1.bf16.msra.mxu0 %v6909_v46  ;;  %v6966_v46 = vcombine.high %v952_v36, %v956_v35 }
 0x2df   : > { %3394 = vmatpush1.bf16.msra.mxu1 %v6911_v47  ;;  %3272 = vmatprep.subr.bf16.mxu0 %v6918_v48  ;;  %v6968_v47 = vcombine.high %v953_v39, %v957_v42  ;;  %v960_v48 = vld [vmem:[#allocation5 + $0xbd0] sm:$0xff]  ;;  %v7581_v39 = vld [vmem:[#allocation8 + $0x120] ss:$24 sps:$4 sm:$0xff]  }
 0x2e0   : > { %3395 = vmatprep.subr.bf16.mxu1 %v6920_v49  ;;  %v964_v49 = vld [vmem:[#allocation5 + $0xbf0] sm:$0xff] }
 0x2e2   : > { %3273 = vmatpush1.bf16.msra.mxu0 %v6917_v62  ;;  %v6974_v62 = vcombine.high %v960_v48, %v964_v49 }
 0x2e3   : > { %3396 = vmatpush1.bf16.msra.mxu1 %v6919_v63  ;;  %3274 = vmatprep.subr.bf16.mxu0 %v6926_v0  ;;  %v6976_v63 = vcombine.high %v961_v50, %v965_v51  ;;  %v6973_v0 = vcombine.low %v960_v48, %v964_v49 }
 0x2e4   : > { %3397 = vmatprep.subr.bf16.mxu1 %v6928_v4  ;;  %v6975_v4 = vcombine.low %v961_v50, %v965_v51  ;;  %v7592_v50 = vld [vmem:[#allocation8 + $0x454] ss:$24 sps:$4 sm:$0xff]  }
 0x2e6   : > { %3275 = vmatpush1.bf16.msra.mxu0 %v6925_v26  ;;  %v7553_v26 = vld [vmem:[#allocation8 + $0x34] ss:$24 sps:$4 sm:$0xff]  }
 0x2e7   : > { %3398 = vmatpush1.bf16.msra.mxu1 %v6927_v27  ;;  %3276 = vmatprep.subr.bf16.mxu0 %v6934_v9  ;;  %v7556_v27 = vld [vmem:[#allocation8 + $0x334] ss:$24 sps:$4 sm:$0xff]   ;;  %v7551_v9 = vld [vmem:[#allocation8 + $0x30] ss:$24 sps:$4 sm:$0xff]  }
 0x2e8   : > { %3399 = vmatprep.subr.bf16.mxu1 %v6936_v29  ;;  %v7554_v29 = vld [vmem:[#allocation8 + $0x330] ss:$24 sps:$4 sm:$0xff]  }
 0x2ea   : > { %3277 = vmatpush1.bf16.msra.mxu0 %v6933_v12  ;;  %v7565_v12 = vld [vmem:[#allocation8 + $0x94] ss:$24 sps:$4 sm:$0xff]  }
 0x2eb   : > { %3400 = vmatpush1.bf16.msra.mxu1 %v6935_v13  ;;  %3278 = vmatprep.subr.bf16.mxu0 %v6942_v14  ;;  %v7568_v13 = vld [vmem:[#allocation8 + $0x394] ss:$24 sps:$4 sm:$0xff]   ;;  %v7563_v14 = vld [vmem:[#allocation8 + $0x90] ss:$24 sps:$4 sm:$0xff]  }
 0x2ec   : > { %3401 = vmatprep.subr.bf16.mxu1 %v6944_v15  ;;  %v7571_v15 = vld [vmem:[#allocation8 + $0xc4] ss:$24 sps:$4 sm:$0xff]  }
 0x2ee   : > { %3279 = vmatpush1.bf16.msra.mxu0 %v6941_v19  ;;  %v7577_v19 = vld [vmem:[#allocation8 + $0xf4] ss:$24 sps:$4 sm:$0xff]  }
 0x2ef   : > { %3402 = vmatpush1.bf16.msra.mxu1 %v6943_v3  ;;  %3280 = vmatprep.subr.bf16.mxu0 %v6950_v5  ;;  %v7580_v3 = vld [vmem:[#allocation8 + $0x3f4] ss:$24 sps:$4 sm:$0xff]   ;;  %v975_v5 = vrot.slane %v8981_v18, %v8880_v55 }
 0x2f0   : > { %3403 = vmatprep.subr.bf16.mxu1 %v6952_v20  ;;  %v7575_v20 = vld [vmem:[#allocation8 + $0xf0] ss:$24 sps:$4 sm:$0xff]  }
 0x2f2   : > { %3281 = vmatpush1.bf16.msra.mxu0 %v6949_v28  ;;  %v7586_v28 = vld [vmem:[#allocation8 + $0x424] ss:$24 sps:$4 sm:$0xff]  }
 0x2f3   : > { %3404 = vmatpush1.bf16.msra.mxu1 %v6951_v30  ;;  %3282 = vmatprep.subr.bf16.mxu0 %v6958_v31 }
 0x2f4   : > { %3405 = vmatprep.subr.bf16.mxu1 %v6960_v32 }
 0x2f6   : > { %3283 = vmatpush1.bf16.msra.mxu0 %v6957_v43 }
 0x2f7   : > { %3406 = vmatpush1.bf16.msra.mxu1 %v6959_v45  ;;  %3284 = vmatprep.subr.bf16.mxu0 %v6966_v46  ;;  %v7584_v46 = vld [vmem:[#allocation8 + $0x420] ss:$24 sps:$4 sm:$0xff]  }
 0x2f8   : > { %3407 = vmatprep.subr.bf16.mxu1 %v6968_v47  ;;  %v7589_v47 = vld [vmem:[#allocation8 + $0x154] ss:$24 sps:$4 sm:$0xff]  }
 0x2fa   : > { %3285 = vmatpush1.bf16.msra.mxu0 %v6965_v60 }
 0x2fb   : > { %3408 = vmatpush1.bf16.msra.mxu1 %v6967_v61  ;;  %3286 = vmatprep.subr.bf16.mxu0 %v6974_v62  ;;  %v7587_v61 = vld [vmem:[#allocation8 + $0x150] ss:$24 sps:$4 sm:$0xff]  }
 0x2fc   : > { %3409 = vmatprep.subr.bf16.mxu1 %v6976_v63  ;;  %v7590_v63 = vld [vmem:[#allocation8 + $0x450] ss:$24 sps:$4 sm:$0xff]  }
 0x2fe   : > { %3287 = vmatpush1.bf16.msra.mxu0 %v6973_v0  ;;  %v7595_v0 = vld [vmem:[#allocation8 + $0x184] ss:$24 sps:$4 sm:$0xff]  }
 0x2ff   : > { %3410 = vmatpush1.bf16.msra.mxu1 %v6975_v4  ;;  %5772 = vmatprep.subr.bf16.mxu0 %v7547_v1  ;;  %v7598_v4 = vld [vmem:[#allocation8 + $0x484] ss:$24 sps:$4 sm:$0xff]   ;;  %v7593_v1 = vld [vmem:[#allocation8 + $0x180] ss:$24 sps:$4 sm:$0xff]  }
 0x300   : > { %5813 = vmatprep.subr.bf16.mxu1 %v7550_v6  ;;  %v7596_v6 = vld [vmem:[#allocation8 + $0x480] ss:$24 sps:$4 sm:$0xff]  }
 0x301   : > { %3289 = vmatmul.mubr.bf16.vlgmr.msra.gmra.mrb[4].mxu0 %v8965_v10 }
 0x302   : > { %3412 = vmatmul.mubr.bf16.vlgmr.msra.gmra.mrb[4].mxu1 %v8965_v10  ;;  %5773 = vmatpush1.bf16.msra.mxu0 %v7545_v7  ;;  %v7566_v10 = vld [vmem:[#allocation8 + $0x390] ss:$24 sps:$4 sm:$0xff]   ;;  %v7601_v7 = vld [vmem:[#allocation8 + $0x1b4] ss:$24 sps:$4 sm:$0xff]  }
 0x303   : > { %5814 = vmatpush1.bf16.msra.mxu1 %v7548_v25  ;;  %5774 = vmatprep.subr.bf16.mxu0 %v7553_v26  ;;  %v7604_v25 = vld [vmem:[#allocation8 + $0x4b4] ss:$24 sps:$4 sm:$0xff]   ;;  %v7599_v26 = vld [vmem:[#allocation8 + $0x1b0] ss:$24 sps:$4 sm:$0xff]  }
 0x304   : > { %5815 = vmatprep.subr.bf16.mxu1 %v7556_v27  ;;  %v7602_v27 = vld [vmem:[#allocation8 + $0x4b0] ss:$24 sps:$4 sm:$0xff]  }
 0x306   : > { %5775 = vmatpush1.bf16.msra.mxu0 %v7551_v9  ;;  %v7607_v9 = vld [vmem:[#allocation8 + $0x1e4] ss:$24 sps:$4 sm:$0xff]  }
 0x307   : > { %5816 = vmatpush1.bf16.msra.mxu1 %v7554_v29  ;;  %5776 = vmatprep.subr.bf16.mxu0 %v7559_v33  ;;  %v7610_v29 = vld [vmem:[#allocation8 + $0x4e4] ss:$24 sps:$4 sm:$0xff]   ;;  %v7605_v33 = vld [vmem:[#allocation8 + $0x1e0] ss:$24 sps:$4 sm:$0xff]  }
 0x308   : > { %5817 = vmatprep.subr.bf16.mxu1 %v7562_v34  ;;  %v7608_v34 = vld [vmem:[#allocation8 + $0x4e0] ss:$24 sps:$4 sm:$0xff]  }
 0x30a   : > { %5777 = vmatpush1.bf16.msra.mxu0 %v7557_v8  ;;  %v7613_v8 = vld [vmem:[#allocation8 + $0x214] ss:$24 sps:$4 sm:$0xff]  }
 0x30b   : > { %5818 = vmatpush1.bf16.msra.mxu1 %v7560_v11  ;;  %5778 = vmatprep.subr.bf16.mxu0 %v7565_v12  ;;  %v7616_v11 = vld [vmem:[#allocation8 + $0x514] ss:$24 sps:$4 sm:$0xff]   ;;  %v7611_v12 = vld [vmem:[#allocation8 + $0x210] ss:$24 sps:$4 sm:$0xff]  }
 0x30c   : > { %5819 = vmatprep.subr.bf16.mxu1 %v7568_v13  ;;  %v7614_v13 = vld [vmem:[#allocation8 + $0x510] ss:$24 sps:$4 sm:$0xff]  }
 0x30e   : > { %5779 = vmatpush1.bf16.msra.mxu0 %v7563_v14  ;;  %v7619_v14 = vld [vmem:[#allocation8 + $0x244] ss:$24 sps:$4 sm:$0xff]  }
 0x30f   : > { %5820 = vmatpush1.bf16.msra.mxu1 %v7566_v10  ;;  %5780 = vmatprep.subr.bf16.mxu0 %v7571_v15  ;;  %v7622_v10 = vld [vmem:[#allocation8 + $0x544] ss:$24 sps:$4 sm:$0xff]   ;;  %v7617_v15 = vld [vmem:[#allocation8 + $0x240] ss:$24 sps:$4 sm:$0xff]  }
 0x310   : > { %5821 = vmatprep.subr.bf16.mxu1 %v7574_v16  ;;  %v7620_v16 = vld [vmem:[#allocation8 + $0x540] ss:$24 sps:$4 sm:$0xff]  }
 0x312   : > { %5781 = vmatpush1.bf16.msra.mxu0 %v7569_v44  ;;  %v7625_v44 = vld [vmem:[#allocation8 + $0x274] ss:$24 sps:$4 sm:$0xff]  }
 0x313   : > { %5822 = vmatpush1.bf16.msra.mxu1 %v7572_v17  ;;  %5782 = vmatprep.subr.bf16.mxu0 %v7577_v19  ;;  %v7628_v17 = vld [vmem:[#allocation8 + $0x574] ss:$24 sps:$4 sm:$0xff]   ;;  %v7623_v19 = vld [vmem:[#allocation8 + $0x270] ss:$24 sps:$4 sm:$0xff]  }
 0x314   : > { %v8987_v24 = vpop.f32.mrb[0].mxu0  ;;  %5823 = vmatprep.subr.bf16.mxu1 %v7580_v3  ;;  %v971_v3 = vrot.slane %v8981_v18, %v8883_v56 }
 0x315   : > { %v8989_v30 = vpop.f32.mrb[0].mxu1  ;;  %v3046_v31 = vpop.f32.mrb[1].mxu0 }
 0x316   : > { %v7371_v32 = vadd.f32 %v3046_v31, %v975_v5  ;;  %v3169_v36 = vpop.f32.mrb[1].mxu1  ;;  %v3048_v35 = vpop.f32.mrb[2].mxu0  ;;  %5783 = vmatpush1.bf16.msra.mxu0 %v7575_v20  ;;  %v7626_v5 = vld [vmem:[#allocation8 + $0x570] ss:$24 sps:$4 sm:$0xff]   ;;  %v7631_v20 = vld [vmem:[#allocation8 + $0x2a4] ss:$24 sps:$4 sm:$0xff]  }
 0x317   : > { %v7373_v42 = vadd.f32 %v3169_v36, %v983_v52  ;;  %v3171_v43 = vpop.f32.mrb[2].mxu1  ;;  %5824 = vmatpush1.bf16.msra.mxu1 %v7578_v21  ;;  %v3049_v45 = vpop.f32.mrb[3].mxu0  ;;  %5784 = vmatprep.subr.bf16.mxu0 %v7583_v23  ;;  %v979_v52 = vrot.slane %v8981_v18, %v8889_v58  ;;  %v7634_v21 = vld [vmem:[#allocation8 + $0x5a4] ss:$24 sps:$4 sm:$0xff]   ;;  %v7629_v23 = vld [vmem:[#allocation8 + $0x2a0] ss:$24 sps:$4 sm:$0xff]  }
 0x318   : > { %v3421_v48 = vmax.f32 %v7371_v32, 0.0  ;;  %v3172_v49 = vpop.f32.mrb[3].mxu1  ;;  %5825 = vmatprep.subr.bf16.mxu1 %v7586_v28  ;;  %v7370_v28 = vadd.f32 %v8987_v24, %v971_v3  ;;  %v7632_v31 = vld [vmem:[#allocation8 + $0x5a0] ss:$24 sps:$4 sm:$0xff]   ;;  %v7637_v32 = vld [vmem:[#allocation8 + $0x2d4] ss:$24 sps:$4 sm:$0xff]  }
 0x319   : > { %v3423_v51 = vmax.f32 %v7373_v42, 0.0  ;;  %v7372_v36 = vadd.f32 %v8989_v30, %v979_v52  ;;  %v7640_v35 = vld [vmem:[#allocation8 + $0x5d4] ss:$24 sps:$4 sm:$0xff]   ;;  %v7638_v43 = vld [vmem:[#allocation8 + $0x5d0] ss:$24 sps:$4 sm:$0xff]  }
 0x31a   : > { %v8991_v60 = vpack.c.bf16 %v3421_v48, %v3421_v48  ;;  %5785 = vmatpush1.bf16.msra.mxu0 %v7581_v39  ;;  %v7635_v39 = vld [vmem:[#allocation8 + $0x2d0] ss:$24 sps:$4 sm:$0xff]   ;;  %v3420_v42 = vmax.f32 %v7370_v28, 0.0  ;;  %v7643_v45 = vld [vmem:[#allocation8 + $0x604] ss:$24 sps:$4 sm:$0xff]  }
 0x31b   : > { %v8993_v62 = vpack.c.bf16 %v3423_v51, %v3423_v51  ;;  %5826 = vmatpush1.bf16.msra.mxu1 %v7584_v46  ;;  %5786 = vmatprep.subr.bf16.mxu0 %v7589_v47  ;;  %v3422_v46 = vmax.f32 %v7372_v36, 0.0  ;;  %v7646_v47 = vld [vmem:[#allocation8 + $0x904] ss:$24 sps:$4 sm:$0xff]   ;;  %v7641_v24 = vld [vmem:[#allocation8 + $0x600] ss:$24 sps:$4 sm:$0xff]  }
 0x31c   : > { %5804 = vmatprep.mubr.bf16.mxu0 %v8991_v60  ;;  %5827 = vmatprep.subr.bf16.mxu1 %v7592_v50  ;;  %v9003_v48 = vpack.c.bf16 %v3420_v42, %v3420_v42  ;;  %v7644_v49 = vld [vmem:[#allocation8 + $0x900] ss:$24 sps:$4 sm:$0xff]   ;;  %v7649_v30 = vld [vmem:[#allocation8 + $0x634] ss:$24 sps:$4 sm:$0xff]   ;;  %v7686_v3 = vld [vmem:[#allocation8 + $0xa50] ss:$24 sps:$4 sm:$0xff]  }
 0x31d   : > { %5845 = vmatprep.mubr.bf16.mxu1 %v8993_v62  ;;  %v9005_v50 = vpack.c.bf16 %v3422_v46, %v3422_v46  ;;  %v7652_v51 = vld [vmem:[#allocation8 + $0x934] ss:$24 sps:$4 sm:$0xff]   ;;  %v7689_v52 = vld [vmem:[#allocation8 + $0x780] ss:$24 sps:$4 sm:$0xff]   ;;  %v7703_v36 = vld [vmem:[#allocation8 + $0x7e4] ss:$24 sps:$4 sm:$0xff]  }
 0x31e   : > { %5787 = vmatpush1.bf16.msra.mxu0 %v7587_v61  ;;  %v7647_v61 = vld [vmem:[#allocation8 + $0x630] ss:$24 sps:$4 sm:$0xff]   ;;  %v7700_v28 = vld [vmem:[#allocation8 + $0xab4] ss:$24 sps:$4 sm:$0xff]   ;;  %v7704_v42 = vld [vmem:[#allocation8 + $0xae0] ss:$24 sps:$4 sm:$0xff]  }
 0x31f   : > { %5828 = vmatpush1.bf16.msra.mxu1 %v7590_v63  ;;  %5788 = vmatprep.subr.bf16.mxu0 %v7595_v0  ;;  %v7650_v63 = vld [vmem:[#allocation8 + $0x930] ss:$24 sps:$4 sm:$0xff]   ;;  %v7655_v0 = vld [vmem:[#allocation8 + $0x664] ss:$24 sps:$4 sm:$0xff]  }
 0x320   : > { %5829 = vmatprep.subr.bf16.mxu1 %v7598_v4  ;;  %v7658_v4 = vld [vmem:[#allocation8 + $0x964] ss:$24 sps:$4 sm:$0xff]   ;;  %v7707_v46 = vld [vmem:[#allocation8 + $0x810] ss:$24 sps:$4 sm:$0xff]  }
 0x322   : > { %5789 = vmatpush1.bf16.msra.mxu0 %v7593_v1  ;;  %v7653_v1 = vld [vmem:[#allocation8 + $0x660] ss:$24 sps:$4 sm:$0xff]  }
 0x323   : > { %5830 = vmatpush1.bf16.msra.mxu1 %v7596_v6  ;;  %5790 = vmatprep.subr.bf16.mxu0 %v7601_v7  ;;  %v7656_v6 = vld [vmem:[#allocation8 + $0x960] ss:$24 sps:$4 sm:$0xff]   ;;  %v7661_v7 = vld [vmem:[#allocation8 + $0x694] ss:$24 sps:$4 sm:$0xff]  }
 0x324   : > { %5831 = vmatprep.subr.bf16.mxu1 %v7604_v25  ;;  %v7664_v25 = vld [vmem:[#allocation8 + $0x994] ss:$24 sps:$4 sm:$0xff]  }
 0x326   : > { %5791 = vmatpush1.bf16.msra.mxu0 %v7599_v26  ;;  %v7659_v26 = vld [vmem:[#allocation8 + $0x690] ss:$24 sps:$4 sm:$0xff]  }
 0x327   : > { %5832 = vmatpush1.bf16.msra.mxu1 %v7602_v27  ;;  %5792 = vmatprep.subr.bf16.mxu0 %v7607_v9  ;;  %v7662_v27 = vld [vmem:[#allocation8 + $0x990] ss:$24 sps:$4 sm:$0xff]   ;;  %v7667_v9 = vld [vmem:[#allocation8 + $0x6c4] ss:$24 sps:$4 sm:$0xff]  }
 0x328   : > { %5833 = vmatprep.subr.bf16.mxu1 %v7610_v29  ;;  %v7670_v29 = vld [vmem:[#allocation8 + $0x9c4] ss:$24 sps:$4 sm:$0xff]  }
 0x32a   : > { %5793 = vmatpush1.bf16.msra.mxu0 %v7605_v33  ;;  %v7665_v33 = vld [vmem:[#allocation8 + $0x6c0] ss:$24 sps:$4 sm:$0xff]  }
 0x32b   : > { %5834 = vmatpush1.bf16.msra.mxu1 %v7608_v34  ;;  %5794 = vmatprep.subr.bf16.mxu0 %v7613_v8  ;;  %v7668_v34 = vld [vmem:[#allocation8 + $0x9c0] ss:$24 sps:$4 sm:$0xff]   ;;  %v7673_v8 = vld [vmem:[#allocation8 + $0x6f4] ss:$24 sps:$4 sm:$0xff]  }
 0x32c   : > { %5835 = vmatprep.subr.bf16.mxu1 %v7616_v11  ;;  %v7676_v11 = vld [vmem:[#allocation8 + $0x9f4] ss:$24 sps:$4 sm:$0xff]  }
 0x32e   : > { %5795 = vmatpush1.bf16.msra.mxu0 %v7611_v12  ;;  %v7671_v12 = vld [vmem:[#allocation8 + $0x6f0] ss:$24 sps:$4 sm:$0xff]  }
 0x32f   : > { %5836 = vmatpush1.bf16.msra.mxu1 %v7614_v13  ;;  %5796 = vmatprep.subr.bf16.mxu0 %v7619_v14  ;;  %v7674_v13 = vld [vmem:[#allocation8 + $0x9f0] ss:$24 sps:$4 sm:$0xff]   ;;  %v7679_v14 = vld [vmem:[#allocation8 + $0x724] ss:$24 sps:$4 sm:$0xff]  }
 0x330   : > { %5837 = vmatprep.subr.bf16.mxu1 %v7622_v10  ;;  %v7682_v10 = vld [vmem:[#allocation8 + $0xa24] ss:$24 sps:$4 sm:$0xff]  }
 0x332   : > { %5797 = vmatpush1.bf16.msra.mxu0 %v7617_v15  ;;  %v7677_v15 = vld [vmem:[#allocation8 + $0x720] ss:$24 sps:$4 sm:$0xff]  }
 0x333   : > { %5838 = vmatpush1.bf16.msra.mxu1 %v7620_v16  ;;  %5798 = vmatprep.subr.bf16.mxu0 %v7625_v44  ;;  %v7680_v16 = vld [vmem:[#allocation8 + $0xa20] ss:$24 sps:$4 sm:$0xff]   ;;  %v7685_v44 = vld [vmem:[#allocation8 + $0x754] ss:$24 sps:$4 sm:$0xff]  }
 0x334   : > { %5839 = vmatprep.subr.bf16.mxu1 %v7628_v17  ;;  %v7688_v17 = vld [vmem:[#allocation8 + $0xa54] ss:$24 sps:$4 sm:$0xff]  }
 0x336   : > { %5799 = vmatpush1.bf16.msra.mxu0 %v7623_v19  ;;  %v7683_v19 = vld [vmem:[#allocation8 + $0x750] ss:$24 sps:$4 sm:$0xff]  }
 0x337   : > { %5840 = vmatpush1.bf16.msra.mxu1 %v7626_v5  ;;  %5800 = vmatprep.subr.bf16.mxu0 %v7631_v20  ;;  %v7691_v5 = vld [vmem:[#allocation8 + $0x784] ss:$24 sps:$4 sm:$0xff]  }
 0x338   : > { %5841 = vmatprep.subr.bf16.mxu1 %v7634_v21  ;;  %v7694_v20 = vld [vmem:[#allocation8 + $0xa84] ss:$24 sps:$4 sm:$0xff]   ;;  %v7692_v21 = vld [vmem:[#allocation8 + $0xa80] ss:$24 sps:$4 sm:$0xff]  }
 0x33a   : > { %5801 = vmatpush1.bf16.msra.mxu0 %v7629_v23  ;;  %v7697_v23 = vld [vmem:[#allocation8 + $0x7b4] ss:$24 sps:$4 sm:$0xff]  }
 0x33b   : > { %5842 = vmatpush1.bf16.msra.mxu1 %v7632_v31  ;;  %5802 = vmatprep.subr.bf16.mxu0 %v7637_v32  ;;  %v7695_v31 = vld [vmem:[#allocation8 + $0x7b0] ss:$24 sps:$4 sm:$0xff]  }
 0x33c   : > { %5843 = vmatprep.subr.bf16.mxu1 %v7640_v35  ;;  %v7698_v32 = vld [vmem:[#allocation8 + $0xab0] ss:$24 sps:$4 sm:$0xff]   ;;  %v7706_v35 = vld [vmem:[#allocation8 + $0xae4] ss:$24 sps:$4 sm:$0xff]  }
 0x33e   : > { %5803 = vmatpush1.bf16.msra.mxu0 %v7635_v39  ;;  %v7701_v39 = vld [vmem:[#allocation8 + $0x7e0] ss:$24 sps:$4 sm:$0xff]  }
 0x33f   : > { %5844 = vmatpush1.bf16.msra.mxu1 %v7638_v43  ;;  %5854 = vmatprep.subr.bf16.mxu0 %v7643_v45  ;;  %v7709_v43 = vld [vmem:[#allocation8 + $0x814] ss:$24 sps:$4 sm:$0xff]  }
 0x340   : > { %5895 = vmatprep.subr.bf16.mxu1 %v7646_v47  ;;  %v7712_v45 = vld [vmem:[#allocation8 + $0xb14] ss:$24 sps:$4 sm:$0xff]   ;;  %v7710_v47 = vld [vmem:[#allocation8 + $0xb10] ss:$24 sps:$4 sm:$0xff]  }
 0x341   : > { %5805 = vmatmul.mubr.bf16.vlgmr.msra.gmra.mrb[8].mxu0 %v9003_v48 }
 0x342   : > { %5846 = vmatmul.mubr.bf16.vlgmr.msra.gmra.mrb[8].mxu1 %v9005_v50  ;;  %5855 = vmatpush1.bf16.msra.mxu0 %v7641_v24  ;;  %v7715_v24 = vld [vmem:[#allocation8 + $0x844] ss:$24 sps:$4 sm:$0xff]  }
 0x343   : > { %5896 = vmatpush1.bf16.msra.mxu1 %v7644_v49  ;;  %5856 = vmatprep.subr.bf16.mxu0 %v7649_v30  ;;  %v7718_v49 = vld [vmem:[#allocation8 + $0xb44] ss:$24 sps:$4 sm:$0xff]   ;;  %v7713_v30 = vld [vmem:[#allocation8 + $0x840] ss:$24 sps:$4 sm:$0xff]  }
 0x344   : > { %5897 = vmatprep.subr.bf16.mxu1 %v7652_v51  ;;  %v7716_v51 = vld [vmem:[#allocation8 + $0xb40] ss:$24 sps:$4 sm:$0xff]  }
 0x346   : > { %5857 = vmatpush1.bf16.msra.mxu0 %v7647_v61  ;;  %v7721_v61 = vld [vmem:[#allocation8 + $0x874] ss:$24 sps:$4 sm:$0xff]  }
 0x347   : > { %5898 = vmatpush1.bf16.msra.mxu1 %v7650_v63  ;;  %5858 = vmatprep.subr.bf16.mxu0 %v7655_v0  ;;  %v7724_v63 = vld [vmem:[#allocation8 + $0xb74] ss:$24 sps:$4 sm:$0xff]   ;;  %v7719_v0 = vld [vmem:[#allocation8 + $0x870] ss:$24 sps:$4 sm:$0xff]  }
 0x348   : > { %5899 = vmatprep.subr.bf16.mxu1 %v7658_v4  ;;  %v7722_v4 = vld [vmem:[#allocation8 + $0xb70] ss:$24 sps:$4 sm:$0xff]  }
 0x34a   : > { %5859 = vmatpush1.bf16.msra.mxu0 %v7653_v1  ;;  %v7727_v1 = vld [vmem:[#allocation8 + $0x8a4] ss:$24 sps:$4 sm:$0xff]  }
 0x34b   : > { %5900 = vmatpush1.bf16.msra.mxu1 %v7656_v6  ;;  %5860 = vmatprep.subr.bf16.mxu0 %v7661_v7  ;;  %v7730_v6 = vld [vmem:[#allocation8 + $0xba4] ss:$24 sps:$4 sm:$0xff]   ;;  %v7725_v7 = vld [vmem:[#allocation8 + $0x8a0] ss:$24 sps:$4 sm:$0xff]  }
 0x34c   : > { %5901 = vmatprep.subr.bf16.mxu1 %v7664_v25  ;;  %v7728_v25 = vld [vmem:[#allocation8 + $0xba0] ss:$24 sps:$4 sm:$0xff]  }
 0x34e   : > { %5861 = vmatpush1.bf16.msra.mxu0 %v7659_v26  ;;  %v7733_v26 = vld [vmem:[#allocation8 + $0x8d4] ss:$24 sps:$4 sm:$0xff]  }
 0x34f   : > { %5902 = vmatpush1.bf16.msra.mxu1 %v7662_v27  ;;  %5862 = vmatprep.subr.bf16.mxu0 %v7667_v9  ;;  %v7736_v27 = vld [vmem:[#allocation8 + $0xbd4] ss:$24 sps:$4 sm:$0xff]   ;;  %v7731_v9 = vld [vmem:[#allocation8 + $0x8d0] ss:$24 sps:$4 sm:$0xff]  }
 0x350   : > { %5903 = vmatprep.subr.bf16.mxu1 %v7670_v29  ;;  %v7734_v29 = vld [vmem:[#allocation8 + $0xbd0] ss:$24 sps:$4 sm:$0xff]  }
 0x352   : > { %5863 = vmatpush1.bf16.msra.mxu0 %v7665_v33  ;;  %v7739_v33 = vld [vmem:[#allocation8 + $0xc] ss:$24 sps:$4 sm:$0xff]  }
 0x353   : > { %5904 = vmatpush1.bf16.msra.mxu1 %v7668_v34  ;;  %5864 = vmatprep.subr.bf16.mxu0 %v7673_v8  ;;  %v7742_v34 = vld [vmem:[#allocation8 + $0x30c] ss:$24 sps:$4 sm:$0xff]   ;;  %v994_v8 = vsub.s32 6, %v8877_v53 }
 0x354   : > { %5905 = vmatprep.subr.bf16.mxu1 %v7676_v11  ;;  %v998_v11 = vsub.s32 7, %v8877_v53 }
 0x356   : > { %5865 = vmatpush1.bf16.msra.mxu0 %v7671_v12  ;;  %v987_v12 = vrot.slane %v8981_v18, %v8900_v2 }
 0x357   : > { %5906 = vmatpush1.bf16.msra.mxu1 %v7674_v13  ;;  %5866 = vmatprep.subr.bf16.mxu0 %v7679_v14  ;;  %v995_v13 = vrot.slane %v8981_v18, %v994_v8  ;;  %v991_v14 = vrot.slane %v8981_v18, %v8892_v59  ;;  %v7775_v8 = vld [vmem:[#allocation8 + $0x12c] ss:$24 sps:$4 sm:$0xff]  }
 0x358   : > { %5907 = vmatprep.subr.bf16.mxu1 %v7682_v10  ;;  %v999_v10 = vrot.slane %v8981_v18, %v998_v11  ;;  %v7778_v11 = vld [vmem:[#allocation8 + $0x42c] ss:$24 sps:$4 sm:$0xff]  }
 0x35a   : > { %5867 = vmatpush1.bf16.msra.mxu0 %v7677_v15 }
 0x35b   : > { %5908 = vmatpush1.bf16.msra.mxu1 %v7680_v16  ;;  %5868 = vmatprep.subr.bf16.mxu0 %v7685_v44 }
 0x35c   : > { %5909 = vmatprep.subr.bf16.mxu1 %v7688_v17 }
 0x35e   : > { %5869 = vmatpush1.bf16.msra.mxu0 %v7683_v19 }
 0x35f   : > { %5910 = vmatpush1.bf16.msra.mxu1 %v7686_v3  ;;  %5870 = vmatprep.subr.bf16.mxu0 %v7691_v5 }
 0x360   : > { %5911 = vmatprep.subr.bf16.mxu1 %v7694_v20 }
 0x362   : > { %5871 = vmatpush1.bf16.msra.mxu0 %v7689_v52 }
 0x363   : > { %5912 = vmatpush1.bf16.msra.mxu1 %v7692_v21  ;;  %5872 = vmatprep.subr.bf16.mxu0 %v7697_v23 }
 0x364   : > { %5913 = vmatprep.subr.bf16.mxu1 %v7700_v28 }
 0x366   : > { %5873 = vmatpush1.bf16.msra.mxu0 %v7695_v31 }
 0x367   : > { %5914 = vmatpush1.bf16.msra.mxu1 %v7698_v32  ;;  %5874 = vmatprep.subr.bf16.mxu0 %v7703_v36 }
 0x368   : > { %5915 = vmatprep.subr.bf16.mxu1 %v7706_v35 }
 0x36a   : > { %5875 = vmatpush1.bf16.msra.mxu0 %v7701_v39  ;;  %v7737_v39 = vld [vmem:[#allocation8 + $0x8] ss:$24 sps:$4 sm:$0xff]  }
 0x36b   : > { %5916 = vmatpush1.bf16.msra.mxu1 %v7704_v42  ;;  %5876 = vmatprep.subr.bf16.mxu0 %v7709_v43  ;;  %v7740_v43 = vld [vmem:[#allocation8 + $0x308] ss:$24 sps:$4 sm:$0xff]  }
 0x36c   : > { %5917 = vmatprep.subr.bf16.mxu1 %v7712_v45 }
 0x36e   : > { %5877 = vmatpush1.bf16.msra.mxu0 %v7707_v46  ;;  %v7745_v46 = vld [vmem:[#allocation8 + $0x3c] ss:$24 sps:$4 sm:$0xff]  }
 0x36f   : > { %5918 = vmatpush1.bf16.msra.mxu1 %v7710_v47  ;;  %5878 = vmatprep.subr.bf16.mxu0 %v7715_v24  ;;  %v7748_v47 = vld [vmem:[#allocation8 + $0x33c] ss:$24 sps:$4 sm:$0xff]   ;;  %v7743_v24 = vld [vmem:[#allocation8 + $0x38] ss:$24 sps:$4 sm:$0xff]  }
 0x370   : > { %5919 = vmatprep.subr.bf16.mxu1 %v7718_v49  ;;  %v7746_v49 = vld [vmem:[#allocation8 + $0x338] ss:$24 sps:$4 sm:$0xff]  }
 0x372   : > { %5879 = vmatpush1.bf16.msra.mxu0 %v7713_v30  ;;  %v7751_v30 = vld [vmem:[#allocation8 + $0x6c] ss:$24 sps:$4 sm:$0xff]  }
 0x373   : > { %5920 = vmatpush1.bf16.msra.mxu1 %v7716_v51  ;;  %5880 = vmatprep.subr.bf16.mxu0 %v7721_v61  ;;  %v7754_v51 = vld [vmem:[#allocation8 + $0x36c] ss:$24 sps:$4 sm:$0xff]   ;;  %v7749_v61 = vld [vmem:[#allocation8 + $0x68] ss:$24 sps:$4 sm:$0xff]  }
 0x374   : > { %5921 = vmatprep.subr.bf16.mxu1 %v7724_v63  ;;  %v7752_v63 = vld [vmem:[#allocation8 + $0x368] ss:$24 sps:$4 sm:$0xff]  }
 0x376   : > { %5881 = vmatpush1.bf16.msra.mxu0 %v7719_v0  ;;  %v7757_v0 = vld [vmem:[#allocation8 + $0x9c] ss:$24 sps:$4 sm:$0xff]  }
 0x377   : > { %5922 = vmatpush1.bf16.msra.mxu1 %v7722_v4  ;;  %5882 = vmatprep.subr.bf16.mxu0 %v7727_v1  ;;  %v7760_v4 = vld [vmem:[#allocation8 + $0x39c] ss:$24 sps:$4 sm:$0xff]   ;;  %v7755_v1 = vld [vmem:[#allocation8 + $0x98] ss:$24 sps:$4 sm:$0xff]  }
 0x378   : > { %5923 = vmatprep.subr.bf16.mxu1 %v7730_v6  ;;  %v7758_v6 = vld [vmem:[#allocation8 + $0x398] ss:$24 sps:$4 sm:$0xff]  }
 0x37a   : > { %5883 = vmatpush1.bf16.msra.mxu0 %v7725_v7  ;;  %v7763_v7 = vld [vmem:[#allocation8 + $0xcc] ss:$24 sps:$4 sm:$0xff]  }
 0x37b   : > { %5924 = vmatpush1.bf16.msra.mxu1 %v7728_v25  ;;  %5884 = vmatprep.subr.bf16.mxu0 %v7733_v26  ;;  %v7766_v25 = vld [vmem:[#allocation8 + $0x3cc] ss:$24 sps:$4 sm:$0xff]   ;;  %v7761_v26 = vld [vmem:[#allocation8 + $0xc8] ss:$24 sps:$4 sm:$0xff]  }
 0x37c   : > { %5925 = vmatprep.subr.bf16.mxu1 %v7736_v27  ;;  %v7764_v27 = vld [vmem:[#allocation8 + $0x3c8] ss:$24 sps:$4 sm:$0xff]  }
 0x37e   : > { %5885 = vmatpush1.bf16.msra.mxu0 %v7731_v9  ;;  %v7769_v9 = vld [vmem:[#allocation8 + $0xfc] ss:$24 sps:$4 sm:$0xff]  }
 0x37f   : > { %5926 = vmatpush1.bf16.msra.mxu1 %v7734_v29  ;;  %5936 = vmatprep.subr.bf16.mxu0 %v7739_v33  ;;  %v7772_v29 = vld [vmem:[#allocation8 + $0x3fc] ss:$24 sps:$4 sm:$0xff]   ;;  %v7767_v33 = vld [vmem:[#allocation8 + $0xf8] ss:$24 sps:$4 sm:$0xff]  }
 0x380   : > { %5977 = vmatprep.subr.bf16.mxu1 %v7742_v34  ;;  %v7770_v34 = vld [vmem:[#allocation8 + $0x3f8] ss:$24 sps:$4 sm:$0xff]  }
 0x3d4   : > { %v3290_v15 = vpop.f32.mrb[4].mxu0 }
 0x3d5   : > { %v7374_v16 = vadd.f32 %v3290_v15, %v987_v12  ;;  %v3413_v44 = vpop.f32.mrb[4].mxu1  ;;  %v3292_v17 = vpop.f32.mrb[5].mxu0  ;;  %v7773_v12 = vld [vmem:[#allocation8 + $0x128] ss:$24 sps:$4 sm:$0xff]   ;;  %v7779_v15 = vld [vmem:[#allocation8 + $0x158] ss:$24 sps:$4 sm:$0xff]  }
 0x3d6   : > { %v7376_v19 = vadd.f32 %v3413_v44, %v995_v13  ;;  %v7375_v3 = vadd.f32 %v3292_v17, %v991_v14  ;;  %v3415_v5 = vpop.f32.mrb[5].mxu1  ;;  %v3294_v20 = vpop.f32.mrb[6].mxu0  ;;  %v7776_v13 = vld [vmem:[#allocation8 + $0x428] ss:$24 sps:$4 sm:$0xff]   ;;  %v7781_v14 = vld [vmem:[#allocation8 + $0x15c] ss:$24 sps:$4 sm:$0xff]  }
 0x3d7   : > { %v3424_v52 = vmax.f32 %v7374_v16, 0.0  ;;  %v7377_v53 = vadd.f32 %v3415_v5, %v999_v10  ;;  %v3417_v21 = vpop.f32.mrb[6].mxu1  ;;  %v3295_v23 = vpop.f32.mrb[7].mxu0  ;;  %v7784_v10 = vld [vmem:[#allocation8 + $0x45c] ss:$24 sps:$4 sm:$0xff]  }
 0x3d8   : > { %v3426_v28 = vmax.f32 %v7376_v19, 0.0  ;;  %v3425_v31 = vmax.f32 %v7375_v3, 0.0  ;;  %v3418_v32 = vpop.f32.mrb[7].mxu1  ;;  %v7782_v16 = vld [vmem:[#allocation8 + $0x458] ss:$24 sps:$4 sm:$0xff]  }
 0x3d9   : > { %v3427_v36 = vmax.f32 %v7377_v53, 0.0  ;;  %v9019_v18 = vpack.c.bf16 %v3424_v52, %v3424_v52  ;;  %v7787_v44 = vld [vmem:[#allocation8 + $0x18c] ss:$24 sps:$4 sm:$0xff]   ;;  %v7785_v19 = vld [vmem:[#allocation8 + $0x188] ss:$24 sps:$4 sm:$0xff]  }
 0x3da   : > { %v9017_v35 = vpack.c.bf16 %v3425_v31, %v3425_v31  ;;  %v9023_v45 = vpack.c.bf16 %v3426_v28, %v3426_v28  ;;  %v7790_v17 = vld [vmem:[#allocation8 + $0x48c] ss:$24 sps:$4 sm:$0xff]   ;;  %v7788_v3 = vld [vmem:[#allocation8 + $0x488] ss:$24 sps:$4 sm:$0xff]   ;;  %v7793_v5 = vld [vmem:[#allocation8 + $0x1bc] ss:$24 sps:$4 sm:$0xff]  }
 0x3db   : > { %v9021_v42 = vpack.c.bf16 %v3427_v36, %v3427_v36  ;;  %v7796_v20 = vld [vmem:[#allocation8 + $0x4bc] ss:$24 sps:$4 sm:$0xff]   ;;  %v7791_v52 = vld [vmem:[#allocation8 + $0x1b8] ss:$24 sps:$4 sm:$0xff]   ;;  %v7799_v21 = vld [vmem:[#allocation8 + $0x1ec] ss:$24 sps:$4 sm:$0xff]  }
 0x3dc   : > { %5886 = vmatprep.mubr.bf16.mxu0 %v9017_v35  ;;  %v7794_v53 = vld [vmem:[#allocation8 + $0x4b8] ss:$24 sps:$4 sm:$0xff]   ;;  %v7802_v23 = vld [vmem:[#allocation8 + $0x4ec] ss:$24 sps:$4 sm:$0xff]   ;;  %v7797_v28 = vld [vmem:[#allocation8 + $0x1e8] ss:$24 sps:$4 sm:$0xff]  }
 0x3dd   : > { %5927 = vmatprep.mubr.bf16.mxu1 %v9021_v42  ;;  %5887 = vmatmul.mubr.bf16.vlgmr.msra.gmra.mrb[12].mxu0 %v9019_v18  ;;  %v7800_v31 = vld [vmem:[#allocation8 + $0x4e8] ss:$24 sps:$4 sm:$0xff]   ;;  %v7805_v32 = vld [vmem:[#allocation8 + $0x21c] ss:$24 sps:$4 sm:$0xff]  }
 0x3de   : > { %5928 = vmatmul.mubr.bf16.vlgmr.msra.gmra.mrb[12].mxu1 %v9023_v45  ;;  %5937 = vmatpush1.bf16.msra.mxu0 %v7737_v39  ;;  %v7808_v36 = vld [vmem:[#allocation8 + $0x51c] ss:$24 sps:$4 sm:$0xff]   ;;  %v7803_v39 = vld [vmem:[#allocation8 + $0x218] ss:$24 sps:$4 sm:$0xff]  }
 0x3df   : > { %5978 = vmatpush1.bf16.msra.mxu1 %v7740_v43  ;;  %5968 = vmatprep.mubr.bf16.mxu0 %v8991_v60  ;;  %v7806_v43 = vld [vmem:[#allocation8 + $0x518] ss:$24 sps:$4 sm:$0xff]  }
 0x3e0   : > { %6009 = vmatprep.mubr.bf16.mxu1 %v8993_v62  ;;  %5938 = vmatprep.subr.bf16.mxu0 %v7745_v46  ;;  %v7811_v46 = vld [vmem:[#allocation8 + $0x24c] ss:$24 sps:$4 sm:$0xff]  }
 0x3e1   : > { %5979 = vmatprep.subr.bf16.mxu1 %v7748_v47  ;;  %v7814_v47 = vld [vmem:[#allocation8 + $0x54c] ss:$24 sps:$4 sm:$0xff]  }
 0x3e2   : > { %5939 = vmatpush1.bf16.msra.mxu0 %v7743_v24  ;;  %v7809_v24 = vld [vmem:[#allocation8 + $0x248] ss:$24 sps:$4 sm:$0xff]  }
 0x3e3   : > { %5980 = vmatpush1.bf16.msra.mxu1 %v7746_v49  ;;  %5940 = vmatprep.subr.bf16.mxu0 %v7751_v30  ;;  %v7812_v49 = vld [vmem:[#allocation8 + $0x548] ss:$24 sps:$4 sm:$0xff]   ;;  %v7817_v30 = vld [vmem:[#allocation8 + $0x27c] ss:$24 sps:$4 sm:$0xff]  }
 0x3e4   : > { %5981 = vmatprep.subr.bf16.mxu1 %v7754_v51  ;;  %v7820_v51 = vld [vmem:[#allocation8 + $0x57c] ss:$24 sps:$4 sm:$0xff]  }
 0x3e6   : > { %5941 = vmatpush1.bf16.msra.mxu0 %v7749_v61  ;;  %v7815_v61 = vld [vmem:[#allocation8 + $0x278] ss:$24 sps:$4 sm:$0xff]  }
 0x3e7   : > { %5982 = vmatpush1.bf16.msra.mxu1 %v7752_v63  ;;  %5942 = vmatprep.subr.bf16.mxu0 %v7757_v0  ;;  %v9031_v63 = vld [vmem:[#allocation10] sm:$0x3f]  ;;  %v7818_v0 = vld [vmem:[#allocation8 + $0x578] ss:$24 sps:$4 sm:$0xff]  }
 0x3e8   : > { %5983 = vmatprep.subr.bf16.mxu1 %v7760_v4  ;;  %v7823_v4 = vld [vmem:[#allocation8 + $0x2ac] ss:$24 sps:$4 sm:$0xff]  }
 0x3ea   : > { %5943 = vmatpush1.bf16.msra.mxu0 %v7755_v1  ;;  %v7826_v1 = vld [vmem:[#allocation8 + $0x5ac] ss:$24 sps:$4 sm:$0xff]  }
 0x3eb   : > { %5984 = vmatpush1.bf16.msra.mxu1 %v7758_v6  ;;  %5944 = vmatprep.subr.bf16.mxu0 %v7763_v7  ;;  %v3825_v6 = vrot.slane %v9031_v63, %v8883_v56  ;;  %v7821_v7 = vld [vmem:[#allocation8 + $0x2a8] ss:$24 sps:$4 sm:$0xff]  }
 0x3ec   : > { %5985 = vmatprep.subr.bf16.mxu1 %v7766_v25  ;;  %v3829_v25 = vrot.slane %v9031_v63, %v8880_v55 }
 0x3ee   : > { %5945 = vmatpush1.bf16.msra.mxu0 %v7761_v26  ;;  %v7824_v26 = vld [vmem:[#allocation8 + $0x5a8] ss:$24 sps:$4 sm:$0xff]  }
 0x3ef   : > { %5986 = vmatpush1.bf16.msra.mxu1 %v7764_v27  ;;  %5946 = vmatprep.subr.bf16.mxu0 %v7769_v9  ;;  %v7829_v27 = vld [vmem:[#allocation8 + $0x2dc] ss:$24 sps:$4 sm:$0xff]  }
 0x3f0   : > { %5987 = vmatprep.subr.bf16.mxu1 %v7772_v29  ;;  %v7832_v29 = vld [vmem:[#allocation8 + $0x5dc] ss:$24 sps:$4 sm:$0xff]  }
 0x3f2   : > { %5947 = vmatpush1.bf16.msra.mxu0 %v7767_v33 }
 0x3f3   : > { %5988 = vmatpush1.bf16.msra.mxu1 %v7770_v34  ;;  %5948 = vmatprep.subr.bf16.mxu0 %v7775_v8 }
 0x3f4   : > { %5989 = vmatprep.subr.bf16.mxu1 %v7778_v11 }
 0x3f6   : > { %5949 = vmatpush1.bf16.msra.mxu0 %v7773_v12 }
 0x3f7   : > { %5990 = vmatpush1.bf16.msra.mxu1 %v7776_v13  ;;  %5950 = vmatprep.subr.bf16.mxu0 %v7781_v14  ;;  %v7827_v14 = vld [vmem:[#allocation8 + $0x2d8] ss:$24 sps:$4 sm:$0xff]  }
 0x3f8   : > { %5991 = vmatprep.subr.bf16.mxu1 %v7784_v10 }
 0x3fa   : > { %5951 = vmatpush1.bf16.msra.mxu0 %v7779_v15 }
 0x3fb   : > { %5992 = vmatpush1.bf16.msra.mxu1 %v7782_v16  ;;  %5952 = vmatprep.subr.bf16.mxu0 %v7787_v44  ;;  %v7830_v44 = vld [vmem:[#allocation8 + $0x5d8] ss:$24 sps:$4 sm:$0xff]  }
 0x3fc   : > { %5993 = vmatprep.subr.bf16.mxu1 %v7790_v17  ;;  %v7835_v17 = vld [vmem:[#allocation8 + $0x60c] ss:$24 sps:$4 sm:$0xff]  }
 0x3fe   : > { %5953 = vmatpush1.bf16.msra.mxu0 %v7785_v19 }
 0x3ff   : > { %5994 = vmatpush1.bf16.msra.mxu1 %v7788_v3  ;;  %5954 = vmatprep.subr.bf16.mxu0 %v7793_v5  ;;  %v7838_v5 = vld [vmem:[#allocation8 + $0x90c] ss:$24 sps:$4 sm:$0xff]  }
 0x400   : > { %5995 = vmatprep.subr.bf16.mxu1 %v7796_v20  ;;  %v7833_v20 = vld [vmem:[#allocation8 + $0x608] ss:$24 sps:$4 sm:$0xff]  }
 0x402   : > { %5955 = vmatpush1.bf16.msra.mxu0 %v7791_v52  ;;  %v7836_v52 = vld [vmem:[#allocation8 + $0x908] ss:$24 sps:$4 sm:$0xff]  }
 0x403   : > { %5996 = vmatpush1.bf16.msra.mxu1 %v7794_v53  ;;  %5956 = vmatprep.subr.bf16.mxu0 %v7799_v21  ;;  %v7841_v53 = vld [vmem:[#allocation8 + $0x63c] ss:$24 sps:$4 sm:$0xff]  }
 0x404   : > { %5997 = vmatprep.subr.bf16.mxu1 %v7802_v23  ;;  %v7844_v21 = vld [vmem:[#allocation8 + $0x93c] ss:$24 sps:$4 sm:$0xff]   ;;  %v7839_v23 = vld [vmem:[#allocation8 + $0x638] ss:$24 sps:$4 sm:$0xff]  }
 0x406   : > { %5957 = vmatpush1.bf16.msra.mxu0 %v7797_v28  ;;  %v7842_v28 = vld [vmem:[#allocation8 + $0x938] ss:$24 sps:$4 sm:$0xff]  }
 0x407   : > { %5998 = vmatpush1.bf16.msra.mxu1 %v7800_v31  ;;  %5958 = vmatprep.subr.bf16.mxu0 %v7805_v32  ;;  %v7847_v31 = vld [vmem:[#allocation8 + $0x66c] ss:$24 sps:$4 sm:$0xff]  }
 0x408   : > { %5999 = vmatprep.subr.bf16.mxu1 %v7808_v36  ;;  %v7850_v32 = vld [vmem:[#allocation8 + $0x96c] ss:$24 sps:$4 sm:$0xff]   ;;  %v7845_v36 = vld [vmem:[#allocation8 + $0x668] ss:$24 sps:$4 sm:$0xff]  }
 0x40a   : > { %5959 = vmatpush1.bf16.msra.mxu0 %v7803_v39  ;;  %v7848_v39 = vld [vmem:[#allocation8 + $0x968] ss:$24 sps:$4 sm:$0xff]  }
 0x40b   : > { %6000 = vmatpush1.bf16.msra.mxu1 %v7806_v43  ;;  %5960 = vmatprep.subr.bf16.mxu0 %v7811_v46  ;;  %v7853_v43 = vld [vmem:[#allocation8 + $0x69c] ss:$24 sps:$4 sm:$0xff]  }
 0x40c   : > { %6001 = vmatprep.subr.bf16.mxu1 %v7814_v47  ;;  %v7856_v46 = vld [vmem:[#allocation8 + $0x99c] ss:$24 sps:$4 sm:$0xff]   ;;  %v7851_v47 = vld [vmem:[#allocation8 + $0x698] ss:$24 sps:$4 sm:$0xff]  }
 0x40e   : > { %5961 = vmatpush1.bf16.msra.mxu0 %v7809_v24  ;;  %v7854_v24 = vld [vmem:[#allocation8 + $0x998] ss:$24 sps:$4 sm:$0xff]  }
 0x40f   : > { %6002 = vmatpush1.bf16.msra.mxu1 %v7812_v49  ;;  %5962 = vmatprep.subr.bf16.mxu0 %v7817_v30  ;;  %v7859_v49 = vld [vmem:[#allocation8 + $0x6cc] ss:$24 sps:$4 sm:$0xff]  }
 0x410   : > { %6003 = vmatprep.subr.bf16.mxu1 %v7820_v51  ;;  %v7862_v30 = vld [vmem:[#allocation8 + $0x9cc] ss:$24 sps:$4 sm:$0xff]   ;;  %v7857_v51 = vld [vmem:[#allocation8 + $0x6c8] ss:$24 sps:$4 sm:$0xff]  }
 0x412   : > { %5963 = vmatpush1.bf16.msra.mxu0 %v7815_v61  ;;  %v7860_v61 = vld [vmem:[#allocation8 + $0x9c8] ss:$24 sps:$4 sm:$0xff]  }
 0x413   : > { %6004 = vmatpush1.bf16.msra.mxu1 %v7818_v0  ;;  %5964 = vmatprep.subr.bf16.mxu0 %v7823_v4  ;;  %v7865_v0 = vld [vmem:[#allocation8 + $0x6fc] ss:$24 sps:$4 sm:$0xff]  }
 0x414   : > { %v5806_v9 = vpop.f32.mrb[8].mxu0  ;;  %6005 = vmatprep.subr.bf16.mxu1 %v7826_v1  ;;  %v7868_v4 = vld [vmem:[#allocation8 + $0x9fc] ss:$24 sps:$4 sm:$0xff]   ;;  %v7863_v1 = vld [vmem:[#allocation8 + $0x6f8] ss:$24 sps:$4 sm:$0xff]  }
 0x415   : > { %v5807_v33 = vadd.f32 %v5806_v9, %v3825_v6  ;;  %v5847_v34 = vpop.f32.mrb[8].mxu1  ;;  %v5808_v8 = vpop.f32.mrb[9].mxu0  ;;  %v7866_v6 = vld [vmem:[#allocation8 + $0x9f8] ss:$24 sps:$4 sm:$0xff]   ;;  %v7877_v9 = vld [vmem:[#allocation8 + $0x75c] ss:$24 sps:$4 sm:$0xff]  }
 0x416   : > { %v5809_v11 = vadd.f32 %v5808_v8, %v3829_v25  ;;  %v5849_v12 = vpop.f32.mrb[9].mxu1  ;;  %5965 = vmatpush1.bf16.msra.mxu0 %v7821_v7  ;;  %v5810_v13 = vpop.f32.mrb[10].mxu0  ;;  %v7871_v7 = vld [vmem:[#allocation8 + $0x72c] ss:$24 sps:$4 sm:$0xff]  }
 0x417   : > { %v9037_v10 = vadd.f32 %v5847_v34, %v5807_v33  ;;  %6006 = vmatpush1.bf16.msra.mxu1 %v7824_v26  ;;  %v5851_v15 = vpop.f32.mrb[10].mxu1  ;;  %v5811_v16 = vpop.f32.mrb[11].mxu0  ;;  %5966 = vmatprep.subr.bf16.mxu0 %v7829_v27  ;;  %v7874_v25 = vld [vmem:[#allocation8 + $0xa2c] ss:$24 sps:$4 sm:$0xff]   ;;  %v7869_v26 = vld [vmem:[#allocation8 + $0x728] ss:$24 sps:$4 sm:$0xff]  }
 0x418   : > { %v9039_v19 = vadd.f32 %v5849_v12, %v5809_v11  ;;  %v5852_v3 = vpop.f32.mrb[11].mxu1  ;;  %6007 = vmatprep.subr.bf16.mxu1 %v7832_v29  ;;  %v7872_v27 = vld [vmem:[#allocation8 + $0xa28] ss:$24 sps:$4 sm:$0xff]   ;;  %v7880_v29 = vld [vmem:[#allocation8 + $0xa5c] ss:$24 sps:$4 sm:$0xff]  }
 0x419   : > { %v7875_v33 = vld [vmem:[#allocation8 + $0x758] ss:$24 sps:$4 sm:$0xff]   ;;  %v7883_v8 = vld [vmem:[#allocation8 + $0x78c] ss:$24 sps:$4 sm:$0xff]   ;;  %v7881_v12 = vld [vmem:[#allocation8 + $0x788] ss:$24 sps:$4 sm:$0xff]  }
 0x41a   : > { %5967 = vmatpush1.bf16.msra.mxu0 %v7827_v14  ;;  %v7878_v34 = vld [vmem:[#allocation8 + $0xa58] ss:$24 sps:$4 sm:$0xff]   ;;  %v7886_v11 = vld [vmem:[#allocation8 + $0xa8c] ss:$24 sps:$4 sm:$0xff]   ;;  %v7884_v13 = vld [vmem:[#allocation8 + $0xa88] ss:$24 sps:$4 sm:$0xff]  }
 0x41b   : > { %6008 = vmatpush1.bf16.msra.mxu1 %v7830_v44  ;;  %6018 = vmatprep.subr.bf16.mxu0 %v7835_v17  ;;  %v7889_v14 = vld [vmem:[#allocation8 + $0x7bc] ss:$24 sps:$4 sm:$0xff]   ;;  %v7887_v16 = vld [vmem:[#allocation8 + $0x7b8] ss:$24 sps:$4 sm:$0xff]   ;;  %v7895_v17 = vld [vmem:[#allocation8 + $0x7ec] ss:$24 sps:$4 sm:$0xff]  }
 0x41c   : > { %6059 = vmatprep.subr.bf16.mxu1 %v7838_v5  ;;  %v7892_v15 = vld [vmem:[#allocation8 + $0xabc] ss:$24 sps:$4 sm:$0xff]   ;;  %v7890_v44 = vld [vmem:[#allocation8 + $0xab8] ss:$24 sps:$4 sm:$0xff]   ;;  %v7898_v3 = vld [vmem:[#allocation8 + $0xaec] ss:$24 sps:$4 sm:$0xff]  }
 0x41d   : > { %5969 = vmatmul.mubr.bf16.vlgmr.msra.gmra.mrb[16].mxu0 %v9003_v48  ;;  %v7893_v5 = vld [vmem:[#allocation8 + $0x7e8] ss:$24 sps:$4 sm:$0xff]  }
 0x41e   : > { %6010 = vmatmul.mubr.bf16.vlgmr.msra.gmra.mrb[16].mxu1 %v9005_v50  ;;  %6019 = vmatpush1.bf16.msra.mxu0 %v7833_v20  ;;  %v7896_v20 = vld [vmem:[#allocation8 + $0xae8] ss:$24 sps:$4 sm:$0xff]  }
 0x41f   : > { %6050 = vmatprep.mubr.bf16.mxu0 %v9017_v35  ;;  %6060 = vmatpush1.bf16.msra.mxu1 %v7836_v52  ;;  %v7901_v52 = vld [vmem:[#allocation8 + $0x81c] ss:$24 sps:$4 sm:$0xff]  }
 0x420   : > { %6091 = vmatprep.mubr.bf16.mxu1 %v9021_v42  ;;  %6020 = vmatprep.subr.bf16.mxu0 %v7841_v53  ;;  %v7904_v53 = vld [vmem:[#allocation8 + $0xb1c] ss:$24 sps:$4 sm:$0xff]  }
 0x421   : > { %6061 = vmatprep.subr.bf16.mxu1 %v7844_v21  ;;  %v7899_v21 = vld [vmem:[#allocation8 + $0x818] ss:$24 sps:$4 sm:$0xff]  }
 0x422   : > { %6021 = vmatpush1.bf16.msra.mxu0 %v7839_v23  ;;  %v7902_v23 = vld [vmem:[#allocation8 + $0xb18] ss:$24 sps:$4 sm:$0xff]  }
 0x423   : > { %6062 = vmatpush1.bf16.msra.mxu1 %v7842_v28  ;;  %6022 = vmatprep.subr.bf16.mxu0 %v7847_v31  ;;  %v7907_v28 = vld [vmem:[#allocation8 + $0x84c] ss:$24 sps:$4 sm:$0xff]  }
 0x424   : > { %6063 = vmatprep.subr.bf16.mxu1 %v7850_v32  ;;  %v7910_v31 = vld [vmem:[#allocation8 + $0xb4c] ss:$24 sps:$4 sm:$0xff]   ;;  %v7905_v32 = vld [vmem:[#allocation8 + $0x848] ss:$24 sps:$4 sm:$0xff]  }
 0x426   : > { %6023 = vmatpush1.bf16.msra.mxu0 %v7845_v36  ;;  %v7908_v36 = vld [vmem:[#allocation8 + $0xb48] ss:$24 sps:$4 sm:$0xff]  }
 0x427   : > { %6064 = vmatpush1.bf16.msra.mxu1 %v7848_v39  ;;  %6024 = vmatprep.subr.bf16.mxu0 %v7853_v43  ;;  %v7913_v39 = vld [vmem:[#allocation8 + $0x87c] ss:$24 sps:$4 sm:$0xff]  }
 0x428   : > { %6065 = vmatprep.subr.bf16.mxu1 %v7856_v46  ;;  %v7916_v43 = vld [vmem:[#allocation8 + $0xb7c] ss:$24 sps:$4 sm:$0xff]   ;;  %v7911_v46 = vld [vmem:[#allocation8 + $0x878] ss:$24 sps:$4 sm:$0xff]  }
 0x42a   : > { %6025 = vmatpush1.bf16.msra.mxu0 %v7851_v47  ;;  %v7914_v47 = vld [vmem:[#allocation8 + $0xb78] ss:$24 sps:$4 sm:$0xff]  }
 0x42b   : > { %6066 = vmatpush1.bf16.msra.mxu1 %v7854_v24  ;;  %6026 = vmatprep.subr.bf16.mxu0 %v7859_v49  ;;  %v7919_v24 = vld [vmem:[#allocation8 + $0x8ac] ss:$24 sps:$4 sm:$0xff]  }
 0x42c   : > { %6067 = vmatprep.subr.bf16.mxu1 %v7862_v30  ;;  %v7922_v49 = vld [vmem:[#allocation8 + $0xbac] ss:$24 sps:$4 sm:$0xff]   ;;  %v7917_v30 = vld [vmem:[#allocation8 + $0x8a8] ss:$24 sps:$4 sm:$0xff]  }
 0x42e   : > { %6027 = vmatpush1.bf16.msra.mxu0 %v7857_v51  ;;  %v7920_v51 = vld [vmem:[#allocation8 + $0xba8] ss:$24 sps:$4 sm:$0xff]  }
 0x42f   : > { %6068 = vmatpush1.bf16.msra.mxu1 %v7860_v61  ;;  %6028 = vmatprep.subr.bf16.mxu0 %v7865_v0  ;;  %v7925_v61 = vld [vmem:[#allocation8 + $0x8dc] ss:$24 sps:$4 sm:$0xff]  }
 0x430   : > { %6069 = vmatprep.subr.bf16.mxu1 %v7868_v4  ;;  %v7928_v0 = vld [vmem:[#allocation8 + $0xbdc] ss:$24 sps:$4 sm:$0xff]   ;;  %v7923_v4 = vld [vmem:[#allocation8 + $0x8d8] ss:$24 sps:$4 sm:$0xff]  }
 0x432   : > { %6029 = vmatpush1.bf16.msra.mxu0 %v7863_v1  ;;  %v7926_v1 = vld [vmem:[#allocation8 + $0xbd8] ss:$24 sps:$4 sm:$0xff]  }
 0x433   : > { %6070 = vmatpush1.bf16.msra.mxu1 %v7866_v6  ;;  %6030 = vmatprep.subr.bf16.mxu0 %v7871_v7  ;;  %v7931_v6 = vld [vmem:[#allocation8 + $0x14] ss:$24 sps:$4 sm:$0xff]  }
 0x434   : > { %6071 = vmatprep.subr.bf16.mxu1 %v7874_v25  ;;  %v7934_v7 = vld [vmem:[#allocation8 + $0x314] ss:$24 sps:$4 sm:$0xff]   ;;  %v7929_v25 = vld [vmem:[#allocation8 + $0x10] ss:$24 sps:$4 sm:$0xff]  }
 0x436   : > { %6031 = vmatpush1.bf16.msra.mxu0 %v7869_v26  ;;  %v7932_v26 = vld [vmem:[#allocation8 + $0x310] ss:$24 sps:$4 sm:$0xff]  }
 0x437   : > { %6072 = vmatpush1.bf16.msra.mxu1 %v7872_v27  ;;  %6032 = vmatprep.subr.bf16.mxu0 %v7877_v9  ;;  %v7937_v27 = vld [vmem:[#allocation8 + $0x44] ss:$24 sps:$4 sm:$0xff]  }
 0x438   : > { %6073 = vmatprep.subr.bf16.mxu1 %v7880_v29  ;;  %v7940_v9 = vld [vmem:[#allocation8 + $0x344] ss:$24 sps:$4 sm:$0xff]   ;;  %v7935_v29 = vld [vmem:[#allocation8 + $0x40] ss:$24 sps:$4 sm:$0xff]  }
 0x43a   : > { %6033 = vmatpush1.bf16.msra.mxu0 %v7875_v33  ;;  %v7938_v33 = vld [vmem:[#allocation8 + $0x340] ss:$24 sps:$4 sm:$0xff]  }
 0x43b   : > { %6074 = vmatpush1.bf16.msra.mxu1 %v7878_v34  ;;  %6034 = vmatprep.subr.bf16.mxu0 %v7883_v8  ;;  %v7943_v34 = vld [vmem:[#allocation8 + $0x74] ss:$24 sps:$4 sm:$0xff]  }
 0x43c   : > { %6075 = vmatprep.subr.bf16.mxu1 %v7886_v11  ;;  %v7946_v8 = vld [vmem:[#allocation8 + $0x374] ss:$24 sps:$4 sm:$0xff]   ;;  %v7941_v11 = vld [vmem:[#allocation8 + $0x70] ss:$24 sps:$4 sm:$0xff]  }
 0x43e   : > { %6035 = vmatpush1.bf16.msra.mxu0 %v7881_v12  ;;  %v7944_v12 = vld [vmem:[#allocation8 + $0x370] ss:$24 sps:$4 sm:$0xff]  }
 0x43f   : > { %6076 = vmatpush1.bf16.msra.mxu1 %v7884_v13  ;;  %6036 = vmatprep.subr.bf16.mxu0 %v7889_v14  ;;  %v7949_v13 = vld [vmem:[#allocation8 + $0xa4] ss:$24 sps:$4 sm:$0xff]  }
 0x440   : > { %6077 = vmatprep.subr.bf16.mxu1 %v7892_v15  ;;  %v7952_v14 = vld [vmem:[#allocation8 + $0x3a4] ss:$24 sps:$4 sm:$0xff]   ;;  %v7947_v15 = vld [vmem:[#allocation8 + $0xa0] ss:$24 sps:$4 sm:$0xff]  }
 0x442   : > { %6037 = vmatpush1.bf16.msra.mxu0 %v7887_v16  ;;  %v7955_v16 = vld [vmem:[#allocation8 + $0xd4] ss:$24 sps:$4 sm:$0xff]  }
 0x443   : > { %6078 = vmatpush1.bf16.msra.mxu1 %v7890_v44  ;;  %6038 = vmatprep.subr.bf16.mxu0 %v7895_v17  ;;  %v7958_v44 = vld [vmem:[#allocation8 + $0x3d4] ss:$24 sps:$4 sm:$0xff]   ;;  %v7956_v17 = vld [vmem:[#allocation8 + $0x3d0] ss:$24 sps:$4 sm:$0xff]  }
 0x444   : > { %6079 = vmatprep.subr.bf16.mxu1 %v7898_v3  ;;  %v7961_v3 = vld [vmem:[#allocation8 + $0x104] ss:$24 sps:$4 sm:$0xff]  }
 0x446   : > { %6039 = vmatpush1.bf16.msra.mxu0 %v7893_v5  ;;  %v7964_v5 = vld [vmem:[#allocation8 + $0x404] ss:$24 sps:$4 sm:$0xff]  }
 0x447   : > { %6080 = vmatpush1.bf16.msra.mxu1 %v7896_v20  ;;  %6040 = vmatprep.subr.bf16.mxu0 %v7901_v52  ;;  %v7959_v20 = vld [vmem:[#allocation8 + $0x100] ss:$24 sps:$4 sm:$0xff]  }
 0x448   : > { %6081 = vmatprep.subr.bf16.mxu1 %v7904_v53  ;;  %v7962_v52 = vld [vmem:[#allocation8 + $0x400] ss:$24 sps:$4 sm:$0xff]   ;;  %v7967_v53 = vld [vmem:[#allocation8 + $0x134] ss:$24 sps:$4 sm:$0xff]  }
 0x44a   : > { %6041 = vmatpush1.bf16.msra.mxu0 %v7899_v21  ;;  %v7970_v21 = vld [vmem:[#allocation8 + $0x434] ss:$24 sps:$4 sm:$0xff]  }
 0x44b   : > { %6082 = vmatpush1.bf16.msra.mxu1 %v7902_v23  ;;  %6042 = vmatprep.subr.bf16.mxu0 %v7907_v28  ;;  %v7965_v23 = vld [vmem:[#allocation8 + $0x130] ss:$24 sps:$4 sm:$0xff]  }
 0x44c   : > { %6083 = vmatprep.subr.bf16.mxu1 %v7910_v31  ;;  %v7968_v28 = vld [vmem:[#allocation8 + $0x430] ss:$24 sps:$4 sm:$0xff]   ;;  %v7973_v31 = vld [vmem:[#allocation8 + $0x164] ss:$24 sps:$4 sm:$0xff]  }
 0x44e   : > { %6043 = vmatpush1.bf16.msra.mxu0 %v7905_v32  ;;  %v7976_v32 = vld [vmem:[#allocation8 + $0x464] ss:$24 sps:$4 sm:$0xff]  }
 0x44f   : > { %6084 = vmatpush1.bf16.msra.mxu1 %v7908_v36  ;;  %6044 = vmatprep.subr.bf16.mxu0 %v7913_v39  ;;  %v7971_v36 = vld [vmem:[#allocation8 + $0x160] ss:$24 sps:$4 sm:$0xff]  }
 0x450   : > { %6085 = vmatprep.subr.bf16.mxu1 %v7916_v43  ;;  %v7974_v39 = vld [vmem:[#allocation8 + $0x460] ss:$24 sps:$4 sm:$0xff]   ;;  %v7979_v43 = vld [vmem:[#allocation8 + $0x194] ss:$24 sps:$4 sm:$0xff]  }
 0x452   : > { %6045 = vmatpush1.bf16.msra.mxu0 %v7911_v46  ;;  %v7982_v46 = vld [vmem:[#allocation8 + $0x494] ss:$24 sps:$4 sm:$0xff]  }
 0x453   : > { %6086 = vmatpush1.bf16.msra.mxu1 %v7914_v47  ;;  %6046 = vmatprep.subr.bf16.mxu0 %v7919_v24  ;;  %v7977_v47 = vld [vmem:[#allocation8 + $0x190] ss:$24 sps:$4 sm:$0xff]  }
 0x454   : > { %6087 = vmatprep.subr.bf16.mxu1 %v7922_v49  ;;  %v7980_v24 = vld [vmem:[#allocation8 + $0x490] ss:$24 sps:$4 sm:$0xff]   ;;  %v7985_v49 = vld [vmem:[#allocation8 + $0x1c4] ss:$24 sps:$4 sm:$0xff]  }
 0x456   : > { %6047 = vmatpush1.bf16.msra.mxu0 %v7917_v30  ;;  %v7988_v30 = vld [vmem:[#allocation8 + $0x4c4] ss:$24 sps:$4 sm:$0xff]  }
 0x457   : > { %6088 = vmatpush1.bf16.msra.mxu1 %v7920_v51  ;;  %6048 = vmatprep.subr.bf16.mxu0 %v7925_v61  ;;  %v7983_v51 = vld [vmem:[#allocation8 + $0x1c0] ss:$24 sps:$4 sm:$0xff]  }
 0x458   : > { %6089 = vmatprep.subr.bf16.mxu1 %v7928_v0  ;;  %v7986_v61 = vld [vmem:[#allocation8 + $0x4c0] ss:$24 sps:$4 sm:$0xff]   ;;  %v7991_v0 = vld [vmem:[#allocation8 + $0x1f4] ss:$24 sps:$4 sm:$0xff]  }
 0x45a   : > { %6049 = vmatpush1.bf16.msra.mxu0 %v7923_v4  ;;  %v7994_v4 = vld [vmem:[#allocation8 + $0x4f4] ss:$24 sps:$4 sm:$0xff]  }
 0x45b   : > { %6090 = vmatpush1.bf16.msra.mxu1 %v7926_v1  ;;  %6100 = vmatprep.subr.bf16.mxu0 %v7931_v6  ;;  %v7989_v1 = vld [vmem:[#allocation8 + $0x1f0] ss:$24 sps:$4 sm:$0xff]  }
 0x45c   : > { %6141 = vmatprep.subr.bf16.mxu1 %v7934_v7  ;;  %v7992_v6 = vld [vmem:[#allocation8 + $0x4f0] ss:$24 sps:$4 sm:$0xff]   ;;  %v7997_v7 = vld [vmem:[#allocation8 + $0x224] ss:$24 sps:$4 sm:$0xff]  }
 0x45d   : > { %6051 = vmatmul.mubr.bf16.vlgmr.msra.gmra.mrb[20].mxu0 %v9019_v18 }
 0x45e   : > { %6092 = vmatmul.mubr.bf16.vlgmr.msra.gmra.mrb[20].mxu1 %v9023_v45  ;;  %6101 = vmatpush1.bf16.msra.mxu0 %v7929_v25  ;;  %v8000_v25 = vld [vmem:[#allocation8 + $0x524] ss:$24 sps:$4 sm:$0xff]  }
 0x45f   : > { %6132 = vmatprep.mubr.bf16.mxu0 %v8991_v60  ;;  %6142 = vmatpush1.bf16.msra.mxu1 %v7932_v26  ;;  %v7950_v60 = vld [vmem:[#allocation8 + $0x3a0] ss:$24 sps:$4 sm:$0xff]  }
 0x460   : > { %6173 = vmatprep.mubr.bf16.mxu1 %v8993_v62  ;;  %6102 = vmatprep.subr.bf16.mxu0 %v7937_v27  ;;  %v7953_v62 = vld [vmem:[#allocation8 + $0xd0] ss:$24 sps:$4 sm:$0xff]   ;;  %v7995_v26 = vld [vmem:[#allocation8 + $0x220] ss:$24 sps:$4 sm:$0xff]  }
 0x461   : > { %6143 = vmatprep.subr.bf16.mxu1 %v7940_v9  ;;  %v7998_v27 = vld [vmem:[#allocation8 + $0x520] ss:$24 sps:$4 sm:$0xff]   ;;  %v8003_v9 = vld [vmem:[#allocation8 + $0x254] ss:$24 sps:$4 sm:$0xff]  }
 0x462   : > { %6103 = vmatpush1.bf16.msra.mxu0 %v7935_v29  ;;  %v8006_v29 = vld [vmem:[#allocation8 + $0x554] ss:$24 sps:$4 sm:$0xff]  }
 0x463   : > { %6144 = vmatpush1.bf16.msra.mxu1 %v7938_v33  ;;  %6104 = vmatprep.subr.bf16.mxu0 %v7943_v34  ;;  %v8001_v33 = vld [vmem:[#allocation8 + $0x250] ss:$24 sps:$4 sm:$0xff]  }
 0x464   : > { %6145 = vmatprep.subr.bf16.mxu1 %v7946_v8  ;;  %v8004_v34 = vld [vmem:[#allocation8 + $0x550] ss:$24 sps:$4 sm:$0xff]   ;;  %v8009_v8 = vld [vmem:[#allocation8 + $0x284] ss:$24 sps:$4 sm:$0xff]  }
 0x466   : > { %6105 = vmatpush1.bf16.msra.mxu0 %v7941_v11  ;;  %v8012_v11 = vld [vmem:[#allocation8 + $0x584] ss:$24 sps:$4 sm:$0xff]  }
 0x467   : > { %6146 = vmatpush1.bf16.msra.mxu1 %v7944_v12  ;;  %6106 = vmatprep.subr.bf16.mxu0 %v7949_v13  ;;  %v8007_v12 = vld [vmem:[#allocation8 + $0x280] ss:$24 sps:$4 sm:$0xff]  }
 0x468   : > { %6147 = vmatprep.subr.bf16.mxu1 %v7952_v14  ;;  %v8010_v13 = vld [vmem:[#allocation8 + $0x580] ss:$24 sps:$4 sm:$0xff]   ;;  %v8015_v14 = vld [vmem:[#allocation8 + $0x2b4] ss:$24 sps:$4 sm:$0xff]  }
 0x46a   : > { %6107 = vmatpush1.bf16.msra.mxu0 %v7947_v15  ;;  %v8018_v15 = vld [vmem:[#allocation8 + $0x5b4] ss:$24 sps:$4 sm:$0xff]  }
 0x46b   : > { %6148 = vmatpush1.bf16.msra.mxu1 %v7950_v60  ;;  %6108 = vmatprep.subr.bf16.mxu0 %v7955_v16  ;;  %v8013_v60 = vld [vmem:[#allocation8 + $0x2b0] ss:$24 sps:$4 sm:$0xff]  }
 0x46c   : > { %6149 = vmatprep.subr.bf16.mxu1 %v7958_v44  ;;  %v8016_v16 = vld [vmem:[#allocation8 + $0x5b0] ss:$24 sps:$4 sm:$0xff]   ;;  %v8021_v44 = vld [vmem:[#allocation8 + $0x2e4] ss:$24 sps:$4 sm:$0xff]  }
 0x46e   : > { %6109 = vmatpush1.bf16.msra.mxu0 %v7953_v62  ;;  %v8024_v62 = vld [vmem:[#allocation8 + $0x5e4] ss:$24 sps:$4 sm:$0xff]  }
 0x46f   : > { %6150 = vmatpush1.bf16.msra.mxu1 %v7956_v17  ;;  %6110 = vmatprep.subr.bf16.mxu0 %v7961_v3  ;;  %v8019_v17 = vld [vmem:[#allocation8 + $0x2e0] ss:$24 sps:$4 sm:$0xff]  }
 0x470   : > { %6151 = vmatprep.subr.bf16.mxu1 %v7964_v5  ;;  %v8022_v3 = vld [vmem:[#allocation8 + $0x5e0] ss:$24 sps:$4 sm:$0xff]   ;;  %v8027_v5 = vld [vmem:[#allocation8 + $0x614] ss:$24 sps:$4 sm:$0xff]  }
 0x472   : > { %6111 = vmatpush1.bf16.msra.mxu0 %v7959_v20  ;;  %v8030_v20 = vld [vmem:[#allocation8 + $0x914] ss:$24 sps:$4 sm:$0xff]  }
 0x473   : > { %6152 = vmatpush1.bf16.msra.mxu1 %v7962_v52  ;;  %6112 = vmatprep.subr.bf16.mxu0 %v7967_v53  ;;  %v8025_v52 = vld [vmem:[#allocation8 + $0x610] ss:$24 sps:$4 sm:$0xff]  }
 0x474   : > { %6153 = vmatprep.subr.bf16.mxu1 %v7970_v21  ;;  %v8028_v53 = vld [vmem:[#allocation8 + $0x910] ss:$24 sps:$4 sm:$0xff]   ;;  %v8033_v21 = vld [vmem:[#allocation8 + $0x644] ss:$24 sps:$4 sm:$0xff]  }
 0x476   : > { %6113 = vmatpush1.bf16.msra.mxu0 %v7965_v23  ;;  %v8036_v23 = vld [vmem:[#allocation8 + $0x944] ss:$24 sps:$4 sm:$0xff]  }
 0x477   : > { %6154 = vmatpush1.bf16.msra.mxu1 %v7968_v28  ;;  %6114 = vmatprep.subr.bf16.mxu0 %v7973_v31  ;;  %v8031_v28 = vld [vmem:[#allocation8 + $0x640] ss:$24 sps:$4 sm:$0xff]  }
 0x478   : > { %6155 = vmatprep.subr.bf16.mxu1 %v7976_v32  ;;  %v8034_v31 = vld [vmem:[#allocation8 + $0x940] ss:$24 sps:$4 sm:$0xff]   ;;  %v8039_v32 = vld [vmem:[#allocation8 + $0x674] ss:$24 sps:$4 sm:$0xff]  }
 0x47a   : > { %6115 = vmatpush1.bf16.msra.mxu0 %v7971_v36  ;;  %v8042_v36 = vld [vmem:[#allocation8 + $0x974] ss:$24 sps:$4 sm:$0xff]  }
 0x47b   : > { %6156 = vmatpush1.bf16.msra.mxu1 %v7974_v39  ;;  %6116 = vmatprep.subr.bf16.mxu0 %v7979_v43  ;;  %v8037_v39 = vld [vmem:[#allocation8 + $0x670] ss:$24 sps:$4 sm:$0xff]   ;;  %v8045_v43 = vld [vmem:[#allocation8 + $0x6a4] ss:$24 sps:$4 sm:$0xff]  }
 0x47c   : > { %6157 = vmatprep.subr.bf16.mxu1 %v7982_v46  ;;  %v8043_v46 = vld [vmem:[#allocation8 + $0x6a0] ss:$24 sps:$4 sm:$0xff]  }
 0x47e   : > { %6117 = vmatpush1.bf16.msra.mxu0 %v7977_v47  ;;  %v8051_v47 = vld [vmem:[#allocation8 + $0x6d4] ss:$24 sps:$4 sm:$0xff]  }
 0x47f   : > { %6158 = vmatpush1.bf16.msra.mxu1 %v7980_v24  ;;  %6118 = vmatprep.subr.bf16.mxu0 %v7985_v49  ;;  %v8054_v24 = vld [vmem:[#allocation8 + $0x9d4] ss:$24 sps:$4 sm:$0xff]   ;;  %v8052_v49 = vld [vmem:[#allocation8 + $0x9d0] ss:$24 sps:$4 sm:$0xff]  }
 0x480   : > { %6159 = vmatprep.subr.bf16.mxu1 %v7988_v30  ;;  %v8057_v30 = vld [vmem:[#allocation8 + $0x704] ss:$24 sps:$4 sm:$0xff]  }
 0x482   : > { %6119 = vmatpush1.bf16.msra.mxu0 %v7983_v51  ;;  %v8060_v51 = vld [vmem:[#allocation8 + $0xa04] ss:$24 sps:$4 sm:$0xff]  }
 0x483   : > { %6160 = vmatpush1.bf16.msra.mxu1 %v7986_v61  ;;  %6120 = vmatprep.subr.bf16.mxu0 %v7991_v0  ;;  %v8055_v61 = vld [vmem:[#allocation8 + $0x700] ss:$24 sps:$4 sm:$0xff]  }
 0x484   : > { %6161 = vmatprep.subr.bf16.mxu1 %v7994_v4  ;;  %v8058_v0 = vld [vmem:[#allocation8 + $0xa00] ss:$24 sps:$4 sm:$0xff]   ;;  %v8063_v4 = vld [vmem:[#allocation8 + $0x734] ss:$24 sps:$4 sm:$0xff]  }
 0x486   : > { %6121 = vmatpush1.bf16.msra.mxu0 %v7989_v1 }
 0x487   : > { %6162 = vmatpush1.bf16.msra.mxu1 %v7992_v6  ;;  %6122 = vmatprep.subr.bf16.mxu0 %v7997_v7  ;;  %v8066_v6 = vld [vmem:[#allocation8 + $0xa34] ss:$24 sps:$4 sm:$0xff]  }
 0x488   : > { %6163 = vmatprep.subr.bf16.mxu1 %v8000_v25 }
 0x48a   : > { %6123 = vmatpush1.bf16.msra.mxu0 %v7995_v26 }
 0x48b   : > { %6164 = vmatpush1.bf16.msra.mxu1 %v7998_v27  ;;  %6124 = vmatprep.subr.bf16.mxu0 %v8003_v9 }
 0x48c   : > { %6165 = vmatprep.subr.bf16.mxu1 %v8006_v29 }
 0x48e   : > { %6125 = vmatpush1.bf16.msra.mxu0 %v8001_v33  ;;  %v8061_v33 = vld [vmem:[#allocation8 + $0x730] ss:$24 sps:$4 sm:$0xff]  }
 0x48f   : > { %6166 = vmatpush1.bf16.msra.mxu1 %v8004_v34  ;;  %6126 = vmatprep.subr.bf16.mxu0 %v8009_v8 }
 0x490   : > { %6167 = vmatprep.subr.bf16.mxu1 %v8012_v11 }
 0x492   : > { %6127 = vmatpush1.bf16.msra.mxu0 %v8007_v12  ;;  %v8064_v12 = vld [vmem:[#allocation8 + $0xa30] ss:$24 sps:$4 sm:$0xff]  }
 0x493   : > { %6168 = vmatpush1.bf16.msra.mxu1 %v8010_v13  ;;  %6128 = vmatprep.subr.bf16.mxu0 %v8015_v14  ;;  %v8069_v13 = vld [vmem:[#allocation8 + $0x764] ss:$24 sps:$4 sm:$0xff]  }
 0x494   : > { %6169 = vmatprep.subr.bf16.mxu1 %v8018_v15 }
 0x496   : > { %6129 = vmatpush1.bf16.msra.mxu0 %v8013_v60  ;;  %v8067_v60 = vld [vmem:[#allocation8 + $0x760] ss:$24 sps:$4 sm:$0xff]  }
 0x497   : > { %6170 = vmatpush1.bf16.msra.mxu1 %v8016_v16  ;;  %6130 = vmatprep.subr.bf16.mxu0 %v8021_v44  ;;  %v8075_v16 = vld [vmem:[#allocation8 + $0x794] ss:$24 sps:$4 sm:$0xff]  }
 0x498   : > { %6171 = vmatprep.subr.bf16.mxu1 %v8024_v62  ;;  %v8078_v44 = vld [vmem:[#allocation8 + $0xa94] ss:$24 sps:$4 sm:$0xff]   ;;  %v8073_v62 = vld [vmem:[#allocation8 + $0x790] ss:$24 sps:$4 sm:$0xff]  }
 0x49a   : > { %6131 = vmatpush1.bf16.msra.mxu0 %v8019_v17  ;;  %v8076_v17 = vld [vmem:[#allocation8 + $0xa90] ss:$24 sps:$4 sm:$0xff]  }
 0x49b   : > { %6172 = vmatpush1.bf16.msra.mxu1 %v8022_v3  ;;  %6182 = vmatprep.subr.bf16.mxu0 %v8027_v5  ;;  %v8081_v3 = vld [vmem:[#allocation8 + $0x7c4] ss:$24 sps:$4 sm:$0xff]  }
 0x49c   : > { %6223 = vmatprep.subr.bf16.mxu1 %v8030_v20  ;;  %v8084_v5 = vld [vmem:[#allocation8 + $0xac4] ss:$24 sps:$4 sm:$0xff]   ;;  %v8079_v20 = vld [vmem:[#allocation8 + $0x7c0] ss:$24 sps:$4 sm:$0xff]  }
 0x49d   : > { %6133 = vmatmul.mubr.bf16.vlgmr.msra.gmra.mrb[24].mxu0 %v9003_v48  ;;  %v8040_v48 = vld [vmem:[#allocation8 + $0x970] ss:$24 sps:$4 sm:$0xff]  }
 0x49e   : > { %6174 = vmatmul.mubr.bf16.vlgmr.msra.gmra.mrb[24].mxu1 %v9005_v50  ;;  %6183 = vmatpush1.bf16.msra.mxu0 %v8025_v52  ;;  %v8048_v50 = vld [vmem:[#allocation8 + $0x9a4] ss:$24 sps:$4 sm:$0xff]   ;;  %v8082_v52 = vld [vmem:[#allocation8 + $0xac0] ss:$24 sps:$4 sm:$0xff]  }
 0x49f   : > { %6214 = vmatprep.mubr.bf16.mxu0 %v9017_v35  ;;  %6224 = vmatpush1.bf16.msra.mxu1 %v8028_v53  ;;  %v8046_v35 = vld [vmem:[#allocation8 + $0x9a0] ss:$24 sps:$4 sm:$0xff]   ;;  %v8087_v53 = vld [vmem:[#allocation8 + $0x7f4] ss:$24 sps:$4 sm:$0xff]  }
 0x4a0   : > { %6255 = vmatprep.mubr.bf16.mxu1 %v9021_v42  ;;  %6184 = vmatprep.subr.bf16.mxu0 %v8033_v21  ;;  %v8049_v42 = vld [vmem:[#allocation8 + $0x6d0] ss:$24 sps:$4 sm:$0xff]   ;;  %v8090_v21 = vld [vmem:[#allocation8 + $0xaf4] ss:$24 sps:$4 sm:$0xff]  }
 0x4a1   : > { %6225 = vmatprep.subr.bf16.mxu1 %v8036_v23  ;;  %v8085_v23 = vld [vmem:[#allocation8 + $0x7f0] ss:$24 sps:$4 sm:$0xff]  }
 0x4a2   : > { %6185 = vmatpush1.bf16.msra.mxu0 %v8031_v28  ;;  %v8088_v28 = vld [vmem:[#allocation8 + $0xaf0] ss:$24 sps:$4 sm:$0xff]  }
 0x4a3   : > { %6226 = vmatpush1.bf16.msra.mxu1 %v8034_v31  ;;  %6186 = vmatprep.subr.bf16.mxu0 %v8039_v32  ;;  %v8093_v31 = vld [vmem:[#allocation8 + $0x824] ss:$24 sps:$4 sm:$0xff]  }
 0x4a4   : > { %6227 = vmatprep.subr.bf16.mxu1 %v8042_v36  ;;  %v8096_v32 = vld [vmem:[#allocation8 + $0xb24] ss:$24 sps:$4 sm:$0xff]   ;;  %v8091_v36 = vld [vmem:[#allocation8 + $0x820] ss:$24 sps:$4 sm:$0xff]  }
 0x4a6   : > { %6187 = vmatpush1.bf16.msra.mxu0 %v8037_v39  ;;  %v8094_v39 = vld [vmem:[#allocation8 + $0xb20] ss:$24 sps:$4 sm:$0xff]  }
 0x4a7   : > { %6228 = vmatpush1.bf16.msra.mxu1 %v8040_v48  ;;  %6188 = vmatprep.subr.bf16.mxu0 %v8045_v43  ;;  %v8099_v48 = vld [vmem:[#allocation8 + $0x854] ss:$24 sps:$4 sm:$0xff]  }
 0x4a8   : > { %6229 = vmatprep.subr.bf16.mxu1 %v8048_v50  ;;  %v8102_v43 = vld [vmem:[#allocation8 + $0xb54] ss:$24 sps:$4 sm:$0xff]   ;;  %v8097_v50 = vld [vmem:[#allocation8 + $0x850] ss:$24 sps:$4 sm:$0xff]  }
 0x4aa   : > { %6189 = vmatpush1.bf16.msra.mxu0 %v8043_v46  ;;  %v8100_v46 = vld [vmem:[#allocation8 + $0xb50] ss:$24 sps:$4 sm:$0xff]  }
 0x4ab   : > { %6230 = vmatpush1.bf16.msra.mxu1 %v8046_v35  ;;  %6190 = vmatprep.subr.bf16.mxu0 %v8051_v47  ;;  %v8105_v35 = vld [vmem:[#allocation8 + $0x884] ss:$24 sps:$4 sm:$0xff]  }
 0x4ac   : > { %6231 = vmatprep.subr.bf16.mxu1 %v8054_v24  ;;  %v8108_v47 = vld [vmem:[#allocation8 + $0xb84] ss:$24 sps:$4 sm:$0xff]   ;;  %v8103_v24 = vld [vmem:[#allocation8 + $0x880] ss:$24 sps:$4 sm:$0xff]  }
 0x4ae   : > { %6191 = vmatpush1.bf16.msra.mxu0 %v8049_v42  ;;  %v8106_v42 = vld [vmem:[#allocation8 + $0xb80] ss:$24 sps:$4 sm:$0xff]  }
 0x4af   : > { %6232 = vmatpush1.bf16.msra.mxu1 %v8052_v49  ;;  %6192 = vmatprep.subr.bf16.mxu0 %v8057_v30  ;;  %v8111_v49 = vld [vmem:[#allocation8 + $0x8b4] ss:$24 sps:$4 sm:$0xff]  }
 0x4b0   : > { %v5888_v1 = vpop.f32.mrb[12].mxu0  ;;  %6233 = vmatprep.subr.bf16.mxu1 %v8060_v51  ;;  %v8114_v30 = vld [vmem:[#allocation8 + $0xbb4] ss:$24 sps:$4 sm:$0xff]   ;;  %v8109_v51 = vld [vmem:[#allocation8 + $0x8b0] ss:$24 sps:$4 sm:$0xff]  }
 0x4b1   : > { %v5889_v7 = vadd.f32 %v5888_v1, %v9037_v10  ;;  %v5929_v25 = vpop.f32.mrb[12].mxu1  ;;  %v5890_v26 = vpop.f32.mrb[13].mxu0  ;;  %v8072_v10 = vld [vmem:[#allocation8 + $0xa64] ss:$24 sps:$4 sm:$0xff]   ;;  %v8115_v1 = vld [vmem:[#allocation8 + $0x8e0] ss:$24 sps:$4 sm:$0xff]  }
 0x4b2   : > { %v5891_v27 = vadd.f32 %v5890_v26, %v9039_v19  ;;  %v5931_v9 = vpop.f32.mrb[13].mxu1  ;;  %6193 = vmatpush1.bf16.msra.mxu0 %v8055_v61  ;;  %v5892_v29 = vpop.f32.mrb[14].mxu0  ;;  %v8070_v19 = vld [vmem:[#allocation8 + $0xa60] ss:$24 sps:$4 sm:$0xff]   ;;  %v8112_v61 = vld [vmem:[#allocation8 + $0xbb0] ss:$24 sps:$4 sm:$0xff]  }
 0x4b3   : > { %v9055_v34 = vadd.f32 %v5929_v25, %v5889_v7  ;;  %6234 = vmatpush1.bf16.msra.mxu1 %v8058_v0  ;;  %v5933_v8 = vpop.f32.mrb[14].mxu1  ;;  %v5893_v11 = vpop.f32.mrb[15].mxu0  ;;  %6194 = vmatprep.subr.bf16.mxu0 %v8063_v4  ;;  %v8117_v0 = vld [vmem:[#allocation8 + $0x8e4] ss:$24 sps:$4 sm:$0xff]   ;;  %v3833_v7 = vrot.slane %v9031_v63, %v8889_v58  ;;  %v3837_v25 = vrot.slane %v9031_v63, %v8886_v57 }
 0x4b4   : > { %v9057_v14 = vadd.f32 %v5931_v9, %v5891_v27  ;;  %v5934_v15 = vpop.f32.mrb[15].mxu1  ;;  %6235 = vmatprep.subr.bf16.mxu1 %v8066_v6  ;;  %v8120_v4 = vld [vmem:[#allocation8 + $0xbe4] ss:$24 sps:$4 sm:$0xff]   ;;  %v8118_v6 = vld [vmem:[#allocation8 + $0xbe0] ss:$24 sps:$4 sm:$0xff]  }
 0x4b6   : > { %6195 = vmatpush1.bf16.msra.mxu0 %v8061_v33 }
 0x4b7   : > { %6236 = vmatpush1.bf16.msra.mxu1 %v8064_v12  ;;  %6196 = vmatprep.subr.bf16.mxu0 %v8069_v13 }
 0x4b8   : > { %6237 = vmatprep.subr.bf16.mxu1 %v8072_v10 }
 0x4ba   : > { %6197 = vmatpush1.bf16.msra.mxu0 %v8067_v60 }
 0x4bb   : > { %6238 = vmatpush1.bf16.msra.mxu1 %v8070_v19  ;;  %6198 = vmatprep.subr.bf16.mxu0 %v8075_v16 }
 0x4bc   : > { %6239 = vmatprep.subr.bf16.mxu1 %v8078_v44 }
 0x4be   : > { %6199 = vmatpush1.bf16.msra.mxu0 %v8073_v62 }
 0x4bf   : > { %6240 = vmatpush1.bf16.msra.mxu1 %v8076_v17  ;;  %6200 = vmatprep.subr.bf16.mxu0 %v8081_v3 }
 0x4c0   : > { %6241 = vmatprep.subr.bf16.mxu1 %v8084_v5 }
 0x4c2   : > { %6201 = vmatpush1.bf16.msra.mxu0 %v8079_v20 }
 0x4c3   : > { %6242 = vmatpush1.bf16.msra.mxu1 %v8082_v52  ;;  %6202 = vmatprep.subr.bf16.mxu0 %v8087_v53 }
 0x4c4   : > { %6243 = vmatprep.subr.bf16.mxu1 %v8090_v21  ;;  %v3841_v21 = vrot.slane %v9031_v63, %v8900_v2 }
 0x4c6   : > { %6203 = vmatpush1.bf16.msra.mxu0 %v8085_v23  ;;  %v3845_v23 = vrot.slane %v9031_v63, %v8892_v59 }
 0x4c7   : > { %6244 = vmatpush1.bf16.msra.mxu1 %v8088_v28  ;;  %6204 = vmatprep.subr.bf16.mxu0 %v8093_v31 }
 0x4c8   : > { %6245 = vmatprep.subr.bf16.mxu1 %v8096_v32 }
 0x4ca   : > { %6205 = vmatpush1.bf16.msra.mxu0 %v8091_v36 }
 0x4cb   : > { %6246 = vmatpush1.bf16.msra.mxu1 %v8094_v39  ;;  %6206 = vmatprep.subr.bf16.mxu0 %v8099_v48 }
 0x4cc   : > { %6247 = vmatprep.subr.bf16.mxu1 %v8102_v43 }
 0x4ce   : > { %6207 = vmatpush1.bf16.msra.mxu0 %v8097_v50 }
 0x4cf   : > { %6248 = vmatpush1.bf16.msra.mxu1 %v8100_v46  ;;  %6208 = vmatprep.subr.bf16.mxu0 %v8105_v35 }
 0x4d0   : > { %6249 = vmatprep.subr.bf16.mxu1 %v8108_v47 }
 0x4d2   : > { %6209 = vmatpush1.bf16.msra.mxu0 %v8103_v24 }
 0x4d3   : > { %6250 = vmatpush1.bf16.msra.mxu1 %v8106_v42  ;;  %6210 = vmatprep.subr.bf16.mxu0 %v8111_v49  ;;  %v9071_v42 = vadd.f32 %v9055_v34, %v8916_v38  ;;  %v9075_v49 = vadd.f32 %v9057_v14, %v8914_v37 }
 0x4d4   : > { %6251 = vmatprep.subr.bf16.mxu1 %v8114_v30 }
 0x4d5   : > { %v6280_v30 = vmul.f32 %v9071_v42, %v9071_v42 }
 0x4d6   : > { %6211 = vmatpush1.bf16.msra.mxu0 %v8109_v51  ;;  %v6281_v51 = vmul.f32 %v9075_v49, %v9075_v49 }
 0x4d7   : > { %6252 = vmatpush1.bf16.msra.mxu1 %v8112_v61  ;;  %6212 = vmatprep.subr.bf16.mxu0 %v8117_v0  ;;  %v6272_v61 = vadd.f32 %v9075_v49, %v9071_v42 }
 0x4d8   : > { %6253 = vmatprep.subr.bf16.mxu1 %v8120_v4  ;;  %v6286_v37 = vadd.f32 %v6281_v51, %v6280_v30 }
 0x4da   : > { %6213 = vmatpush1.bf16.msra.mxu0 %v8115_v1 }
 0x4db   : > { %6254 = vmatpush1.bf16.msra.mxu1 %v8118_v6 }
 0x4dd   : > { %6215 = vmatmul.mubr.bf16.vlgmr.msra.gmra.mrb[28].mxu0 %v9019_v18 }
 0x4de   : > { %6256 = vmatmul.mubr.bf16.vlgmr.msra.gmra.mrb[28].mxu1 %v9023_v45 }
 0x4f0   : > { %v5970_v26 = vpop.f32.mrb[16].mxu0 }
 0x4f1   : > { %v5971_v27 = vadd.f32 %v5970_v26, %v3833_v7  ;;  %v6011_v9 = vpop.f32.mrb[16].mxu1  ;;  %v5972_v29 = vpop.f32.mrb[17].mxu0 }
 0x4f2   : > { %v5973_v33 = vadd.f32 %v5972_v29, %v3837_v25  ;;  %v6013_v8 = vpop.f32.mrb[17].mxu1  ;;  %v5974_v11 = vpop.f32.mrb[18].mxu0 }
 0x4f3   : > { %v6012_v12 = vadd.f32 %v6011_v9, %v5971_v27  ;;  %v6015_v13 = vpop.f32.mrb[18].mxu1  ;;  %v5975_v15 = vpop.f32.mrb[19].mxu0 }
 0x4f4   : > { %v6014_v10 = vadd.f32 %v6013_v8, %v5973_v33  ;;  %v6016_v18 = vpop.f32.mrb[19].mxu1 }
 0x530   : > { %v6052_v60 = vpop.f32.mrb[20].mxu0 }
 0x531   : > { %v6053_v45 = vadd.f32 %v6052_v60, %v6012_v12  ;;  %v6093_v19 = vpop.f32.mrb[20].mxu1  ;;  %v6054_v16 = vpop.f32.mrb[21].mxu0 }
 0x532   : > { %v6055_v44 = vadd.f32 %v6054_v16, %v6014_v10  ;;  %v6095_v62 = vpop.f32.mrb[21].mxu1  ;;  %v6056_v17 = vpop.f32.mrb[22].mxu0 }
 0x533   : > { %v6094_v3 = vadd.f32 %v6093_v19, %v6053_v45  ;;  %v6097_v5 = vpop.f32.mrb[22].mxu1  ;;  %v6057_v20 = vpop.f32.mrb[23].mxu0 }
 0x534   : > { %v6096_v52 = vadd.f32 %v6095_v62, %v6055_v44  ;;  %v6098_v53 = vpop.f32.mrb[23].mxu1 }
 0x535   : > { %v9078_v63 = vadd.f32 %v6094_v3, %v8918_v40  ;;  %v6271_v53 = vld [vmem:[#allocation16] sm:$0x3f] }
 0x536   : > { %v6267_v34 = vadd.f32 %v6096_v52, %v8920_v41  ;;  %v6359_v30 = vrot.slane %v6271_v53, %v8889_v58  ;;  %v6363_v51 = vrot.slane %v6271_v53, %v8886_v57 }
 0x537   : > { %v6282_v38 = vmul.f32 %v9078_v63, %v9078_v63  ;;  %v6273_v1 = vadd.f32 %v6272_v61, %v9078_v63 }
 0x538   : > { %v6283_v26 = vmul.f32 %v6267_v34, %v6267_v34 }
 0x539   : > { %v6287_v33 = vadd.f32 %v6286_v37, %v6282_v38  ;;  %v6274_v41 = vadd.f32 %v6273_v1, %v6267_v34 }
 0x53b   : > { %v6288_v18 = vadd.f32 %v6287_v33, %v6283_v26 }
 0x570   : > { %v6134_v28 = vpop.f32.mrb[24].mxu0 }
 0x571   : > { %v6135_v31 = vadd.f32 %v6134_v28, %v3841_v21  ;;  %v6175_v32 = vpop.f32.mrb[24].mxu1  ;;  %v6136_v36 = vpop.f32.mrb[25].mxu0 }
 0x572   : > { %v6137_v39 = vadd.f32 %v6136_v36, %v3845_v23  ;;  %v6177_v48 = vpop.f32.mrb[25].mxu1  ;;  %v6138_v43 = vpop.f32.mrb[26].mxu0  ;;  %v6351_v36 = vrot.slane %v6271_v53, %v8883_v56 }
 0x573   : > { %v6176_v50 = vadd.f32 %v6175_v32, %v6135_v31  ;;  %v6179_v46 = vpop.f32.mrb[26].mxu1  ;;  %v6139_v35 = vpop.f32.mrb[27].mxu0 }
 0x574   : > { %v6178_v47 = vadd.f32 %v6177_v48, %v6137_v39  ;;  %v6180_v24 = vpop.f32.mrb[27].mxu1  ;;  %v6355_v39 = vrot.slane %v6271_v53, %v8880_v55 }
 0x5b0   : > { %v6216_v0 = vpop.f32.mrb[28].mxu0 }
 0x5b1   : > { %v6217_v14 = vadd.f32 %v6216_v0, %v6176_v50  ;;  %v6257_v4 = vpop.f32.mrb[28].mxu1  ;;  %v6218_v40 = vpop.f32.mrb[29].mxu0 }
 0x5b2   : > { %v6219_v6 = vadd.f32 %v6218_v40, %v6178_v47  ;;  %v6259_v7 = vpop.f32.mrb[29].mxu1  ;;  %v6220_v25 = vpop.f32.mrb[30].mxu0 }
 0x5b3   : > { %v6258_v27 = vadd.f32 %v6257_v4, %v6217_v14  ;;  %v6261_v9 = vpop.f32.mrb[30].mxu1  ;;  %v6221_v29 = vpop.f32.mrb[31].mxu0 }
 0x5b4   : > { %v6260_v8 = vadd.f32 %v6259_v7, %v6219_v6  ;;  %v6262_v11 = vpop.f32.mrb[31].mxu1 }
 0x5b5   : > { %v6268_v12 = vadd.f32 %v6258_v27, %v8941_v54  ;;  %v6270_v54 = vld [vmem:[#allocation14] sm:$0x3f] }
 0x5b6   : > { %v6269_v13 = vadd.f32 %v6260_v8, %v8922_v22  ;;  %v6314_v22 = vrot.slane %v6270_v54, %v8883_v56  ;;  %v6318_v21 = vrot.slane %v6270_v54, %v8880_v55  ;;  %v6322_v23 = vrot.slane %v6270_v54, %v8889_v58 }
 0x5b7   : > { %v6275_v15 = vadd.f32 %v6274_v41, %v6268_v12  ;;  %v6284_v10 = vmul.f32 %v6268_v12, %v6268_v12  ;;  %v6326_v28 = vrot.slane %v6270_v54, %v8886_v57  ;;  %v6330_v31 = vrot.slane %v6270_v54, %v8900_v2 }
 0x5b8   : > { %v6285_v45 = vmul.f32 %v6269_v13, %v6269_v13  ;;  %v6334_v32 = vrot.slane %v6270_v54, %v8892_v59 }
 0x5b9   : > { %v6276_v60 = vadd.f32 %v6275_v15, %v6269_v13  ;;  %v6289_v19 = vadd.f32 %v6288_v18, %v6284_v10 }
 0x5bb   : > { %6277 = vadd.xlane.f32.xlu1 %v6276_v60  ;;  %v6290_v16 = vadd.f32 %v6289_v19, %v6285_v45 }
 0x5bf   : > { %6291 = vadd.xlane.f32.xlu1 %v6290_v16 }
 0x648   : > { %v6278_v44 = vpop.xlane.xlu1 %6277 }
 0x649   : > { %v6279_v62 = vmul.f32 0.0013020834, %v6278_v44 }
 0x64b   : > { %v6294_v3 = vmul.f32 %v6279_v62, %v6279_v62  ;;  %v6298_v48 = vsub.f32 %v9071_v42, %v6279_v62  ;;  %v6299_v43 = vsub.f32 %v9075_v49, %v6279_v62  ;;  %v6300_v50 = vsub.f32 %v9078_v63, %v6279_v62 }
 0x64c   : > { %v6292_v17 = vpop.xlane.xlu1 %6291  ;;  %v6301_v46 = vsub.f32 %v6267_v34, %v6279_v62  ;;  %v6302_v47 = vsub.f32 %v6268_v12, %v6279_v62  ;;  %v6303_v24 = vsub.f32 %v6269_v13, %v6279_v62  ;;  %v6367_v49 = vrot.slane %v6271_v53, %v8900_v2 }
 0x64d   : > { %v6293_v5 = vmul.f32 0.0013020834, %v6292_v17  ;;  %v6371_v63 = vrot.slane %v6271_v53, %v8892_v59 }
 0x64f   : > { %v6295_v20 = vsub.f32 %v6293_v5, %v6294_v3 }
 0x651   : > { %v6296_v52 = vadd.f32 1e-05, %v6295_v20 }
 0x653   : > { %8123 = vrsqrt.f32 %v6296_v52 }
 0x65d   : > { %v8124_v35 = vpop.eup %8123 }
 0x65e   : > { %v6304_v61 = vmul.f32 %v8124_v35, %v6298_v48  ;;  %v6305_v38 = vmul.f32 %v8124_v35, %v6299_v43  ;;  %v6306_v56 = vmul.f32 %v8124_v35, %v6300_v50  ;;  %v6307_v0 = vmul.f32 %v8124_v35, %v6301_v46 }
 0x65f   : > { %v6308_v55 = vmul.f32 %v8124_v35, %v6302_v47  ;;  %v6309_v42 = vmul.f32 %v8124_v35, %v6303_v24 }
 0x660   : > { %v6341_v34 = vmul.f32 %v6314_v22, %v6304_v61  ;;  %v6342_v37 = vmul.f32 %v6318_v21, %v6305_v38  ;;  %v6343_v14 = vmul.f32 %v6322_v23, %v6306_v56  ;;  %v6344_v4 = vmul.f32 %v6326_v28, %v6307_v0 }
 0x661   : > { %v6345_v40 = vmul.f32 %v6330_v31, %v6308_v55  ;;  %v6346_v58 = vmul.f32 %v6334_v32, %v6309_v42 }
 0x662   : > { %v6378_v1 = vadd.f32 %v6351_v36, %v6341_v34  ;;  %v6379_v57 = vadd.f32 %v6355_v39, %v6342_v37  ;;  %v6380_v6 = vadd.f32 %v6359_v30, %v6343_v14  ;;  %v6381_v7 = vadd.f32 %v6363_v51, %v6344_v4 }
 0x663   : > { %v6382_v25 = vadd.f32 %v6367_v49, %v6345_v40  ;;  %v6383_v2 = vadd.f32 %v6371_v63, %v6346_v58 }
 0x664   : > { %v7367_v26 = vpack.c.bf16 %v6379_v57, %v6378_v1  ;;  %v7368_v59 = vpack.c.bf16 %v6381_v7, %v6380_v6 }
 0x665   : > { %v7369_v27 = vpack.c.bf16 %v6383_v2, %v6382_v25 }
 0x666   : > { %6408 = vst [vmem:[%s452_s14] sm:$0xff] %v7367_v26  ;;  %6409 = vst [vmem:[%s452_s14 + $0x8] sm:$0xff] %v7368_v59 }
 0x667   : > { %6410 = vst [vmem:[%s452_s14 + $0x10] sm:$0xff] %v7369_v27 }
 0x668   : > { %8392 = shalt.err (!%p8389_p9)
}
 0x669   : > { %s8393_s2 = scalar_lea.hbm %s9113_s9, 384  ;;  %s8397_s24 = scalar_lea.hbm %s9193_s18, 768 }
 0x66a   : > { %p8394_p4 = scmp.ne.s32.totalorder %s9113_s9, %s8393_s2  ;;  %p8398_p2 = scmp.lt.u32.totalorder %s9113_s9, %s9193_s18 }
 0x66b   : > { %p8399_p0 = scmp.lt.u32.totalorder %s8397_s24, %s8393_s2  ;;  %p8401_p10 = scmp.lt.u32.totalorder %s8393_s2, %s9113_s9 }
 0x66c   : > { %p8395_p8 = pnand %p8394_p4, %p9194_p1 }
 0x66d   : > { %p8400_p5 = por %p8399_p0, %p8398_p2 }
 0x66e   : > { %p8396_p6 = pneg %p8395_p8 }
 0x66f   : > { %p8402_p11 = por %p8401_p10, %p8400_p5 }
 0x671   : > { %p8403_p12 = pnand %p8402_p11, %p8396_p6 }
 0x673   : > { %8406 = shalt.err (!%p8403_p12)
}
 0x674   : > { %7448 = dma.vmem_to_hbm [thread:$0]  (%p9194_p1), %s9115_s25, 384, %s9113_s9, %s6412_s15  }
 0x675 PF: > { %s6438_s28 = sand.u32 1, %s8449_s30   ;;  %p9195_p13 = scmp.ne.s32.totalorder %s9182_s17, 0 }
 0x676   : > { %p9196_p3 = scmp.ge.s32.totalorder %s8461_s12, 2  ;;  %s6439_s27 = scalar_lea.sflag [#allocation4], %s6438_s28 }
 0x678   : > { %p7480_p7 = pnand %p9196_p3, %p9195_p13 }
 0x67a   : > { %8444 = dma.done.wait (!%p7480_p7), %s6439_s27, 384  }
 0x67b   : > { %8446 = vsyncadd (!%p7480_p7), %s6439_s27, 4294966912  ;;  %p26_p9 = scmp.ge.s32.totalorder %s8735_s19, 4   ;;  %s9197_s30 = smov %s8453_s10 }
 0x67c   : > { %s9198_s10 = smov %s8457_s11  ;;  %s9199_s11 = smov %s8746_s23 }
 0x67d   : > { %s9200_s12 = smov %s8735_s19  ;;  %28 = sbr.rel (!%p26_p9) target bundleno = 13 (0xd), region = 133 }
 0x684   :  { %6444 = vsyncpa [#allocation3], 1 }
 0x685   :  { %6446 = vsyncpa [#allocation3 + $0x1], 1 }
 0x686   :  { %6447 = vsyncpa [#allocation6], 1 }
 0x687   :  { %6448 = vsyncpa [#allocation9], 1 }
 0x688   :  { %6449 = vsyncpa [#allocation12], 1 }
 0x689   :  { %6450 = vsyncpa [#allocation15], 1 }
 0x68a   :  { %6451 = vsyncpa [#allocation4], 1 }
 0x68b   :  { %6453 = vsyncpa [#allocation4 + $0x1], 1 }

</bundles_post_ra>
